<compile_context>
chip_gen: v7x
topology: tpu7x:2x2x1
jax: 0.10.0
libtpu: 0.0.40
codegen_flags: <defaults>
</compile_context>

<pallas_src>
import functools

import jax
import jax.numpy as jnp
from jax import lax
from jax.experimental import pallas as pl
from jax.experimental.pallas import tpu as pltpu

EPS = 1e-5


def _round_up(x, m):
    return ((x + m - 1) // m) * m


# ----------------------------- Pallas kernels --------------------------------

def _conv1_kernel(x_ref, w_ref, s_ref, b_ref, o_ref):
    """1x1 conv + folded BN + ReLU on a (tm, Cin) row tile.  bf16 in/out, f32 accum."""
    y = jnp.dot(x_ref[...], w_ref[...], preferred_element_type=jnp.float32)
    o_ref[...] = jnp.maximum(y * s_ref[...] + b_ref[...], 0.0).astype(o_ref.dtype)


def _make_main_kernel(s2, wps, moP, has_ds):
    """Fused grouped-3x3 conv + bn2 + relu + conv3 + bn3 + shortcut + relu.

    grid = (image, channel_band); band axis is the reduction ("arbitrary") axis with an
    f32 VMEM accumulator feeding the K-tiled conv3.  The 9 conv2 taps are contiguous
    row-slabs of the flattened padded conv1 output and are reduced inside the MXU via a
    single deep-K matmul (K = 9 * band)."""

    def kernel(*refs):
        if has_ds:
            (pln_ref, w2_ref, sc2_ref, sb2_ref, w3_ref, sc3_ref, sb3_ref,
             xs_ref, wds_ref, scd_ref, bdd_ref, o_ref, acc_ref, accd_ref) = refs
        else:
            (pln_ref, w2_ref, sc2_ref, sb2_ref, w3_ref, sc3_ref, sb3_ref,
             xid_ref, o_ref, acc_ref) = refs

        b_idx = pl.program_id(1)
        nb = pl.num_programs(1)

        if has_ds:
            # Downsample-shortcut matmul off the serial epilogue: compute it at the
            # first band step into its own scratch.
            @pl.when(b_idx == 0)
            def _shortcut_matmul():
                accd_ref[...] = jnp.dot(xs_ref[...], wds_ref[...],
                                        preferred_element_type=jnp.float32)

        # Gather the 9 taps as contiguous (static-offset) slabs of the flattened
        # padded planes and contract them in ONE deep-K matmul.
        taps = []
        for dy in range(3):
            pr, ar = dy % s2, dy // s2
            for dx in range(3):
                pc, ac = dx % s2, dx // s2
                p = pr * s2 + pc
                off = ar * wps + ac                       # static Python int
                taps.append(pln_ref[p, off:off + moP, :])
        lhs = jnp.concatenate(taps, axis=1)               # (moP, 9*band) bf16

        w2_b = w2_ref[b_idx]                              # (9*band, band)  bf16
        t = jnp.dot(lhs, w2_b, preferred_element_type=jnp.float32)
        t = jnp.maximum(t * sc2_ref[b_idx] + sb2_ref[b_idx], 0.0)   # bn2 + relu

        contrib = jnp.dot(t.astype(w3_ref.dtype), w3_ref[b_idx],
                          preferred_element_type=jnp.float32)       # conv3 partial

        @pl.when(b_idx == 0)
        def _first():
            acc_ref[...] = contrib

        @pl.when(b_idx > 0)
        def _rest():
            acc_ref[...] += contrib

        @pl.when(b_idx == nb - 1)
        def _finalize():
            u = acc_ref[...] * sc3_ref[...] + sb3_ref[...]          # bn3
            if has_ds:
                sc = accd_ref[...] * scd_ref[...] + bdd_ref[...]    # bn_ds (bias folded)
            else:
                sc = xid_ref[...].astype(jnp.float32)
            o_ref[...] = jnp.maximum(u + sc, 0.0).astype(o_ref.dtype)

    return kernel


# ------------------------------ glue helpers ---------------------------------

def _fold_bn(bn):
    scale = bn["gamma"] / jnp.sqrt(bn["var"] + EPS)
    bias = bn["beta"] - bn["mean"] * scale
    return scale, bias


def _pad_last(a, cols):
    pad = cols - a.shape[-1]
    if pad == 0:
        return a
    return jnp.pad(a, ((0, 0),) * (a.ndim - 1) + ((0, pad),))


def _band_grouped_3x3(w, groups, band):
    """PyTorch grouped weight (C, C/groups, 3, 3) -> (nb, 9*band, band) banded
    block-diagonal weight.  Rows are ordered [tap0 | tap1 | ... | tap8] with
    t = dy*3 + dx, matching the in-kernel tap concatenation order."""
    c_out, cpg, kh, kw = w.shape
    opg = c_out // groups
    nb = c_out // band
    gpb = band // cpg                                   # groups per band
    w_ = jnp.transpose(w, (2, 3, 1, 0))                 # (kh, kw, cpg, c_out)
    w_ = w_.reshape(kh * kw, cpg, groups, opg)          # (9, cpg, g, opg)
    w_ = jnp.transpose(w_, (0, 2, 1, 3))                # (9, g, cpg, opg)
    w_ = w_.reshape(kh * kw, nb, gpb, cpg, opg)         # (9, nb, gpb, cpg, opg)
    eye = jnp.eye(gpb, dtype=w.dtype)
    wb = jnp.einsum("tngio,gh->tngiho", w_, eye)        # zero off-group couplings
    wb = wb.reshape(kh * kw, nb, band, band)
    wb = jnp.transpose(wb, (1, 0, 2, 3))                # (nb, 9, band, band)
    return wb.reshape(nb, kh * kw * band, band)         # (nb, 9*band, band)


def _conv1_bn_relu(x2d, w1, scale, bias, *, tm=512):
    m, cin = x2d.shape
    c = w1.shape[1]
    mp = _round_up(m, tm)
    xp = x2d if mp == m else jnp.pad(x2d, ((0, mp - m), (0, 0)))
    y = pl.pallas_call(
        _conv1_kernel,
        out_shape=jax.ShapeDtypeStruct((mp, c), jnp.bfloat16),
        grid=(mp // tm,),
        in_specs=[
            pl.BlockSpec((tm, cin), lambda i: (i, 0)),
            pl.BlockSpec((cin, c), lambda i: (0, 0)),
            pl.BlockSpec((1, c), lambda i: (0, 0)),
            pl.BlockSpec((1, c), lambda i: (0, 0)),
        ],
        out_specs=pl.BlockSpec((tm, c), lambda i: (i, 0)),
        compiler_params=pltpu.CompilerParams(dimension_semantics=("parallel",)),
    )(xp, w1, scale, bias)
    return y if mp == m else y[:m]


# ------------------------------ Block forward --------------------------------

def block_forward(x_nchw, params, *, downsample, stride=1, down_stride=0, groups=32):
    n, cin, h, w_sp = x_nchw.shape
    c = params["conv1_w"].shape[0]
    c2 = 2 * c
    c2p = _round_up(c2, 128)                             # lane-dense output channels
    s2 = down_stride if downsample else 1
    cpg = c // groups
    band = 128 if (c > 128 and c % 128 == 0 and 128 % cpg == 0) else c
    nb = c // band

    # --- padded / flattened "planes" geometry (valid for s2 in {1, 2}) ---
    ho = (h - 1) // s2 + 1
    wo = (w_sp - 1) // s2 + 1
    ax = 2 // s2                                         # max per-plane tap offset
    hps, wps = ho + ax, wo + ax
    moP = ho * wps                                       # rows incl. garbage cols
    SP = _round_up(hps * wps + ax, 8)                    # flattened per-plane length

    # ---- fold BN, pack bf16 weights, build banded grouped weight (glue) ----
    w1 = params["conv1_w"][:, :, 0, 0].T.astype(jnp.bfloat16)        # (cin, c)
    sc1, sb1 = _fold_bn(params["bn1"])
    w2b = _band_grouped_3x3(params["conv2_w"], groups, band).astype(jnp.bfloat16)
    sc2, sb2 = _fold_bn(params["bn2"])
    sc2b = sc2.reshape(nb, 1, band)
    sb2b = sb2.reshape(nb, 1, band)
    w3 = _pad_last(params["conv3_w"][:, :, 0, 0].T, c2p)
    w3 = w3.reshape(nb, band, c2p).astype(jnp.bfloat16)
    sc3, sb3 = _fold_bn(params["bn3"])
    sc3p = _pad_last(sc3[None, :], c2p)
    sb3p = _pad_last(sb3[None, :], c2p)

    # NCHW -> NHWC + bf16 in one pass (no f32 intermediate).
    xb = jnp.transpose(x_nchw, (0, 2, 3, 1)).astype(jnp.bfloat16)

    # ---- stage 1: conv1 (1x1) + bn1 + relu (Pallas kernel, 512-row tiles) ----
    y1 = _conv1_bn_relu(xb.reshape(n * h * w_sp, cin), w1,
                        sc1.reshape(1, c), sb1.reshape(1, c))
    y1 = y1.reshape(n, h, w_sp, c)

    # ---- pad + space-to-depth + flatten: every conv2 tap becomes a contiguous
    #      row-slab at a static offset of the flattened planes ----
    hp, wp = s2 * hps, s2 * wps
    y1p = jnp.pad(y1, ((0, 0), (1, hp - h - 1), (1, wp - w_sp - 1), (0, 0)))
    planes = y1p.reshape(n, hps, s2, wps, s2, c)
    planes = jnp.transpose(planes, (0, 2, 4, 1, 3, 5)).reshape(n, s2 * s2, hps * wps, c)
    planes = jnp.pad(planes, ((0, 0), (0, 0), (0, SP - hps * wps), (0, 0)))

    common_specs = [
        pl.BlockSpec((None, s2 * s2, SP, band), lambda i, b: (i, 0, 0, b)),
        # grid-invariant weights / folded BN vectors: fetched once per pallas_call.
        pl.BlockSpec((nb, 9 * band, band), lambda i, b: (0, 0, 0)),
        pl.BlockSpec((nb, 1, band), lambda i, b: (0, 0, 0)),
        pl.BlockSpec((nb, 1, band), lambda i, b: (0, 0, 0)),
        pl.BlockSpec((nb, band, c2p), lambda i, b: (0, 0, 0)),
        pl.BlockSpec((1, c2p), lambda i, b: (0, 0)),
        pl.BlockSpec((1, c2p), lambda i, b: (0, 0)),
    ]
    out_spec = pl.BlockSpec((None, moP, c2p), lambda i, b: (i, 0, 0))
    scratch = [pltpu.VMEM((moP, c2p), jnp.float32)]
    common_args = (planes, w2b, sc2b, sb2b, w3, sc3p, sb3p)

    if downsample:
        xs = xb[:, ::stride, ::stride, :]                            # strided gather (glue)
        assert xs.shape[1:3] == (ho, wo), "downsample stride must match conv2 stride"
        xs = jnp.pad(xs, ((0, 0), (0, 0), (0, wps - wo), (0, 0))).reshape(n, moP, cin)
        wds = _pad_last(params["ds_conv_w"][:, :, 0, 0].T, c2p).astype(jnp.bfloat16)
        scd, sbd = _fold_bn(params["bn_ds"])
        bdd = scd * params["ds_conv_b"] + sbd            # fold conv bias into BN bias
        scdp = _pad_last(scd[None, :], c2p)
        bddp = _pad_last(bdd[None, :], c2p)
        in_specs = common_specs + [
            pl.BlockSpec((None, moP, cin), lambda i, b: (i, 0, 0)),
            pl.BlockSpec((cin, c2p), lambda i, b: (0, 0)),
            pl.BlockSpec((1, c2p), lambda i, b: (0, 0)),
            pl.BlockSpec((1, c2p), lambda i, b: (0, 0)),
        ]
        args = common_args + (xs, wds, scdp, bddp)
        scratch.append(pltpu.VMEM((moP, c2p), jnp.float32))
    else:
        assert cin == c2 and (ho, wo) == (h, w_sp), \
            "identity shortcut needs cin == 2*out_channels and stride 1"
        xid = jnp.pad(xb, ((0, 0), (0, 0), (0, wps - w_sp), (0, c2p - c2)))
        xid = xid.reshape(n, moP, c2p)
        in_specs = common_specs + [
            pl.BlockSpec((None, moP, c2p), lambda i, b: (i, 0, 0))]
        args = common_args + (xid,)

    flops = 2 * n * moP * (nb * 9 * band * band + c * c2p)
    if downsample:
        flops += 2 * n * moP * cin * c2p
    bytes_acc = sum(int(a.size) * a.dtype.itemsize for a in args) + n * moP * c2p * 2

    # VMEM budget from the per-step footprint (weights resident, double-buffered
    # activation blocks, accumulators, tap buffer), clamped for 64 MiB v7x parts.
    resident = (int(w2b.size) + int(w3.size)) * 2 \
        + (s2 * s2 * SP * band * 2) * 2 \
        + (moP * c2p * 2) * 2 * 2 \
        + moP * c2p * 4 * len(scratch) \
        + moP * 9 * band * 2
    vmem_limit = int(min(max(2 * resident, 32 * 1024 * 1024), 48 * 1024 * 1024))

    out = pl.pallas_call(
        _make_main_kernel(s2, wps, moP, downsample),
        out_shape=jax.ShapeDtypeStruct((n, moP, c2p), jnp.bfloat16),
        grid=(n, nb),
        in_specs=in_specs,
        out_specs=out_spec,
        scratch_shapes=scratch,
        compiler_params=pltpu.CompilerParams(
            dimension_semantics=("parallel", "arbitrary"),
            vmem_limit_bytes=vmem_limit),
        cost_estimate=pl.CostEstimate(flops=flops, transcendentals=0,
                                      bytes_accessed=bytes_acc),
    )(*args)

    # Drop the per-row garbage columns / channel pad and go back to NCHW (one fused
    # glue transpose; the slice rides along for free).
    out = out.reshape(n, ho, wps, c2p)[:, :, :wo, :c2].astype(jnp.float32)
    return jnp.transpose(out, (0, 3, 1, 2))


# ----------------------------- params & reference ----------------------------

def init_block_params(key, in_channels, out_channels, downsample):
    c = out_channels
    ks = jax.random.split(key, 9)

    def w(k, shape, scale=0.1):
        return scale * jax.random.normal(k, shape, dtype=jnp.float32)

    def bn(k, ch):
        k1, k2, k3, k4 = jax.random.split(k, 4)
        return dict(gamma=1.0 + 0.1 * jax.random.normal(k1, (ch,), jnp.float32),
                    beta=0.1 * jax.random.normal(k2, (ch,), jnp.float32),
                    mean=0.1 * jax.random.normal(k3, (ch,), jnp.float32),
                    var=0.9 + 0.2 * jax.random.uniform(k4, (ch,), jnp.float32))

    p = {
        "conv1_w": w(ks[0], (c, in_channels, 1, 1)),                 # OIHW (PyTorch)
        "bn1": bn(ks[1], c),
        "conv2_w": w(ks[2], (c, c // 32, 3, 3)),                     # grouped, groups=32
        "bn2": bn(ks[3], c),
        "conv3_w": w(ks[4], (2 * c, c, 1, 1)),
        "bn3": bn(ks[5], 2 * c),
    }
    if downsample:
        p["ds_conv_w"] = w(ks[6], (2 * c, in_channels, 1, 1))
        p["ds_conv_b"] = w(ks[7], (2 * c,))
        p["bn_ds"] = bn(ks[8], 2 * c)
    return p


def reference_block(x_nchw, params, *, downsample, stride=1, down_stride=0, groups=32):
    x = jnp.transpose(x_nchw, (0, 2, 3, 1)).astype(jnp.float32)

    def conv(y, w_oihw, s, pad, fgc=1):
        w_hwio = jnp.transpose(w_oihw, (2, 3, 1, 0))
        return lax.conv_general_dilated(
            y, w_hwio, (s, s), pad,
            dimension_numbers=("NHWC", "HWIO", "NHWC"),
            feature_group_count=fgc)

    def bn(y, b):
        return b["gamma"] * (y - b["mean"]) / jnp.sqrt(b["var"] + EPS) + b["beta"]

    s2 = down_stride if downsample else 1
    out = jax.nn.relu(bn(conv(x, params["conv1_w"], 1, "VALID"), params["bn1"]))
    out = jax.nn.relu(bn(conv(out, params["conv2_w"], s2, ((1, 1), (1, 1)), groups),
                         params["bn2"]))
    out = bn(conv(out, params["conv3_w"], 1, "VALID"), params["bn3"])
    if downsample:
        sc = conv(x, params["ds_conv_w"], stride, "VALID") + params["ds_conv_b"]
        sc = bn(sc, params["bn_ds"])
    else:
        sc = x
    out = jax.nn.relu(out + sc)
    return jnp.transpose(out, (0, 3, 1, 2))


# ---------------------------------- main --------------------------------------

if __name__ == "__main__":
    key = jax.random.PRNGKey(0)
    kx, kp1, kp2 = jax.random.split(key, 3)

    in_c, out_c = 64, 32                 # groups=32 => out_c must be a multiple of 32
    x = jax.random.normal(kx, (2, in_c, 16, 16), jnp.float32)        # NCHW, like PyTorch

    # Config A: identity shortcut (requires in_c == 2*out_c), stride 1.
    pA = init_block_params(kp1, in_c, out_c, downsample=False)
    fwdA = jax.jit(functools.partial(block_forward, downsample=False))
    outA = jax.block_until_ready(fwdA(x, pA))
    refA = reference_block(x, pA, downsample=False)
    assert outA.shape == (2, 2 * out_c, 16, 16)

    # Config B: conv shortcut + stride-2 grouped conv.
    pB = init_block_params(kp2, in_c, out_c, downsample=True)
    fwdB = jax.jit(functools.partial(block_forward, downsample=True,
                                     stride=2, down_stride=2))
    outB = jax.block_until_ready(fwdB(x, pB))
    refB = reference_block(x, pB, downsample=True, stride=2, down_stride=2)
    assert outB.shape == (2, 2 * out_c, 8, 8)

    okA = jnp.allclose(outA, refA, rtol=5e-2, atol=5e-2)
    okB = jnp.allclose(outB, refB, rtol=5e-2, atol=5e-2)
    if not (bool(okA) and bool(okB)):
        raise AssertionError(
            f"mismatch: A={float(jnp.max(jnp.abs(outA - refA)))} "
            f"B={float(jnp.max(jnp.abs(outB - refB)))}")
    print("KERNEL_OK")
</pallas_src>

<mosaic_0001>
module attributes {stable_mosaic.version = 11 : i64} {
  func.func @_conv1_kernel(%arg0: i32, %arg1: memref<512x64xbf16, #tpu.memory_space<vmem>>, %arg2: memref<64x32xbf16, #tpu.memory_space<vmem>>, %arg3: memref<1x32xf32, #tpu.memory_space<vmem>>, %arg4: memref<1x32xf32, #tpu.memory_space<vmem>>, %arg5: memref<512x32xbf16, #tpu.memory_space<vmem>>) attributes {dimension_semantics = [#tpu.dimension_semantics<parallel>], iteration_bounds = array<i64: 1>, scalar_prefetch = 0 : i64, scratch_operands = 0 : i64, tpu.core_type = #tpu.core_type<tc>, window_params = [{transform_indices = @transform_0, window_bounds = array<i64: 512, 64>}, {pipeline_mode = #tpu.pipeline_mode<synchronous>, transform_indices = @transform_1, window_bounds = array<i64: 64, 32>}, {pipeline_mode = #tpu.pipeline_mode<synchronous>, transform_indices = @transform_2, window_bounds = array<i64: 1, 32>}, {pipeline_mode = #tpu.pipeline_mode<synchronous>, transform_indices = @transform_3, window_bounds = array<i64: 1, 32>}, {transform_indices = @transform_4, window_bounds = array<i64: 512, 32>}]} {
    %c0 = arith.constant 0 : index
    %c0_0 = arith.constant 0 : index
    %0 = vector.load %arg1[%c0, %c0_0] : memref<512x64xbf16, #tpu.memory_space<vmem>>, vector<512x64xbf16>
    %c0_1 = arith.constant 0 : index
    %c0_2 = arith.constant 0 : index
    %1 = vector.load %arg2[%c0_1, %c0_2] : memref<64x32xbf16, #tpu.memory_space<vmem>>, vector<64x32xbf16>
    %cst = arith.constant dense<0.000000e+00> : vector<512x32xf32>
    %2 = tpu.matmul %0, %1, %cst {dimension_numbers = #tpu.dot_dimension_numbers<[1], [0], [0], [1], [0, 0, 1, 1], [], []>} : vector<512x64xbf16>, vector<64x32xbf16>, vector<512x32xf32> -> vector<512x32xf32>
    %c0_3 = arith.constant 0 : index
    %c0_4 = arith.constant 0 : index
    %3 = vector.load %arg3[%c0_3, %c0_4] : memref<1x32xf32, #tpu.memory_space<vmem>>, vector<1x32xf32>
    %4 = vector.broadcast %3 : vector<1x32xf32> to vector<512x32xf32>
    %5 = arith.mulf %2, %4 : vector<512x32xf32>
    %c0_5 = arith.constant 0 : index
    %c0_6 = arith.constant 0 : index
    %6 = vector.load %arg4[%c0_5, %c0_6] : memref<1x32xf32, #tpu.memory_space<vmem>>, vector<1x32xf32>
    %7 = vector.broadcast %6 : vector<1x32xf32> to vector<512x32xf32>
    %8 = arith.addf %5, %7 : vector<512x32xf32>
    %cst_7 = arith.constant 0.000000e+00 : f32
    %9 = vector.broadcast %cst_7 : f32 to vector<512x32xf32>
    %10 = arith.maximumf %8, %9 : vector<512x32xf32>
    %11 = arith.truncf %10 : vector<512x32xf32> to vector<512x32xbf16>
    %c0_8 = arith.constant 0 : index
    %c0_9 = arith.constant 0 : index
    %12 = vector.load %arg5[%c0_8, %c0_9] : memref<512x32xbf16, #tpu.memory_space<vmem>>, vector<512x32xbf16>
    tpu.vector_store %arg5[%c0_8, %c0_9], %11 {strides = array<i32>} : memref<512x32xbf16, #tpu.memory_space<vmem>>, vector<512x32xbf16>,
    return
  }
  func.func @transform_0(%arg0: i32) -> (i32, i32) {
    %c0_i32 = arith.constant 0 : i32
    %c0_i32_0 = arith.constant 0 : i32
    return %arg0, %c0_i32 : i32, i32
  }
  func.func @transform_1(%arg0: i32) -> (i32, i32) {
    %c0_i32 = arith.constant 0 : i32
    %c0_i32_0 = arith.constant 0 : i32
    %c0_i32_1 = arith.constant 0 : i32
    return %c0_i32, %c0_i32_0 : i32, i32
  }
  func.func @transform_2(%arg0: i32) -> (i32, i32) {
    %c0_i32 = arith.constant 0 : i32
    %c0_i32_0 = arith.constant 0 : i32
    %c0_i32_1 = arith.constant 0 : i32
    return %c0_i32, %c0_i32_0 : i32, i32
  }
  func.func @transform_3(%arg0: i32) -> (i32, i32) {
    %c0_i32 = arith.constant 0 : i32
    %c0_i32_0 = arith.constant 0 : i32
    %c0_i32_1 = arith.constant 0 : i32
    return %c0_i32, %c0_i32_0 : i32, i32
  }
  func.func @transform_4(%arg0: i32) -> (i32, i32) {
    %c0_i32 = arith.constant 0 : i32
    %c0_i32_0 = arith.constant 0 : i32
    return %arg0, %c0_i32 : i32, i32
  }
}

module attributes {stable_mosaic.version = 11 : i64} {
  func.func @kernel(%arg0: i32, %arg1: i32, %arg2: memref<1x1x328x32xbf16, #tpu.memory_space<vmem>>, %arg3: memref<1x288x32xbf16, #tpu.memory_space<vmem>>, %arg4: memref<1x1x32xf32, #tpu.memory_space<vmem>>, %arg5: memref<1x1x32xf32, #tpu.memory_space<vmem>>, %arg6: memref<1x32x128xbf16, #tpu.memory_space<vmem>>, %arg7: memref<1x128xf32, #tpu.memory_space<vmem>>, %arg8: memref<1x128xf32, #tpu.memory_space<vmem>>, %arg9: memref<1x288x128xbf16, #tpu.memory_space<vmem>>, %arg10: memref<1x288x128xbf16, #tpu.memory_space<vmem>>, %arg11: memref<288x128xf32, #tpu.memory_space<vmem>>) attributes {dimension_semantics = [#tpu.dimension_semantics<parallel>, #tpu.dimension_semantics<arbitrary>], iteration_bounds = array<i64: 2, 1>, scalar_prefetch = 0 : i64, scratch_operands = 1 : i64, tpu.core_type = #tpu.core_type<tc>, window_params = [{transform_indices = @transform_0, window_bounds = array<i64: 1, 1, 328, 32>}, {pipeline_mode = #tpu.pipeline_mode<synchronous>, transform_indices = @transform_1, window_bounds = array<i64: 1, 288, 32>}, {pipeline_mode = #tpu.pipeline_mode<synchronous>, transform_indices = @transform_2, window_bounds = array<i64: 1, 1, 32>}, {pipeline_mode = #tpu.pipeline_mode<synchronous>, transform_indices = @transform_3, window_bounds = array<i64: 1, 1, 32>}, {pipeline_mode = #tpu.pipeline_mode<synchronous>, transform_indices = @transform_4, window_bounds = array<i64: 1, 32, 128>}, {pipeline_mode = #tpu.pipeline_mode<synchronous>, transform_indices = @transform_5, window_bounds = array<i64: 1, 128>}, {pipeline_mode = #tpu.pipeline_mode<synchronous>, transform_indices = @transform_6, window_bounds = array<i64: 1, 128>}, {transform_indices = @transform_7, window_bounds = array<i64: 1, 288, 128>}, {transform_indices = @transform_8, window_bounds = array<i64: 1, 288, 128>}]} {
    %c0 = arith.constant 0 : index
    %c0_0 = arith.constant 0 : index
    %c0_1 = arith.constant 0 : index
    %c0_2 = arith.constant 0 : index
    %0 = vector.load %arg2[%c0, %c0_0, %c0_1, %c0_2] : memref<1x1x328x32xbf16, #tpu.memory_space<vmem>>, vector<1x1x288x32xbf16>
    %1 = vector.shape_cast %0 : vector<1x1x288x32xbf16> to vector<288x32xbf16>
    %c0_3 = arith.constant 0 : index
    %c0_4 = arith.constant 0 : index
    %c1 = arith.constant 1 : index
    %c0_5 = arith.constant 0 : index
    %2 = vector.load %arg2[%c0_3, %c0_4, %c1, %c0_5] : memref<1x1x328x32xbf16, #tpu.memory_space<vmem>>, vector<1x1x288x32xbf16>
    %3 = vector.shape_cast %2 : vector<1x1x288x32xbf16> to vector<288x32xbf16>
    %c0_6 = arith.constant 0 : index
    %c0_7 = arith.constant 0 : index
    %c2 = arith.constant 2 : index
    %c0_8 = arith.constant 0 : index
    %4 = vector.load %arg2[%c0_6, %c0_7, %c2, %c0_8] : memref<1x1x328x32xbf16, #tpu.memory_space<vmem>>, vector<1x1x288x32xbf16>
    %5 = vector.shape_cast %4 : vector<1x1x288x32xbf16> to vector<288x32xbf16>
    %c0_9 = arith.constant 0 : index
    %c0_10 = arith.constant 0 : index
    %c18 = arith.constant 18 : index
    %c0_11 = arith.constant 0 : index
    %6 = vector.load %arg2[%c0_9, %c0_10, %c18, %c0_11] : memref<1x1x328x32xbf16, #tpu.memory_space<vmem>>, vector<1x1x288x32xbf16>
    %7 = vector.shape_cast %6 : vector<1x1x288x32xbf16> to vector<288x32xbf16>
    %c0_12 = arith.constant 0 : index
    %c0_13 = arith.constant 0 : index
    %c19 = arith.constant 19 : index
    %c0_14 = arith.constant 0 : index
    %8 = vector.load %arg2[%c0_12, %c0_13, %c19, %c0_14] : memref<1x1x328x32xbf16, #tpu.memory_space<vmem>>, vector<1x1x288x32xbf16>
    %9 = vector.shape_cast %8 : vector<1x1x288x32xbf16> to vector<288x32xbf16>
    %c0_15 = arith.constant 0 : index
    %c0_16 = arith.constant 0 : index
    %c20 = arith.constant 20 : index
    %c0_17 = arith.constant 0 : index
    %10 = vector.load %arg2[%c0_15, %c0_16, %c20, %c0_17] : memref<1x1x328x32xbf16, #tpu.memory_space<vmem>>, vector<1x1x288x32xbf16>
    %11 = vector.shape_cast %10 : vector<1x1x288x32xbf16> to vector<288x32xbf16>
    %c0_18 = arith.constant 0 : index
    %c0_19 = arith.constant 0 : index
    %c36 = arith.constant 36 : index
    %c0_20 = arith.constant 0 : index
    %12 = vector.load %arg2[%c0_18, %c0_19, %c36, %c0_20] : memref<1x1x328x32xbf16, #tpu.memory_space<vmem>>, vector<1x1x288x32xbf16>
    %13 = vector.shape_cast %12 : vector<1x1x288x32xbf16> to vector<288x32xbf16>
    %c0_21 = arith.constant 0 : index
    %c0_22 = arith.constant 0 : index
    %c37 = arith.constant 37 : index
    %c0_23 = arith.constant 0 : index
    %14 = vector.load %arg2[%c0_21, %c0_22, %c37, %c0_23] : memref<1x1x328x32xbf16, #tpu.memory_space<vmem>>, vector<1x1x288x32xbf16>
    %15 = vector.shape_cast %14 : vector<1x1x288x32xbf16> to vector<288x32xbf16>
    %c0_24 = arith.constant 0 : index
    %c0_25 = arith.constant 0 : index
    %c38 = arith.constant 38 : index
    %c0_26 = arith.constant 0 : index
    %16 = vector.load %arg2[%c0_24, %c0_25, %c38, %c0_26] : memref<1x1x328x32xbf16, #tpu.memory_space<vmem>>, vector<1x1x288x32xbf16>
    %17 = vector.shape_cast %16 : vector<1x1x288x32xbf16> to vector<288x32xbf16>
    %18 = tpu.concatenate %1, %3, %5, %7, %9, %11, %13, %15, %17 in 1 : vector<288x32xbf16>, vector<288x32xbf16>, vector<288x32xbf16>, vector<288x32xbf16>, vector<288x32xbf16>, vector<288x32xbf16>, vector<288x32xbf16>, vector<288x32xbf16>, vector<288x32xbf16> -> vector<288x288xbf16>
    %19 = arith.index_cast %arg1 : i32 to index
    %c0_27 = arith.constant 0 : index
    %c0_28 = arith.constant 0 : index
    %20 = vector.load %arg3[%19, %c0_27, %c0_28] : memref<1x288x32xbf16, #tpu.memory_space<vmem>>, vector<1x288x32xbf16>
    %21 = vector.shape_cast %20 : vector<1x288x32xbf16> to vector<288x32xbf16>
    %cst = arith.constant dense<0.000000e+00> : vector<288x32xf32>
    %22 = tpu.matmul %18, %21, %cst {dimension_numbers = #tpu.dot_dimension_numbers<[1], [0], [0], [1], [0, 0, 1, 1], [], []>} : vector<288x288xbf16>, vector<288x32xbf16>, vector<288x32xf32> -> vector<288x32xf32>
    %23 = arith.index_cast %arg1 : i32 to index
    %c0_29 = arith.constant 0 : index
    %c0_30 = arith.constant 0 : index
    %24 = vector.load %arg4[%23, %c0_29, %c0_30] : memref<1x1x32xf32, #tpu.memory_space<vmem>>, vector<1x1x32xf32>
    %25 = vector.shape_cast %24 : vector<1x1x32xf32> to vector<1x32xf32>
    %26 = vector.broadcast %25 : vector<1x32xf32> to vector<288x32xf32>
    %27 = arith.mulf %22, %26 : vector<288x32xf32>
    %28 = arith.index_cast %arg1 : i32 to index
    %c0_31 = arith.constant 0 : index
    %c0_32 = arith.constant 0 : index
    %29 = vector.load %arg5[%28, %c0_31, %c0_32] : memref<1x1x32xf32, #tpu.memory_space<vmem>>, vector<1x1x32xf32>
    %30 = vector.shape_cast %29 : vector<1x1x32xf32> to vector<1x32xf32>
    %31 = vector.broadcast %30 : vector<1x32xf32> to vector<288x32xf32>
    %32 = arith.addf %27, %31 : vector<288x32xf32>
    %cst_33 = arith.constant 0.000000e+00 : f32
    %33 = vector.broadcast %cst_33 : f32 to vector<288x32xf32>
    %34 = arith.maximumf %32, %33 : vector<288x32xf32>
    %35 = arith.truncf %34 : vector<288x32xf32> to vector<288x32xbf16>
    %36 = arith.index_cast %arg1 : i32 to index
    %c0_34 = arith.constant 0 : index
    %c0_35 = arith.constant 0 : index
    %37 = vector.load %arg6[%36, %c0_34, %c0_35] : memref<1x32x128xbf16, #tpu.memory_space<vmem>>, vector<1x32x128xbf16>
    %38 = vector.shape_cast %37 : vector<1x32x128xbf16> to vector<32x128xbf16>
    %cst_36 = arith.constant dense<0.000000e+00> : vector<288x128xf32>
    %39 = tpu.matmul %35, %38, %cst_36 {dimension_numbers = #tpu.dot_dimension_numbers<[1], [0], [0], [1], [0, 0, 1, 1], [], []>} : vector<288x32xbf16>, vector<32x128xbf16>, vector<288x128xf32> -> vector<288x128xf32>
    %c0_i32 = arith.constant 0 : i32
    %40 = arith.cmpi eq, %arg1, %c0_i32 : i32
    %41 = arith.extui %40 : i1 to i32
    %c0_i32_37 = arith.constant 0 : i32
    %42 = arith.cmpi ne, %41, %c0_i32_37 : i32
    scf.if %42 {
      %c0_42 = arith.constant 0 : index
      %c0_43 = arith.constant 0 : index
      %49 = vector.load %arg11[%c0_42, %c0_43] : memref<288x128xf32, #tpu.memory_space<vmem>>, vector<288x128xf32>
      tpu.vector_store %arg11[%c0_42, %c0_43], %39 {strides = array<i32>} : memref<288x128xf32, #tpu.memory_space<vmem>>, vector<288x128xf32>,
    } else {
    }
    %c0_i32_38 = arith.constant 0 : i32
    %43 = arith.cmpi sgt, %arg1, %c0_i32_38 : i32
    %44 = arith.extui %43 : i1 to i32
    %c0_i32_39 = arith.constant 0 : i32
    %45 = arith.cmpi ne, %44, %c0_i32_39 : i32
    scf.if %45 {
      %c0_42 = arith.constant 0 : index
      %c0_43 = arith.constant 0 : index
      %49 = vector.load %arg11[%c0_42, %c0_43] : memref<288x128xf32, #tpu.memory_space<vmem>>, vector<288x128xf32>
      %50 = arith.addf %49, %39 : vector<288x128xf32>
      %c0_44 = arith.constant 0 : index
      %c0_45 = arith.constant 0 : index
      %51 = vector.load %arg11[%c0_44, %c0_45] : memref<288x128xf32, #tpu.memory_space<vmem>>, vector<288x128xf32>
      tpu.vector_store %arg11[%c0_44, %c0_45], %50 {strides = array<i32>} : memref<288x128xf32, #tpu.memory_space<vmem>>, vector<288x128xf32>,
    } else {
    }
    %c0_i32_40 = arith.constant 0 : i32
    %46 = arith.cmpi eq, %arg1, %c0_i32_40 : i32
    %47 = arith.extui %46 : i1 to i32
    %c0_i32_41 = arith.constant 0 : i32
    %48 = arith.cmpi ne, %47, %c0_i32_41 : i32
    scf.if %48 {
      %c0_42 = arith.constant 0 : index
      %c0_43 = arith.constant 0 : index
      %49 = vector.load %arg11[%c0_42, %c0_43] : memref<288x128xf32, #tpu.memory_space<vmem>>, vector<288x128xf32>
      %c0_44 = arith.constant 0 : index
      %c0_45 = arith.constant 0 : index
      %50 = vector.load %arg7[%c0_44, %c0_45] : memref<1x128xf32, #tpu.memory_space<vmem>>, vector<1x128xf32>
      %51 = vector.broadcast %50 : vector<1x128xf32> to vector<288x128xf32>
      %52 = arith.mulf %49, %51 : vector<288x128xf32>
      %c0_46 = arith.constant 0 : index
      %c0_47 = arith.constant 0 : index
      %53 = vector.load %arg8[%c0_46, %c0_47] : memref<1x128xf32, #tpu.memory_space<vmem>>, vector<1x128xf32>
      %54 = vector.broadcast %53 : vector<1x128xf32> to vector<288x128xf32>
      %55 = arith.addf %52, %54 : vector<288x128xf32>
      %c0_48 = arith.constant 0 : index
      %c0_49 = arith.constant 0 : index
      %c0_50 = arith.constant 0 : index
      %56 = vector.load %arg9[%c0_48, %c0_49, %c0_50] : memref<1x288x128xbf16, #tpu.memory_space<vmem>>, vector<1x288x128xbf16>
      %57 = vector.shape_cast %56 : vector<1x288x128xbf16> to vector<288x128xbf16>
      %58 = arith.extf %57 : vector<288x128xbf16> to vector<288x128xf32>
      %59 = arith.addf %55, %58 : vector<288x128xf32>
      %cst_51 = arith.constant 0.000000e+00 : f32
      %60 = vector.broadcast %cst_51 : f32 to vector<288x128xf32>
      %61 = arith.maximumf %59, %60 : vector<288x128xf32>
      %62 = arith.truncf %61 : vector<288x128xf32> to vector<288x128xbf16>
      %c0_52 = arith.constant 0 : index
      %c0_53 = arith.constant 0 : index
      %c0_54 = arith.constant 0 : index
      %63 = vector.load %arg10[%c0_52, %c0_53, %c0_54] : memref<1x288x128xbf16, #tpu.memory_space<vmem>>, vector<1x288x128xbf16>
      %64 = vector.shape_cast %63 : vector<1x288x128xbf16> to vector<288x128xbf16>
      %65 = vector.shape_cast %62 : vector<288x128xbf16> to vector<1x288x128xbf16>
      tpu.vector_store %arg10[%c0_52, %c0_53, %c0_54], %65 {strides = array<i32>} : memref<1x288x128xbf16, #tpu.memory_space<vmem>>, vector<1x288x128xbf16>,
    } else {
    }
    return
  }
  func.func @transform_0(%arg0: i32, %arg1: i32) -> (i32, i32, i32, i32) {
    %c0_i32 = arith.constant 0 : i32
    %c0_i32_0 = arith.constant 0 : i32
    %c0_i32_1 = arith.constant 0 : i32
    return %arg0, %c0_i32, %c0_i32_0, %arg1 : i32, i32, i32, i32
  }
  func.func @transform_1(%arg0: i32, %arg1: i32) -> (i32, i32, i32) {
    %c0_i32 = arith.constant 0 : i32
    %c0_i32_0 = arith.constant 0 : i32
    %c0_i32_1 = arith.constant 0 : i32
    %c0_i32_2 = arith.constant 0 : i32
    return %c0_i32, %c0_i32_0, %c0_i32_1 : i32, i32, i32
  }
  func.func @transform_2(%arg0: i32, %arg1: i32) -> (i32, i32, i32) {
    %c0_i32 = arith.constant 0 : i32
    %c0_i32_0 = arith.constant 0 : i32
    %c0_i32_1 = arith.constant 0 : i32
    %c0_i32_2 = arith.constant 0 : i32
    return %c0_i32, %c0_i32_0, %c0_i32_1 : i32, i32, i32
  }
  func.func @transform_3(%arg0: i32, %arg1: i32) -> (i32, i32, i32) {
    %c0_i32 = arith.constant 0 : i32
    %c0_i32_0 = arith.constant 0 : i32
    %c0_i32_1 = arith.constant 0 : i32
    %c0_i32_2 = arith.constant 0 : i32
    return %c0_i32, %c0_i32_0, %c0_i32_1 : i32, i32, i32
  }
  func.func @transform_4(%arg0: i32, %arg1: i32) -> (i32, i32, i32) {
    %c0_i32 = arith.constant 0 : i32
    %c0_i32_0 = arith.constant 0 : i32
    %c0_i32_1 = arith.constant 0 : i32
    %c0_i32_2 = arith.constant 0 : i32
    return %c0_i32, %c0_i32_0, %c0_i32_1 : i32, i32, i32
  }
  func.func @transform_5(%arg0: i32, %arg1: i32) -> (i32, i32) {
    %c0_i32 = arith.constant 0 : i32
    %c0_i32_0 = arith.constant 0 : i32
    %c0_i32_1 = arith.constant 0 : i32
    return %c0_i32, %c0_i32_0 : i32, i32
  }
  func.func @transform_6(%arg0: i32, %arg1: i32) -> (i32, i32) {
    %c0_i32 = arith.constant 0 : i32
    %c0_i32_0 = arith.constant 0 : i32
    %c0_i32_1 = arith.constant 0 : i32
    return %c0_i32, %c0_i32_0 : i32, i32
  }
  func.func @transform_7(%arg0: i32, %arg1: i32) -> (i32, i32, i32) {
    %c0_i32 = arith.constant 0 : i32
    %c0_i32_0 = arith.constant 0 : i32
    %c0_i32_1 = arith.constant 0 : i32
    return %arg0, %c0_i32, %c0_i32_0 : i32, i32, i32
  }
  func.func @transform_8(%arg0: i32, %arg1: i32) -> (i32, i32, i32) {
    %c0_i32 = arith.constant 0 : i32
    %c0_i32_0 = arith.constant 0 : i32
    %c0_i32_1 = arith.constant 0 : i32
    return %arg0, %c0_i32, %c0_i32_0 : i32, i32, i32
  }
}

</mosaic_0001>

<bundles_post_ra>
// kernel: block_forward.2
= control target key start
LH: loop header
LB: loop body
LE: loop exit
PB: predicated region body
PF: predicated region fallthrough
CT: control target
= control target key end

     0   :  { %vm274_vm0 = vcmask 523264   ;;  %vm1122_vm1 = vcmask 257024   ;;  %s2100_s1 = inlined_call_operand.vmem [shape: bf16[64,32], index: 1, kind: input, shape index: {}]   ;;  %s2101_s0 = inlined_call_operand.vmem [shape: bf16[512,64], index: 0, kind: input, shape index: {}]   ;;  %s2102_s2 = inlined_call_operand.vmem [shape: f32[1,32], index: 2, kind: input, shape index: {}]   ;;  %s2103_s3 = inlined_call_operand.vmem [shape: f32[1,32], index: 3, kind: input, shape index: {}]   ;;  %s2104_s4 = inlined_call_operand.vmem [shape: bf16[512,32], index: 4, kind: output, shape index: {}]  }
   0x1   :  { %v1505_v0 = vld [vmem:[%s2100_s1] sm:$0xff]   ;;  %v1506_v1 = vld [vmem:[%s2100_s1 + $0x8] sm:$0xff]   ;;  %v1507_v2 = vld [vmem:[%s2100_s1 + $0x10] sm:$0xff]  }
   0x2   :  { %1425 = vmatprep.subr.bf16.mxu0 %v1505_v0  ;;  %1497 = vmatprep.subr.bf16.mxu1 %v1505_v0  ;;  %v1509_v3 = vld [vmem:[%s2101_s0] sm:$0xff]   ;;  %v1508_v5 = vld [vmem:[%s2100_s1 + $0x18] sm:$0xff]   ;;  %v1511_v6 = vld [vmem:[%s2101_s0 + $0x8] sm:$0xff]  }
   0x3   :  { %1426 = vmatpush3.bf16.msra.mxu0 %v1505_v0  ;;  %1501 = vmatpush3.bf16.msra.mxu1 %v1505_v0  ;;  %v1510_v4 = vld [vmem:[%s2101_s0 + $0x80] sm:$0xff]   ;;  %v1512_v7 = vld [vmem:[%s2101_s0 + $0x88] sm:$0xff]   ;;  %v1513_v8 = vld [vmem:[%s2101_s0 + $0x10] sm:$0xff]  }
   0x4   :  { %1427 = vmatprep.subr.bf16.mxu0 %v1506_v1  ;;  %1498 = vmatprep.subr.bf16.mxu1 %v1506_v1  ;;  %v1514_v9 = vld [vmem:[%s2101_s0 + $0x90] sm:$0xff]   ;;  %v1515_v10 = vld [vmem:[%s2101_s0 + $0x18] sm:$0xff]   ;;  %v1517_v12 = vld [vmem:[%s2101_s0 + $0x20] sm:$0xff]  }
   0x5   :  { %1433 = vmatprep.mubr.msk.bf16.mxu0 %vm274_vm0, %v1509_v3  ;;  %1465 = vmatprep.mubr.msk.bf16.mxu1 %vm274_vm0, %v1510_v4  ;;  %v1516_v11 = vld [vmem:[%s2101_s0 + $0x98] sm:$0xff]   ;;  %v1518_v13 = vld [vmem:[%s2101_s0 + $0xa0] sm:$0xff]   ;;  %v1519_v14 = vld [vmem:[%s2101_s0 + $0x28] sm:$0xff]  }
   0x6   :  { %v1520_v15 = vld [vmem:[%s2101_s0 + $0xa8] sm:$0xff]   ;;  %v1521_v16 = vld [vmem:[%s2101_s0 + $0x30] sm:$0xff]   ;;  %v1523_v18 = vld [vmem:[%s2101_s0 + $0x38] sm:$0xff]  }
   0x7   :  { %1428 = vmatpush3.bf16.msra.mxu0 %v1506_v1  ;;  %1502 = vmatpush3.bf16.msra.mxu1 %v1506_v1  ;;  %v1522_v17 = vld [vmem:[%s2101_s0 + $0xb0] sm:$0xff]   ;;  %v1524_v19 = vld [vmem:[%s2101_s0 + $0xb8] sm:$0xff]   ;;  %v1525_v20 = vld [vmem:[%s2101_s0 + $0x40] sm:$0xff]  }
   0x8   :  { %1429 = vmatprep.subr.bf16.mxu0 %v1507_v2  ;;  %1499 = vmatprep.subr.bf16.mxu1 %v1507_v2  ;;  %v1526_v21 = vld [vmem:[%s2101_s0 + $0xc0] sm:$0xff]   ;;  %v1527_v22 = vld [vmem:[%s2101_s0 + $0x48] sm:$0xff]   ;;  %v1529_v24 = vld [vmem:[%s2101_s0 + $0x50] sm:$0xff]  }
   0x9   :  { %v1528_v23 = vld [vmem:[%s2101_s0 + $0xc8] sm:$0xff]   ;;  %v1530_v25 = vld [vmem:[%s2101_s0 + $0xd0] sm:$0xff]   ;;  %v1531_v26 = vld [vmem:[%s2101_s0 + $0x58] sm:$0xff]  }
   0xa   :  { %v1532_v27 = vld [vmem:[%s2101_s0 + $0xd8] sm:$0xff]   ;;  %v1533_v28 = vld [vmem:[%s2101_s0 + $0x60] sm:$0xff]   ;;  %v1535_v30 = vld [vmem:[%s2101_s0 + $0x68] sm:$0xff]  }
   0xb   :  { %1430 = vmatpush3.bf16.msra.mxu0 %v1507_v2  ;;  %1503 = vmatpush3.bf16.msra.mxu1 %v1507_v2  ;;  %v1534_v29 = vld [vmem:[%s2101_s0 + $0xe0] sm:$0xff]   ;;  %v1536_v31 = vld [vmem:[%s2101_s0 + $0xe8] sm:$0xff]   ;;  %v1537_v32 = vld [vmem:[%s2101_s0 + $0x70] sm:$0xff]  }
   0xc   :  { %1431 = vmatprep.subr.bf16.mxu0 %v1508_v5  ;;  %1500 = vmatprep.subr.bf16.mxu1 %v1508_v5  ;;  %v1538_v33 = vld [vmem:[%s2101_s0 + $0xf0] sm:$0xff]   ;;  %v1539_v34 = vld [vmem:[%s2101_s0 + $0x78] sm:$0xff]   ;;  %v1709_v36 = vld [vmem:[%s2102_s2] ss:$0 sm:$0xff] }
   0xd   :  { %v1540_v35 = vld [vmem:[%s2101_s0 + $0xf8] sm:$0xff]   ;;  %v1714_v38 = vld [vmem:[%s2103_s3] ss:$0 sm:$0xff] }
   0xf   :  { %1432 = vmatpush3.bf16.msra.mxu0 %v1508_v5  ;;  %1504 = vmatpush3.bf16.msra.mxu1 %v1508_v5 }
  0x12   :  { %1434 = vmatmul.mubr.msk.bf16.vlgmr.msra.gmra.mrb[0].mxu0 %vm274_vm0, %v1511_v6  ;;  %1466 = vmatmul.mubr.msk.bf16.vlgmr.msra.gmra.mrb[0].mxu1 %vm274_vm0, %v1512_v7 }
  0x13   :  { %1437 = vmatprep.mubr.msk.bf16.mxu0 %vm274_vm0, %v1513_v8  ;;  %1469 = vmatprep.mubr.msk.bf16.mxu1 %vm274_vm0, %v1514_v9 }
  0x1a   :  { %1438 = vmatmul.mubr.msk.bf16.gmra.mrb[4].mxu0 %vm274_vm0, %v1515_v10  ;;  %1470 = vmatmul.mubr.msk.bf16.gmra.mrb[4].mxu1 %vm274_vm0, %v1516_v11 }
  0x1b   :  { %1441 = vmatprep.mubr.msk.bf16.mxu0 %vm274_vm0, %v1517_v12  ;;  %1473 = vmatprep.mubr.msk.bf16.mxu1 %vm274_vm0, %v1518_v13 }
  0x22   :  { %1442 = vmatmul.mubr.msk.bf16.gmra.mrb[8].mxu0 %vm274_vm0, %v1519_v14  ;;  %1474 = vmatmul.mubr.msk.bf16.gmra.mrb[8].mxu1 %vm274_vm0, %v1520_v15 }
  0x23   :  { %1445 = vmatprep.mubr.msk.bf16.mxu0 %vm274_vm0, %v1521_v16  ;;  %1477 = vmatprep.mubr.msk.bf16.mxu1 %vm274_vm0, %v1522_v17 }
  0x2a   :  { %1446 = vmatmul.mubr.msk.bf16.gmra.mrb[12].mxu0 %vm274_vm0, %v1523_v18  ;;  %1478 = vmatmul.mubr.msk.bf16.gmra.mrb[12].mxu1 %vm274_vm0, %v1524_v19 }
  0x2b   :  { %1449 = vmatprep.mubr.msk.bf16.mxu0 %vm274_vm0, %v1525_v20  ;;  %1481 = vmatprep.mubr.msk.bf16.mxu1 %vm274_vm0, %v1526_v21 }
  0x32   :  { %1450 = vmatmul.mubr.msk.bf16.gmra.mrb[16].mxu0 %vm274_vm0, %v1527_v22  ;;  %1482 = vmatmul.mubr.msk.bf16.gmra.mrb[16].mxu1 %vm274_vm0, %v1528_v23 }
  0x33   :  { %1453 = vmatprep.mubr.msk.bf16.mxu0 %vm274_vm0, %v1529_v24  ;;  %1485 = vmatprep.mubr.msk.bf16.mxu1 %vm274_vm0, %v1530_v25 }
  0x3a   :  { %1454 = vmatmul.mubr.msk.bf16.gmra.mrb[20].mxu0 %vm274_vm0, %v1531_v26  ;;  %1486 = vmatmul.mubr.msk.bf16.gmra.mrb[20].mxu1 %vm274_vm0, %v1532_v27 }
  0x3b   :  { %1457 = vmatprep.mubr.msk.bf16.mxu0 %vm274_vm0, %v1533_v28  ;;  %1489 = vmatprep.mubr.msk.bf16.mxu1 %vm274_vm0, %v1534_v29 }
  0x42   :  { %1458 = vmatmul.mubr.msk.bf16.gmra.mrb[24].mxu0 %vm274_vm0, %v1535_v30  ;;  %1490 = vmatmul.mubr.msk.bf16.gmra.mrb[24].mxu1 %vm274_vm0, %v1536_v31 }
  0x43   :  { %1461 = vmatprep.mubr.msk.bf16.mxu0 %vm274_vm0, %v1537_v32  ;;  %1493 = vmatprep.mubr.msk.bf16.mxu1 %vm274_vm0, %v1538_v33 }
  0x4a   :  { %1462 = vmatmul.mubr.msk.bf16.gmra.mrb[28].mxu0 %vm274_vm0, %v1539_v34  ;;  %1494 = vmatmul.mubr.msk.bf16.gmra.mrb[28].mxu1 %vm274_vm0, %v1540_v35 }
  0xe5   :  { %v1435_v37 = vpop.f32.mrb[0].mxu0  ;;  %v1467_v39 = vpop.f32.mrb[0].mxu1 }
  0xe6   :  { %v669_v40 = vmul.f32 %v1435_v37, %v1709_v36  ;;  %v701_v41 = vmul.f32 %v1467_v39, %v1709_v36  ;;  %v405_v42 = vpop.f32.mrb[1].mxu0  ;;  %v533_v43 = vpop.f32.mrb[1].mxu1 }
  0xe7   :  { %v667_v44 = vmul.f32 %v1709_v36, %v405_v42  ;;  %v699_v45 = vmul.f32 %v1709_v36, %v533_v43  ;;  %v1436_v46 = vpop.f32.mrb[2].mxu0  ;;  %v1468_v47 = vpop.f32.mrb[2].mxu1 }
  0xe8   :  { %v740_v48 = vadd.f32 %v1714_v38, %v669_v40  ;;  %v772_v49 = vadd.f32 %v1714_v38, %v701_v41  ;;  %v670_v50 = vmul.f32 %v1436_v46, %v1709_v36  ;;  %v702_v51 = vmul.f32 %v1468_v47, %v1709_v36  ;;  %v408_v52 = vpop.f32.mrb[3].mxu0  ;;  %v536_v53 = vpop.f32.mrb[3].mxu1 }
  0xe9   :  { %v738_v54 = vadd.f32 %v1714_v38, %v667_v44  ;;  %v770_v55 = vadd.f32 %v1714_v38, %v699_v45  ;;  %v668_v56 = vmul.f32 %v1709_v36, %v408_v52  ;;  %v700_v57 = vmul.f32 %v1709_v36, %v536_v53 }
  0xea   :  { %v804_v58 = vmax.f32 %v740_v48, 0.0  ;;  %v836_v59 = vmax.f32 %v772_v49, 0.0  ;;  %v741_v60 = vadd.f32 %v1714_v38, %v670_v50  ;;  %v773_v61 = vadd.f32 %v1714_v38, %v702_v51 }
  0xeb   :  { %v802_v62 = vmax.f32 %v738_v54, 0.0  ;;  %v834_v63 = vmax.f32 %v770_v55, 0.0  ;;  %v739_v0 = vadd.f32 %v1714_v38, %v668_v56  ;;  %v771_v1 = vadd.f32 %v1714_v38, %v700_v57 }
  0xec   :  { %v1327_v2 = vpack.c.bf16 %v804_v58, %v804_v58  ;;  %v1359_v3 = vpack.c.bf16 %v836_v59, %v836_v59  ;;  %v805_v4 = vmax.f32 %v741_v60, 0.0  ;;  %v837_v5 = vmax.f32 %v773_v61, 0.0 }
  0xed   :  { %v1325_v6 = vpack.c.bf16 %v802_v62, %v802_v62  ;;  %v1357_v7 = vpack.c.bf16 %v834_v63, %v834_v63  ;;  %v803_v8 = vmax.f32 %v739_v0, 0.0  ;;  %v835_v9 = vmax.f32 %v771_v1, 0.0  ;;  %v1439_v10 = vpop.f32.mrb[4].mxu0  ;;  %v1471_v11 = vpop.f32.mrb[4].mxu1 }
  0xee   :  { %1125 = vst.msk [vmem:[%s2104_s4 + $0x8] sm:$0xf] %vm1122_vm1, %v1327_v2  ;;  %1157 = vst.msk [vmem:[%s2104_s4 + $0x88] sm:$0xf] %vm1122_vm1, %v1359_v3  ;;  %v1328_v12 = vpack.c.bf16 %v805_v4, %v805_v4  ;;  %v1360_v13 = vpack.c.bf16 %v837_v5, %v837_v5  ;;  %v673_v14 = vmul.f32 %v1439_v10, %v1709_v36  ;;  %v421_v16 = vpop.f32.mrb[5].mxu0  ;;  %v549_v17 = vpop.f32.mrb[5].mxu1 }
  0xef   :  { %v705_v15 = vmul.f32 %v1471_v11, %v1709_v36  ;;  %1123 = vst.msk [vmem:[%s2104_s4] sm:$0xf] %vm1122_vm1, %v1325_v6  ;;  %1155 = vst.msk [vmem:[%s2104_s4 + $0x80] sm:$0xf] %vm1122_vm1, %v1357_v7  ;;  %v1326_v18 = vpack.c.bf16 %v803_v8, %v803_v8  ;;  %v1358_v19 = vpack.c.bf16 %v835_v9, %v835_v9  ;;  %v1440_v22 = vpop.f32.mrb[6].mxu0  ;;  %v1472_v23 = vpop.f32.mrb[6].mxu1 }
  0xf0   :  { %v671_v20 = vmul.f32 %v1709_v36, %v421_v16  ;;  %v703_v21 = vmul.f32 %v1709_v36, %v549_v17  ;;  %1126 = vst.msk [vmem:[%s2104_s4 + $0xc] sm:$0xf] %vm1122_vm1, %v1328_v12  ;;  %1158 = vst.msk [vmem:[%s2104_s4 + $0x8c] sm:$0xf] %vm1122_vm1, %v1360_v13  ;;  %v744_v24 = vadd.f32 %v1714_v38, %v673_v14  ;;  %v424_v28 = vpop.f32.mrb[7].mxu0  ;;  %v552_v29 = vpop.f32.mrb[7].mxu1 }
  0xf1   :  { %v776_v25 = vadd.f32 %v1714_v38, %v705_v15  ;;  %v674_v26 = vmul.f32 %v1440_v22, %v1709_v36  ;;  %v706_v27 = vmul.f32 %v1472_v23, %v1709_v36  ;;  %1124 = vst.msk [vmem:[%s2104_s4 + $0x4] sm:$0xf] %vm1122_vm1, %v1326_v18  ;;  %1156 = vst.msk [vmem:[%s2104_s4 + $0x84] sm:$0xf] %vm1122_vm1, %v1358_v19 }
  0xf2   :  { %v742_v30 = vadd.f32 %v1714_v38, %v671_v20  ;;  %v774_v31 = vadd.f32 %v1714_v38, %v703_v21  ;;  %v672_v32 = vmul.f32 %v1709_v36, %v424_v28  ;;  %v704_v33 = vmul.f32 %v1709_v36, %v552_v29 }
  0xf3   :  { %v808_v34 = vmax.f32 %v744_v24, 0.0  ;;  %v840_v35 = vmax.f32 %v776_v25, 0.0  ;;  %v745_v37 = vadd.f32 %v1714_v38, %v674_v26  ;;  %v777_v39 = vadd.f32 %v1714_v38, %v706_v27 }
  0xf4   :  { %v806_v40 = vmax.f32 %v742_v30, 0.0  ;;  %v838_v41 = vmax.f32 %v774_v31, 0.0  ;;  %v743_v42 = vadd.f32 %v1714_v38, %v672_v32  ;;  %v775_v43 = vadd.f32 %v1714_v38, %v704_v33 }
  0xf5   :  { %v1331_v44 = vpack.c.bf16 %v808_v34, %v808_v34  ;;  %v1363_v45 = vpack.c.bf16 %v840_v35, %v840_v35  ;;  %v809_v46 = vmax.f32 %v745_v37, 0.0  ;;  %v841_v47 = vmax.f32 %v777_v39, 0.0  ;;  %v1443_v52 = vpop.f32.mrb[8].mxu0  ;;  %v1475_v53 = vpop.f32.mrb[8].mxu1 }
  0xf6   :  { %v1329_v48 = vpack.c.bf16 %v806_v40, %v806_v40  ;;  %v1361_v49 = vpack.c.bf16 %v838_v41, %v838_v41  ;;  %v807_v50 = vmax.f32 %v743_v42, 0.0  ;;  %v839_v51 = vmax.f32 %v775_v43, 0.0  ;;  %v437_v58 = vpop.f32.mrb[9].mxu0  ;;  %v565_v59 = vpop.f32.mrb[9].mxu1 }
  0xf7   :  { %1129 = vst.msk [vmem:[%s2104_s4 + $0x18] sm:$0xf] %vm1122_vm1, %v1331_v44  ;;  %1161 = vst.msk [vmem:[%s2104_s4 + $0x98] sm:$0xf] %vm1122_vm1, %v1363_v45  ;;  %v1332_v54 = vpack.c.bf16 %v809_v46, %v809_v46  ;;  %v1364_v55 = vpack.c.bf16 %v841_v47, %v841_v47  ;;  %v677_v56 = vmul.f32 %v1443_v52, %v1709_v36  ;;  %v1444_v0 = vpop.f32.mrb[10].mxu0  ;;  %v1476_v1 = vpop.f32.mrb[10].mxu1 }
  0xf8   :  { %v709_v57 = vmul.f32 %v1475_v53, %v1709_v36  ;;  %1127 = vst.msk [vmem:[%s2104_s4 + $0x10] sm:$0xf] %vm1122_vm1, %v1329_v48  ;;  %1159 = vst.msk [vmem:[%s2104_s4 + $0x90] sm:$0xf] %vm1122_vm1, %v1361_v49  ;;  %v1330_v60 = vpack.c.bf16 %v807_v50, %v807_v50  ;;  %v1362_v61 = vpack.c.bf16 %v839_v51, %v839_v51  ;;  %v440_v6 = vpop.f32.mrb[11].mxu0  ;;  %v568_v7 = vpop.f32.mrb[11].mxu1 }
  0xf9   :  { %v675_v62 = vmul.f32 %v1709_v36, %v437_v58  ;;  %v707_v63 = vmul.f32 %v1709_v36, %v565_v59  ;;  %1130 = vst.msk [vmem:[%s2104_s4 + $0x1c] sm:$0xf] %vm1122_vm1, %v1332_v54  ;;  %1162 = vst.msk [vmem:[%s2104_s4 + $0x9c] sm:$0xf] %vm1122_vm1, %v1364_v55  ;;  %v748_v2 = vadd.f32 %v1714_v38, %v677_v56 }
  0xfa   :  { %v780_v3 = vadd.f32 %v1714_v38, %v709_v57  ;;  %v678_v4 = vmul.f32 %v1444_v0, %v1709_v36  ;;  %v710_v5 = vmul.f32 %v1476_v1, %v1709_v36  ;;  %1128 = vst.msk [vmem:[%s2104_s4 + $0x14] sm:$0xf] %vm1122_vm1, %v1330_v60  ;;  %1160 = vst.msk [vmem:[%s2104_s4 + $0x94] sm:$0xf] %vm1122_vm1, %v1362_v61 }
  0xfb   :  { %v746_v8 = vadd.f32 %v1714_v38, %v675_v62  ;;  %v778_v9 = vadd.f32 %v1714_v38, %v707_v63  ;;  %v676_v10 = vmul.f32 %v1709_v36, %v440_v6  ;;  %v708_v11 = vmul.f32 %v1709_v36, %v568_v7 }
  0xfc   :  { %v812_v12 = vmax.f32 %v748_v2, 0.0  ;;  %v844_v13 = vmax.f32 %v780_v3, 0.0  ;;  %v749_v14 = vadd.f32 %v1714_v38, %v678_v4  ;;  %v781_v15 = vadd.f32 %v1714_v38, %v710_v5 }
  0xfd   :  { %v810_v16 = vmax.f32 %v746_v8, 0.0  ;;  %v842_v17 = vmax.f32 %v778_v9, 0.0  ;;  %v747_v18 = vadd.f32 %v1714_v38, %v676_v10  ;;  %v779_v19 = vadd.f32 %v1714_v38, %v708_v11  ;;  %v1447_v28 = vpop.f32.mrb[12].mxu0  ;;  %v1479_v29 = vpop.f32.mrb[12].mxu1 }
  0xfe   :  { %v1335_v20 = vpack.c.bf16 %v812_v12, %v812_v12  ;;  %v1367_v21 = vpack.c.bf16 %v844_v13, %v844_v13  ;;  %v813_v22 = vmax.f32 %v749_v14, 0.0  ;;  %v845_v23 = vmax.f32 %v781_v15, 0.0  ;;  %v453_v34 = vpop.f32.mrb[13].mxu0  ;;  %v581_v35 = vpop.f32.mrb[13].mxu1 }
  0xff   :  { %v1333_v24 = vpack.c.bf16 %v810_v16, %v810_v16  ;;  %v1365_v25 = vpack.c.bf16 %v842_v17, %v842_v17  ;;  %v811_v26 = vmax.f32 %v747_v18, 0.0  ;;  %v843_v27 = vmax.f32 %v779_v19, 0.0  ;;  %v1448_v42 = vpop.f32.mrb[14].mxu0  ;;  %v1480_v43 = vpop.f32.mrb[14].mxu1 }
 0x100   :  { %1133 = vst.msk [vmem:[%s2104_s4 + $0x28] sm:$0xf] %vm1122_vm1, %v1335_v20  ;;  %1165 = vst.msk [vmem:[%s2104_s4 + $0xa8] sm:$0xf] %vm1122_vm1, %v1367_v21  ;;  %v1336_v30 = vpack.c.bf16 %v813_v22, %v813_v22  ;;  %v1368_v31 = vpack.c.bf16 %v845_v23, %v845_v23  ;;  %v681_v32 = vmul.f32 %v1447_v28, %v1709_v36  ;;  %v456_v48 = vpop.f32.mrb[15].mxu0  ;;  %v584_v49 = vpop.f32.mrb[15].mxu1 }
 0x101   :  { %v713_v33 = vmul.f32 %v1479_v29, %v1709_v36  ;;  %1131 = vst.msk [vmem:[%s2104_s4 + $0x20] sm:$0xf] %vm1122_vm1, %v1333_v24  ;;  %1163 = vst.msk [vmem:[%s2104_s4 + $0xa0] sm:$0xf] %vm1122_vm1, %v1365_v25  ;;  %v1334_v37 = vpack.c.bf16 %v811_v26, %v811_v26  ;;  %v1366_v39 = vpack.c.bf16 %v843_v27, %v843_v27 }
 0x102   :  { %v679_v40 = vmul.f32 %v1709_v36, %v453_v34  ;;  %v711_v41 = vmul.f32 %v1709_v36, %v581_v35  ;;  %1134 = vst.msk [vmem:[%s2104_s4 + $0x2c] sm:$0xf] %vm1122_vm1, %v1336_v30  ;;  %1166 = vst.msk [vmem:[%s2104_s4 + $0xac] sm:$0xf] %vm1122_vm1, %v1368_v31  ;;  %v752_v44 = vadd.f32 %v1714_v38, %v681_v32 }
 0x103   :  { %v784_v45 = vadd.f32 %v1714_v38, %v713_v33  ;;  %v682_v46 = vmul.f32 %v1448_v42, %v1709_v36  ;;  %v714_v47 = vmul.f32 %v1480_v43, %v1709_v36  ;;  %1132 = vst.msk [vmem:[%s2104_s4 + $0x24] sm:$0xf] %vm1122_vm1, %v1334_v37  ;;  %1164 = vst.msk [vmem:[%s2104_s4 + $0xa4] sm:$0xf] %vm1122_vm1, %v1366_v39 }
 0x104   :  { %v750_v50 = vadd.f32 %v1714_v38, %v679_v40  ;;  %v782_v51 = vadd.f32 %v1714_v38, %v711_v41  ;;  %v680_v52 = vmul.f32 %v1709_v36, %v456_v48  ;;  %v712_v53 = vmul.f32 %v1709_v36, %v584_v49 }
 0x105   :  { %v816_v54 = vmax.f32 %v752_v44, 0.0  ;;  %v848_v55 = vmax.f32 %v784_v45, 0.0  ;;  %v753_v56 = vadd.f32 %v1714_v38, %v682_v46  ;;  %v785_v57 = vadd.f32 %v1714_v38, %v714_v47  ;;  %v1451_v6 = vpop.f32.mrb[16].mxu0  ;;  %v1483_v7 = vpop.f32.mrb[16].mxu1 }
 0x106   :  { %v814_v58 = vmax.f32 %v750_v50, 0.0  ;;  %v846_v59 = vmax.f32 %v782_v51, 0.0  ;;  %v751_v60 = vadd.f32 %v1714_v38, %v680_v52  ;;  %v783_v61 = vadd.f32 %v1714_v38, %v712_v53  ;;  %v469_v12 = vpop.f32.mrb[17].mxu0  ;;  %v597_v13 = vpop.f32.mrb[17].mxu1 }
 0x107   :  { %v1339_v62 = vpack.c.bf16 %v816_v54, %v816_v54  ;;  %v1371_v63 = vpack.c.bf16 %v848_v55, %v848_v55  ;;  %v817_v0 = vmax.f32 %v753_v56, 0.0  ;;  %v849_v1 = vmax.f32 %v785_v57, 0.0  ;;  %v1452_v18 = vpop.f32.mrb[18].mxu0  ;;  %v1484_v19 = vpop.f32.mrb[18].mxu1 }
 0x108   :  { %v1337_v2 = vpack.c.bf16 %v814_v58, %v814_v58  ;;  %v1369_v3 = vpack.c.bf16 %v846_v59, %v846_v59  ;;  %v815_v4 = vmax.f32 %v751_v60, 0.0  ;;  %v847_v5 = vmax.f32 %v783_v61, 0.0  ;;  %v472_v24 = vpop.f32.mrb[19].mxu0  ;;  %v600_v25 = vpop.f32.mrb[19].mxu1 }
 0x109   :  { %1137 = vst.msk [vmem:[%s2104_s4 + $0x38] sm:$0xf] %vm1122_vm1, %v1339_v62  ;;  %1169 = vst.msk [vmem:[%s2104_s4 + $0xb8] sm:$0xf] %vm1122_vm1, %v1371_v63  ;;  %v1340_v8 = vpack.c.bf16 %v817_v0, %v817_v0  ;;  %v1372_v9 = vpack.c.bf16 %v849_v1, %v849_v1  ;;  %v685_v10 = vmul.f32 %v1451_v6, %v1709_v36 }
 0x10a   :  { %v717_v11 = vmul.f32 %v1483_v7, %v1709_v36  ;;  %1135 = vst.msk [vmem:[%s2104_s4 + $0x30] sm:$0xf] %vm1122_vm1, %v1337_v2  ;;  %1167 = vst.msk [vmem:[%s2104_s4 + $0xb0] sm:$0xf] %vm1122_vm1, %v1369_v3  ;;  %v1338_v14 = vpack.c.bf16 %v815_v4, %v815_v4  ;;  %v1370_v15 = vpack.c.bf16 %v847_v5, %v847_v5 }
 0x10b   :  { %v683_v16 = vmul.f32 %v1709_v36, %v469_v12  ;;  %v715_v17 = vmul.f32 %v1709_v36, %v597_v13  ;;  %1138 = vst.msk [vmem:[%s2104_s4 + $0x3c] sm:$0xf] %vm1122_vm1, %v1340_v8  ;;  %1170 = vst.msk [vmem:[%s2104_s4 + $0xbc] sm:$0xf] %vm1122_vm1, %v1372_v9  ;;  %v756_v20 = vadd.f32 %v1714_v38, %v685_v10 }
 0x10c   :  { %v788_v21 = vadd.f32 %v1714_v38, %v717_v11  ;;  %v686_v22 = vmul.f32 %v1452_v18, %v1709_v36  ;;  %v718_v23 = vmul.f32 %v1484_v19, %v1709_v36  ;;  %1136 = vst.msk [vmem:[%s2104_s4 + $0x34] sm:$0xf] %vm1122_vm1, %v1338_v14  ;;  %1168 = vst.msk [vmem:[%s2104_s4 + $0xb4] sm:$0xf] %vm1122_vm1, %v1370_v15 }
 0x10d   :  { %v754_v26 = vadd.f32 %v1714_v38, %v683_v16  ;;  %v786_v27 = vadd.f32 %v1714_v38, %v715_v17  ;;  %v684_v28 = vmul.f32 %v1709_v36, %v472_v24  ;;  %v716_v29 = vmul.f32 %v1709_v36, %v600_v25  ;;  %v1455_v48 = vpop.f32.mrb[20].mxu0  ;;  %v1487_v49 = vpop.f32.mrb[20].mxu1 }
 0x10e   :  { %v820_v30 = vmax.f32 %v756_v20, 0.0  ;;  %v852_v31 = vmax.f32 %v788_v21, 0.0  ;;  %v757_v32 = vadd.f32 %v1714_v38, %v686_v22  ;;  %v789_v33 = vadd.f32 %v1714_v38, %v718_v23  ;;  %v485_v54 = vpop.f32.mrb[21].mxu0  ;;  %v613_v55 = vpop.f32.mrb[21].mxu1 }
 0x10f   :  { %v818_v34 = vmax.f32 %v754_v26, 0.0  ;;  %v850_v35 = vmax.f32 %v786_v27, 0.0  ;;  %v755_v37 = vadd.f32 %v1714_v38, %v684_v28  ;;  %v787_v39 = vadd.f32 %v1714_v38, %v716_v29  ;;  %v1456_v60 = vpop.f32.mrb[22].mxu0  ;;  %v1488_v61 = vpop.f32.mrb[22].mxu1 }
 0x110   :  { %v1343_v40 = vpack.c.bf16 %v820_v30, %v820_v30  ;;  %v1375_v41 = vpack.c.bf16 %v852_v31, %v852_v31  ;;  %v821_v42 = vmax.f32 %v757_v32, 0.0  ;;  %v853_v43 = vmax.f32 %v789_v33, 0.0  ;;  %v488_v2 = vpop.f32.mrb[23].mxu0  ;;  %v616_v3 = vpop.f32.mrb[23].mxu1 }
 0x111   :  { %v1341_v44 = vpack.c.bf16 %v818_v34, %v818_v34  ;;  %v1373_v45 = vpack.c.bf16 %v850_v35, %v850_v35  ;;  %v819_v46 = vmax.f32 %v755_v37, 0.0  ;;  %v851_v47 = vmax.f32 %v787_v39, 0.0 }
 0x112   :  { %1141 = vst.msk [vmem:[%s2104_s4 + $0x48] sm:$0xf] %vm1122_vm1, %v1343_v40  ;;  %1173 = vst.msk [vmem:[%s2104_s4 + $0xc8] sm:$0xf] %vm1122_vm1, %v1375_v41  ;;  %v1344_v50 = vpack.c.bf16 %v821_v42, %v821_v42  ;;  %v1376_v51 = vpack.c.bf16 %v853_v43, %v853_v43  ;;  %v689_v52 = vmul.f32 %v1455_v48, %v1709_v36 }
 0x113   :  { %v721_v53 = vmul.f32 %v1487_v49, %v1709_v36  ;;  %1139 = vst.msk [vmem:[%s2104_s4 + $0x40] sm:$0xf] %vm1122_vm1, %v1341_v44  ;;  %1171 = vst.msk [vmem:[%s2104_s4 + $0xc0] sm:$0xf] %vm1122_vm1, %v1373_v45  ;;  %v1342_v56 = vpack.c.bf16 %v819_v46, %v819_v46  ;;  %v1374_v57 = vpack.c.bf16 %v851_v47, %v851_v47 }
 0x114   :  { %v687_v58 = vmul.f32 %v1709_v36, %v485_v54  ;;  %v719_v59 = vmul.f32 %v1709_v36, %v613_v55  ;;  %1142 = vst.msk [vmem:[%s2104_s4 + $0x4c] sm:$0xf] %vm1122_vm1, %v1344_v50  ;;  %1174 = vst.msk [vmem:[%s2104_s4 + $0xcc] sm:$0xf] %vm1122_vm1, %v1376_v51  ;;  %v760_v62 = vadd.f32 %v1714_v38, %v689_v52 }
 0x115   :  { %v792_v63 = vadd.f32 %v1714_v38, %v721_v53  ;;  %v690_v0 = vmul.f32 %v1456_v60, %v1709_v36  ;;  %v722_v1 = vmul.f32 %v1488_v61, %v1709_v36  ;;  %1140 = vst.msk [vmem:[%s2104_s4 + $0x44] sm:$0xf] %vm1122_vm1, %v1342_v56  ;;  %1172 = vst.msk [vmem:[%s2104_s4 + $0xc4] sm:$0xf] %vm1122_vm1, %v1374_v57  ;;  %v1459_v24 = vpop.f32.mrb[24].mxu0  ;;  %v1491_v25 = vpop.f32.mrb[24].mxu1 }
 0x116   :  { %v758_v4 = vadd.f32 %v1714_v38, %v687_v58  ;;  %v790_v5 = vadd.f32 %v1714_v38, %v719_v59  ;;  %v688_v6 = vmul.f32 %v1709_v36, %v488_v2  ;;  %v720_v7 = vmul.f32 %v1709_v36, %v616_v3  ;;  %v501_v30 = vpop.f32.mrb[25].mxu0  ;;  %v629_v31 = vpop.f32.mrb[25].mxu1 }
 0x117   :  { %v824_v8 = vmax.f32 %v760_v62, 0.0  ;;  %v856_v9 = vmax.f32 %v792_v63, 0.0  ;;  %v761_v10 = vadd.f32 %v1714_v38, %v690_v0  ;;  %v793_v11 = vadd.f32 %v1714_v38, %v722_v1  ;;  %v1460_v37 = vpop.f32.mrb[26].mxu0  ;;  %v1492_v39 = vpop.f32.mrb[26].mxu1 }
 0x118   :  { %v822_v12 = vmax.f32 %v758_v4, 0.0  ;;  %v854_v13 = vmax.f32 %v790_v5, 0.0  ;;  %v759_v14 = vadd.f32 %v1714_v38, %v688_v6  ;;  %v791_v15 = vadd.f32 %v1714_v38, %v720_v7  ;;  %v504_v44 = vpop.f32.mrb[27].mxu0  ;;  %v632_v45 = vpop.f32.mrb[27].mxu1 }
 0x119   :  { %v1347_v16 = vpack.c.bf16 %v824_v8, %v824_v8  ;;  %v1379_v17 = vpack.c.bf16 %v856_v9, %v856_v9  ;;  %v825_v18 = vmax.f32 %v761_v10, 0.0  ;;  %v857_v19 = vmax.f32 %v793_v11, 0.0 }
 0x11a   :  { %v1345_v20 = vpack.c.bf16 %v822_v12, %v822_v12  ;;  %v1377_v21 = vpack.c.bf16 %v854_v13, %v854_v13  ;;  %v823_v22 = vmax.f32 %v759_v14, 0.0  ;;  %v855_v23 = vmax.f32 %v791_v15, 0.0 }
 0x11b   :  { %1145 = vst.msk [vmem:[%s2104_s4 + $0x58] sm:$0xf] %vm1122_vm1, %v1347_v16  ;;  %1177 = vst.msk [vmem:[%s2104_s4 + $0xd8] sm:$0xf] %vm1122_vm1, %v1379_v17  ;;  %v1348_v26 = vpack.c.bf16 %v825_v18, %v825_v18  ;;  %v1380_v27 = vpack.c.bf16 %v857_v19, %v857_v19  ;;  %v693_v28 = vmul.f32 %v1459_v24, %v1709_v36 }
 0x11c   :  { %v725_v29 = vmul.f32 %v1491_v25, %v1709_v36  ;;  %1143 = vst.msk [vmem:[%s2104_s4 + $0x50] sm:$0xf] %vm1122_vm1, %v1345_v20  ;;  %1175 = vst.msk [vmem:[%s2104_s4 + $0xd0] sm:$0xf] %vm1122_vm1, %v1377_v21  ;;  %v1346_v32 = vpack.c.bf16 %v823_v22, %v823_v22  ;;  %v1378_v33 = vpack.c.bf16 %v855_v23, %v855_v23 }
 0x11d   :  { %v691_v34 = vmul.f32 %v1709_v36, %v501_v30  ;;  %v723_v35 = vmul.f32 %v1709_v36, %v629_v31  ;;  %1146 = vst.msk [vmem:[%s2104_s4 + $0x5c] sm:$0xf] %vm1122_vm1, %v1348_v26  ;;  %1178 = vst.msk [vmem:[%s2104_s4 + $0xdc] sm:$0xf] %vm1122_vm1, %v1380_v27  ;;  %v764_v40 = vadd.f32 %v1714_v38, %v693_v28  ;;  %v1463_v2 = vpop.f32.mrb[28].mxu0  ;;  %v1495_v3 = vpop.f32.mrb[28].mxu1 }
 0x11e   :  { %v796_v41 = vadd.f32 %v1714_v38, %v725_v29  ;;  %v694_v42 = vmul.f32 %v1460_v37, %v1709_v36  ;;  %v726_v43 = vmul.f32 %v1492_v39, %v1709_v36  ;;  %1144 = vst.msk [vmem:[%s2104_s4 + $0x54] sm:$0xf] %vm1122_vm1, %v1346_v32  ;;  %1176 = vst.msk [vmem:[%s2104_s4 + $0xd4] sm:$0xf] %vm1122_vm1, %v1378_v33  ;;  %v517_v8 = vpop.f32.mrb[29].mxu0  ;;  %v645_v9 = vpop.f32.mrb[29].mxu1 }
 0x11f   :  { %v762_v46 = vadd.f32 %v1714_v38, %v691_v34  ;;  %v794_v47 = vadd.f32 %v1714_v38, %v723_v35  ;;  %v692_v48 = vmul.f32 %v1709_v36, %v504_v44  ;;  %v724_v49 = vmul.f32 %v1709_v36, %v632_v45  ;;  %v1464_v14 = vpop.f32.mrb[30].mxu0  ;;  %v1496_v15 = vpop.f32.mrb[30].mxu1 }
 0x120   :  { %v828_v50 = vmax.f32 %v764_v40, 0.0  ;;  %v860_v51 = vmax.f32 %v796_v41, 0.0  ;;  %v765_v52 = vadd.f32 %v1714_v38, %v694_v42  ;;  %v797_v53 = vadd.f32 %v1714_v38, %v726_v43  ;;  %v520_v20 = vpop.f32.mrb[31].mxu0  ;;  %v648_v21 = vpop.f32.mrb[31].mxu1 }
 0x121   :  { %v826_v54 = vmax.f32 %v762_v46, 0.0  ;;  %v858_v55 = vmax.f32 %v794_v47, 0.0  ;;  %v763_v56 = vadd.f32 %v1714_v38, %v692_v48  ;;  %v795_v57 = vadd.f32 %v1714_v38, %v724_v49 }
 0x122   :  { %v1351_v58 = vpack.c.bf16 %v828_v50, %v828_v50  ;;  %v1383_v59 = vpack.c.bf16 %v860_v51, %v860_v51  ;;  %v829_v60 = vmax.f32 %v765_v52, 0.0  ;;  %v861_v61 = vmax.f32 %v797_v53, 0.0 }
 0x123   :  { %v1349_v62 = vpack.c.bf16 %v826_v54, %v826_v54  ;;  %v1381_v63 = vpack.c.bf16 %v858_v55, %v858_v55  ;;  %v827_v0 = vmax.f32 %v763_v56, 0.0  ;;  %v859_v1 = vmax.f32 %v795_v57, 0.0 }
 0x124   :  { %1149 = vst.msk [vmem:[%s2104_s4 + $0x68] sm:$0xf] %vm1122_vm1, %v1351_v58  ;;  %1181 = vst.msk [vmem:[%s2104_s4 + $0xe8] sm:$0xf] %vm1122_vm1, %v1383_v59  ;;  %v1352_v4 = vpack.c.bf16 %v829_v60, %v829_v60  ;;  %v1384_v5 = vpack.c.bf16 %v861_v61, %v861_v61  ;;  %v697_v6 = vmul.f32 %v1463_v2, %v1709_v36 }
 0x125   :  { %v729_v7 = vmul.f32 %v1495_v3, %v1709_v36  ;;  %1147 = vst.msk [vmem:[%s2104_s4 + $0x60] sm:$0xf] %vm1122_vm1, %v1349_v62  ;;  %1179 = vst.msk [vmem:[%s2104_s4 + $0xe0] sm:$0xf] %vm1122_vm1, %v1381_v63  ;;  %v1350_v10 = vpack.c.bf16 %v827_v0, %v827_v0  ;;  %v1382_v11 = vpack.c.bf16 %v859_v1, %v859_v1 }
 0x126   :  { %v695_v12 = vmul.f32 %v1709_v36, %v517_v8  ;;  %v727_v13 = vmul.f32 %v1709_v36, %v645_v9  ;;  %1150 = vst.msk [vmem:[%s2104_s4 + $0x6c] sm:$0xf] %vm1122_vm1, %v1352_v4  ;;  %1182 = vst.msk [vmem:[%s2104_s4 + $0xec] sm:$0xf] %vm1122_vm1, %v1384_v5  ;;  %v768_v16 = vadd.f32 %v1714_v38, %v697_v6 }
 0x127   :  { %v800_v17 = vadd.f32 %v1714_v38, %v729_v7  ;;  %v698_v18 = vmul.f32 %v1464_v14, %v1709_v36  ;;  %v730_v19 = vmul.f32 %v1496_v15, %v1709_v36  ;;  %1148 = vst.msk [vmem:[%s2104_s4 + $0x64] sm:$0xf] %vm1122_vm1, %v1350_v10  ;;  %1180 = vst.msk [vmem:[%s2104_s4 + $0xe4] sm:$0xf] %vm1122_vm1, %v1382_v11 }
 0x128   :  { %v766_v22 = vadd.f32 %v1714_v38, %v695_v12  ;;  %v798_v23 = vadd.f32 %v1714_v38, %v727_v13  ;;  %v696_v24 = vmul.f32 %v1709_v36, %v520_v20  ;;  %v728_v25 = vmul.f32 %v1709_v36, %v648_v21 }
 0x129   :  { %v832_v26 = vmax.f32 %v768_v16, 0.0  ;;  %v864_v27 = vmax.f32 %v800_v17, 0.0  ;;  %v769_v28 = vadd.f32 %v1714_v38, %v698_v18  ;;  %v801_v29 = vadd.f32 %v1714_v38, %v730_v19 }
 0x12a   :  { %v830_v30 = vmax.f32 %v766_v22, 0.0  ;;  %v862_v31 = vmax.f32 %v798_v23, 0.0  ;;  %v767_v32 = vadd.f32 %v1714_v38, %v696_v24  ;;  %v799_v33 = vadd.f32 %v1714_v38, %v728_v25 }
 0x12b   :  { %v1355_v34 = vpack.c.bf16 %v832_v26, %v832_v26  ;;  %v1387_v35 = vpack.c.bf16 %v864_v27, %v864_v27  ;;  %v833_v37 = vmax.f32 %v769_v28, 0.0  ;;  %v865_v39 = vmax.f32 %v801_v29, 0.0 }
 0x12c   :  { %v1353_v40 = vpack.c.bf16 %v830_v30, %v830_v30  ;;  %v1385_v41 = vpack.c.bf16 %v862_v31, %v862_v31  ;;  %v831_v42 = vmax.f32 %v767_v32, 0.0  ;;  %v863_v36 = vmax.f32 %v799_v33, 0.0 }
 0x12d   :  { %1153 = vst.msk [vmem:[%s2104_s4 + $0x78] sm:$0xf] %vm1122_vm1, %v1355_v34  ;;  %1185 = vst.msk [vmem:[%s2104_s4 + $0xf8] sm:$0xf] %vm1122_vm1, %v1387_v35  ;;  %v1356_v43 = vpack.c.bf16 %v833_v37, %v833_v37  ;;  %v1388_v38 = vpack.c.bf16 %v865_v39, %v865_v39 }
 0x12e   :  { %1151 = vst.msk [vmem:[%s2104_s4 + $0x70] sm:$0xf] %vm1122_vm1, %v1353_v40  ;;  %1183 = vst.msk [vmem:[%s2104_s4 + $0xf0] sm:$0xf] %vm1122_vm1, %v1385_v41  ;;  %v1354_v44 = vpack.c.bf16 %v831_v42, %v831_v42  ;;  %v1386_v45 = vpack.c.bf16 %v863_v36, %v863_v36 }
 0x12f   :  { %1154 = vst.msk [vmem:[%s2104_s4 + $0x7c] sm:$0xf] %vm1122_vm1, %v1356_v43  ;;  %1186 = vst.msk [vmem:[%s2104_s4 + $0xfc] sm:$0xf] %vm1122_vm1, %v1388_v38 }
 0x130   :  { %1152 = vst.msk [vmem:[%s2104_s4 + $0x74] sm:$0xf] %vm1122_vm1, %v1354_v44  ;;  %1184 = vst.msk [vmem:[%s2104_s4 + $0xf4] sm:$0xf] %vm1122_vm1, %v1386_v45 }

// kernel: block_forward.3
= control target key start
LH: loop header
LB: loop body
LE: loop exit
PB: predicated region body
PF: predicated region fallthrough
CT: control target
= control target key end

     0   :  { %s3757_s27 = smov 0   ;;  %s3759_s28 = smov 0   ;;  %s5004_s0 = inlined_call_operand.vmem [shape: bf16[2,1,328,32], index: 0, kind: input, shape index: {}]   ;;  %s5005_s1 = inlined_call_operand.vmem [shape: bf16[1,288,32], index: 1, kind: input, shape index: {}]   ;;  %s5006_s2 = inlined_call_operand.vmem [shape: f32[1,1,32], index: 2, kind: input, shape index: {}]   ;;  %s5007_s3 = inlined_call_operand.vmem [shape: f32[1,1,32], index: 3, kind: input, shape index: {}]   ;;  %s5008_s4 = inlined_call_operand.vmem [shape: bf16[1,32,128], index: 4, kind: input, shape index: {}]   ;;  %s5009_s5 = inlined_call_operand.vmem [shape: f32[1,128], index: 5, kind: input, shape index: {}]   ;;  %s5010_s6 = inlined_call_operand.vmem [shape: f32[1,128], index: 6, kind: input, shape index: {}]   ;;  %s5011_s7 = inlined_call_operand.vmem [shape: bf16[2,288,128], index: 7, kind: input, shape index: {}]   ;;  %s5012_s8 = inlined_call_operand.vmem [shape: bf16[2,288,128], index: 8, kind: output, shape index: {}]  }
   0x1   :  { %s3761_s29 = smov 0  }
   0x2 LB: > { %s30_s30 = sadd.s32 1, %s3702_s28  ;;  %p3115_p0 = scmp.ge.s32.totalorder %s3706_s29, 1  ;;  %s3706_s29 = sphi %s3761_s29, %s18_s29   ;;  %s3702_s28 = sphi %s3759_s28, %s5014_s28   ;;  %s3698_s27 = sphi %s3757_s27, %s5013_s27  }
   0x3   : > { %p32_p1 = scmp.ge.s32.totalorder %s30_s30, 2  ;;  %p289_p2 = scmp.lt.s32.totalorder %s3706_s29, 3 }
   0x5   : > { %s5016_s30 = smov (%p32_p1, %s30_s30), 0  ;;  %p290_p3 = pnand %p3115_p0, %p289_p2 }
   0x6   : > { %p331_p4 = scmp.lt.s32.totalorder (!%p290_p3), %s3698_s27, 1  ;;  %v3642_v0 = vld [vmem:[%s5005_s1] sm:$0xff] (!%p290_p3)   ;;  %v3708_v1 = vmov (!%p290_p3), 0   ;;  %v3643_v2 = vld [vmem:[%s5005_s1 + $0x8] sm:$0xff] (!%p290_p3)   ;;  %vm905_vm0 = vcmask (!%p290_p3), 1045504   ;;  %v3645_v3 = vld [vmem:[%s5005_s1 + $0x10] sm:$0xff] (!%p290_p3)  }
   0x7   : > { %293 = sbr.rel (%p290_p3) target bundleno = 805 (0x325), region = 52  ;;  %1677 = vmatprep.subr.bf16.mxu0 (!%p290_p3), %v3708_v1  ;;  %vm681_vm1 = vcmask (!%p290_p3), 1046528   ;;  %v3646_v13 = vld [vmem:[%s5005_s1 + $0x18] sm:$0xff] (!%p290_p3)   ;;  %s3709_s21 = smov (!%p290_p3), 64   ;;  %v3647_v38 = vld [vmem:[%s5005_s1 + $0x20] sm:$0xff] (!%p290_p3)   ;;  %v3649_v58 = vld [vmem:[%s5005_s1 + $0x28] sm:$0xff] (!%p290_p3)  }
   0x8   : > { %1678 = vmatpush1.bf16.msra.mxu0 (!%p290_p3), %v3642_v0  ;;  %s3710_s22 = smov (!%p290_p3), 32   ;;  %vm493_vm2 = vsmask.f32 (!%p290_p3), 7424  ;;  %s3711_s25 = smov (!%p290_p3), 96   ;;  %vm1035_vm3 = vsmask.f32 (!%p290_p3), 5376 }
   0x9   : > { %1679 = vmatprep.subr.bf16.mxu0 (!%p290_p3), %v3708_v1  ;;  %vm811_vm4 = vsmask.f32 (!%p290_p3), 6400  ;;  %vm1165_vm5 = vcmask (!%p290_p3), 1044480   ;;  %vm1203_vm6 = vcmask (!%p290_p3), 261120   ;;  %vm1240_vm7 = vcmask (!%p290_p3), 523264  }
   0xa   : > { %vm1277_vm8 = vcmask (!%p290_p3), 785408  }
   0xc   : > { %1680 = vmatpush1.bf16.msra.mxu0 (!%p290_p3), %v3643_v2 }
   0xd   : > { %1681 = vmatprep.subr.bf16.mxu0 (!%p290_p3), %v3708_v1 }
   0xe   : > { %s5018_s27 = smov (!%p331_p4, %s3698_s27), 1 }
   0xf   : > { %s3599_s13 = smul.u32 164, %s5018_s27 }
  0x10   : > { %1682 = vmatpush1.bf16.msra.mxu0 %v3645_v3  ;;  %s3600_s10 = smul.u32 144, %s5018_s27 }
  0x11   : > { %s3789_s16 = scalar_lea.vmem %s5004_s0, %s3599_s13  ;;  %1683 = vmatprep.subr.bf16.mxu0 %v3708_v1 }
  0x12   : > { %v3795_v4 = vld [vmem:[%s3789_s16 + $0x14] sm:$0xf]  ;;  %v394_v5 = vld [vmem:[%s3789_s16 + $0x10] sm:$0xc]  ;;  %v3799_v6 = vld [vmem:[%s3789_s16 + $0x18] sm:$0xff]   ;;  %s4868_s13 = scalar_lea.vmem %s5011_s7, %s3600_s10 }
  0x13   : > { %v354_v7 = vld [vmem:[%s3789_s16 + $0x10] sm:$0xf]  ;;  %v3144_v8 = vcombine.low %v394_v5, %v3795_v4  ;;  %v353_v10 = vld [vmem:[%s3789_s16 + $0xc] sm:$0xf]  ;;  %v388_v11 = vld [vmem:[%s3789_s16 + $0x8] sm:$0xe] }
  0x14   : > { %v3805_v9 = vcombine.low %v354_v7, %v3795_v4  ;;  %v393_v12 = vld [vmem:[%s3789_s16 + $0x8] sm:$0xc]  ;;  %v909_v14 = vrot.slane %v3799_v6, 2  ;;  %v3815_v17 = vcombine.low %v388_v11, %v353_v10  ;;  %v351_v18 = vld [vmem:[%s3789_s16 + $0x4] sm:$0xf]  ;;  %1684 = vmatpush1.bf16.msra.mxu0 %v3646_v13  ;;  %v3854_v43 = vshll.u32 %v3799_v6, 16 }
  0x15   : > { %v3143_v15 = vcombine.low %v393_v12, %v353_v10  ;;  %v352_v16 = vld [vmem:[%s3789_s16 + $0x8] sm:$0xf]  ;;  %v3819_v19 = vld [vmem:[%s3789_s16 + $0x20] sm:$0xff]   ;;  %v990_v20 = vrot.slane %v3144_v8, 2  ;;  %1685 = vmatprep.subr.bf16.mxu0 %v3708_v1  ;;  %v3857_v44 = vshrl.u32 %v3799_v6, 16  ;;  %v1037_v47 = vshrl.u32 %v3144_v8, 16 }
  0x16   : > { %v907_v21 = vrot.slane %v3805_v9, 2  ;;  %v3822_v22 = vcombine.low %v352_v16, %v353_v10  ;;  %v387_v23 = vld [vmem:[%s3789_s16] sm:$0xe]  ;;  %v911_v30 = vrot.slane %v3819_v19, 2  ;;  %v3835_v33 = vrot.slane %v3805_v9, 1  ;;  %v3650_v5 = vld [vmem:[%s5005_s1 + $0x30] sm:$0xff]  }
  0x17   : > { %v350_v24 = vld [vmem:[%s3789_s16] sm:$0xf]  ;;  %v906_v25 = vrot.slane %v3143_v15, 2  ;;  %v3138_v26 = vcombine.low %v387_v23, %v351_v18  ;;  %v991_v28 = vsel %vm905_vm0, %v990_v20, %v909_v14  ;;  %v766_v34 = vrot.slane %v3815_v17, 1  ;;  %v3897_v11 = vld [vmem:[%s3789_s16 + $0x28] sm:$0xff]  }
  0x18   : > { %v3826_v27 = vcombine.low %v350_v24, %v351_v18  ;;  %v683_v29 = vrot.slane %v3822_v22, 1  ;;  %996 = vrot.lane.b32.xlu1 %v991_v28, %s3709_s21  ;;  %v502_v37 = vshll.u32 %v3822_v22, 16  ;;  %v910_v39 = vsel %vm905_vm0, %v907_v21, %v909_v14  ;;  %1686 = vmatpush1.bf16.msra.mxu0 %v3647_v38  ;;  %v3653_v24 = vld [vmem:[%s5005_s1 + $0x40] sm:$0xff]   ;;  %v3663_v38 = vld [vmem:[%s5005_s1 + $0x88] sm:$0xff]  }
  0x19   : > { %v908_v31 = vsel %vm905_vm0, %v906_v25, %v907_v21  ;;  %v682_v32 = vrot.slane %v3138_v26, 1  ;;  %v3851_v41 = vsel %vm905_vm0, %v909_v14, %v911_v30  ;;  %v767_v45 = vsel %vm681_vm1, %v766_v34, %v3835_v33  ;;  %1687 = vmatprep.subr.bf16.mxu0 %v3708_v1  ;;  %v3651_v14 = vld [vmem:[%s5005_s1 + $0x38] sm:$0xff]   ;;  %v3938_v34 = vld [vmem:[%s3789_s16 + $0x30] sm:$0xff]  }
  0x1a   : > { %943 = vrot.lane.b32.xlu0 %v908_v31, %s3710_s22  ;;  %v495_v35 = vshrl.u32 %v3826_v27, 16  ;;  %v497_v36 = vshll.u32 %v3826_v27, 16  ;;  %v506_v46 = vshrl.u32 %v3822_v22, 16  ;;  %v1040_v48 = vshll.u32 %v3144_v8, 16  ;;  %v3654_v31 = vld [vmem:[%s5005_s1 + $0x48] sm:$0xff]  }
  0x1b   : > { %v684_v40 = vsel %vm681_vm1, %v682_v32, %v683_v29  ;;  %v504_v50 = vrot.slane %v502_v37, 1  ;;  %v510_v51 = vshll.u32 %v3805_v9, 16  ;;  %v1044_v52 = vrot.slane %v3857_v44, 2  ;;  %v3660_v32 = vld [vmem:[%s5005_s1 + $0x80] sm:$0xff]   ;;  %v3655_v37 = vld [vmem:[%s5005_s1 + $0x50] sm:$0xff]  }
  0x1c   : > { %v499_v42 = vrot.slane %v497_v36, 1  ;;  %719 = vrot.lane.b32.xlu1 %v684_v40, %s3709_s21  ;;  %v1039_v53 = vrot.slane %v1037_v47, 2  ;;  %v1042_v54 = vrot.slane %v1040_v48, 3  ;;  %v1045_v55 = vrot.slane %v3854_v43, 3  ;;  %1688 = vmatpush1.bf16.msra.mxu0 %v3649_v58  ;;  %v3657_v48 = vld [vmem:[%s5005_s1 + $0x58] sm:$0xff]   ;;  %v3658_v58 = vld [vmem:[%s5005_s1 + $0x60] sm:$0xff]  }
  0x1d   : > { %v3868_v56 = vshll.u32 %v3819_v19, 16  ;;  %v3872_v57 = vshrl.u32 %v3819_v19, 16  ;;  %v686_v59 = vsel %vm681_vm1, %v683_v29, %v3835_v33  ;;  %v508_v60 = vor.u32 %v506_v46, %v504_v50  ;;  %1689 = vmatprep.subr.bf16.mxu0 %v3708_v1  ;;  %3519 = vmatprep.subr.bf16.mxu1 %v3660_v32 }
  0x1e   : > { %945 = vrot.lane.b32.xlu0 %v910_v39, %s3710_s22  ;;  %v500_v49 = vor.u32 %v499_v42, %v495_v35  ;;  %v512_v61 = vrot.slane %v510_v51, 1  ;;  %v1043_v0 = vor.u32 %v1042_v54, %v1039_v53  ;;  %v1046_v2 = vor.u32 %v1045_v55, %v1044_v52  ;;  %3520 = vmatpush3.bf16.msra.mxu1 %v3660_v32 }
  0x1f   : > { %v1049_v62 = vrot.slane %v3868_v56, 3  ;;  %v1048_v3 = vrot.slane %v3872_v57, 2  ;;  %v687_v8 = vrot.slane %v3799_v6, 1  ;;  %v514_v10 = vshrl.u32 %v3805_v9, 16  ;;  %3521 = vmatprep.subr.bf16.mxu1 %v3663_v38 }
  0x20   : > { %772 = vrot.lane.b32.xlu1 %v767_v45, %s3711_s25  ;;  %v505_v63 = vsel %vm493_vm2, %v500_v49, %v504_v50  ;;  %v513_v7 = vsel %vm493_vm2, %v508_v60, %v512_v61  ;;  %v1047_v12 = vsel %vm1035_vm3, %v1043_v0, %v1046_v2  ;;  %1690 = vmatpush1.bf16.msra.mxu0 %v3650_v5  ;;  %v520_v18 = vrot.slane %v3854_v43, 1 }
  0x21   : > { %v1050_v13 = vor.u32 %v1049_v62, %v1048_v3  ;;  %1691 = vmatprep.subr.bf16.mxu0 %v3708_v1  ;;  %v688_v15 = vsel %vm681_vm1, %v3835_v33, %v687_v8  ;;  %v516_v16 = vor.u32 %v514_v10, %v512_v61  ;;  %v3910_v20 = vshll.u32 %v3897_v11, 16 }
  0x22   : > { %998 = vrot.lane.b32.xlu0 %v3851_v41, %s3709_s21  ;;  %v3914_v23 = vshrl.u32 %v3897_v11, 16  ;;  %v913_v25 = vrot.slane %v3897_v11, 2  ;;  %v689_v33 = vrot.slane %v3819_v19, 1  ;;  %v821_v39 = vrot.slane %v510_v51, 2  ;;  %3522 = vmatpush3.bf16.msra.mxu1 %v3663_v38 }
  0x23   : > { %v1051_v21 = vsel %vm1035_vm3, %v1046_v2, %v1050_v13  ;;  %v521_v26 = vsel %vm493_vm2, %v516_v16, %v520_v18  ;;  %v1053_v29 = vrot.slane %v3910_v20, 3  ;;  %v524_v40 = vor.u32 %v3857_v44, %v520_v18  ;;  %v3662_v18 = vld [vmem:[%s5005_s1 + $0x70] sm:$0xff]  }
  0x24   : > { %721 = vrot.lane.b32.xlu1 %v686_v59, %s3709_s21  ;;  %1692 = vmatpush1.bf16.msra.mxu0 %v3651_v14  ;;  %v1052_v28 = vrot.slane %v3914_v23, 2  ;;  %v914_v35 = vsel %vm905_vm0, %v911_v30, %v913_v25  ;;  %v528_v30 = vrot.slane %v3868_v56, 1  ;;  %v690_v42 = vsel %vm681_vm1, %v687_v8, %v689_v33  ;;  %v3980_v59 = vld [vmem:[%s3789_s16 + $0x38] sm:$0xff]  }
  0x25   : > { %1693 = vmatprep.subr.bf16.mxu0 %v3708_v1  ;;  %v3958_v45 = vshll.u32 %v3938_v34, 16  ;;  %v3961_v46 = vshrl.u32 %v3938_v34, 16  ;;  %v915_v50 = vrot.slane %v3938_v34, 2  ;;  %v813_v54 = vshrl.u32 %v3815_v17, 16 }
  0x26   : > { %642 = vrot.lane.b32.xlu0 %v505_v63, %s3710_s22  ;;  %v1054_v36 = vor.u32 %v1053_v29, %v1052_v28  ;;  %v529_v49 = vsel %vm493_vm2, %v524_v40, %v528_v30  ;;  %v816_v55 = vshll.u32 %v3815_v17, 16  ;;  %v691_v61 = vrot.slane %v3897_v11, 1 }
  0x27   : > { %v1056_v51 = vrot.slane %v3961_v46, 2  ;;  %v1057_v52 = vrot.slane %v3958_v45, 3  ;;  %v815_v60 = vrot.slane %v813_v54, 1  ;;  %v824_v63 = vrot.slane %v3857_v44, 1  ;;  %v399_v44 = vld [vmem:[%s3789_s16 + $0x10] sm:$0x8] }
  0x28   : > { %644 = vrot.lane.b32.xlu1 %v513_v7, %s3710_s22  ;;  %1694 = vmatpush1.bf16.msra.mxu0 %v3653_v24  ;;  %v1055_v47 = vsel %vm1035_vm3, %v1050_v13, %v1054_v36  ;;  %v818_v62 = vrot.slane %v816_v55, 2  ;;  %v825_v0 = vrot.slane %v3854_v43, 2  ;;  %v916_v2 = vsel %vm905_vm0, %v913_v25, %v915_v50  ;;  %v3659_v7 = vld [vmem:[%s5005_s1 + $0x68] sm:$0xff]  }
  0x29   : > { %1695 = vmatprep.subr.bf16.mxu0 %v3708_v1  ;;  %v3988_v17 = vor.u32 %v1057_v52, %v1056_v51  ;;  %v532_v43 = vor.u32 %v3872_v57, %v528_v30  ;;  %v536_v8 = vrot.slane %v3910_v20, 1  ;;  %v692_v13 = vsel %vm681_vm1, %v689_v33, %v691_v61 }
  0x2a   : > { %1126 = vrot.lane.b32.xlu0 %v1047_v12, %s3711_s25  ;;  %v819_v3 = vor.u32 %v818_v62, %v815_v60  ;;  %v826_v5 = vor.u32 %v825_v0, %v824_v63  ;;  %v4017_v16 = vshrl.u32 %v3980_v59, 16  ;;  %v1167_v24 = vrot.slane %v3799_v6, 3 }
  0x2b   : > { %v1059_v14 = vsel %vm1035_vm3, %v1054_v36, %v3988_v17  ;;  %v1169_v25 = vrot.slane %v3819_v19, 3  ;;  %v828_v28 = vrot.slane %v3872_v57, 1  ;;  %v537_v29 = vsel %vm493_vm2, %v532_v43, %v536_v8  ;;  %v3664_v57 = vld [vmem:[%s5005_s1 + $0x78] sm:$0xff]  }
  0x2c   : > { %774 = vrot.lane.b32.xlu1 %v688_v15, %s3711_s25  ;;  %1696 = vmatpush1.bf16.msra.mxu0 %v3654_v31  ;;  %v917_v6 = vrot.slane %v3980_v59, 2  ;;  %v1060_v19 = vrot.slane %v4017_v16, 2  ;;  %v1171_v36 = vrot.slane %v3897_v11, 3  ;;  %v1175_v60 = vrot.slane %v3980_v59, 3 }
  0x2d   : > { %1697 = vmatprep.subr.bf16.mxu0 %v3708_v1  ;;  %v1170_v31 = vsel %vm1165_vm5, %v1167_v24, %v1169_v25 }
  0x2e   : > { %1128 = vrot.lane.b32.xlu0 %v1051_v21, %s3711_s25  ;;  %v3148_v21 = vcombine.low %v399_v44, %v3795_v4  ;;  %v829_v4 = vrot.slane %v3868_v56, 2  ;;  %v693_v56 = vrot.slane %v3938_v34, 1  ;;  %v918_v40 = vsel %vm905_vm0, %v915_v50, %v917_v6 }
  0x30   : > { %646 = vrot.lane.b32.xlu1 %v521_v26, %s3710_s22  ;;  %1698 = vmatpush1.bf16.msra.mxu0 %v3655_v37  ;;  %v1166_v26 = vrot.slane %v3148_v21, 3  ;;  %v4047_v37 = vld [vmem:[%s3789_s16 + $0x40] sm:$0xff]  }
  0x31   : > { %1699 = vmatprep.subr.bf16.mxu0 %v3708_v1  ;;  %v4068_v50 = vshll.u32 %v4047_v37, 16  ;;  %v1177_v63 = vrot.slane %v4047_v37, 3 }
  0x32   : > { %947 = vrot.lane.b32.xlu0 %v3851_v41, %s3710_s22  ;;  %v820_v41 = vrot.slane %v514_v10, 1  ;;  %v1168_v33 = vsel %vm1165_vm5, %v1166_v26, %v1167_v24 }
  0x33   : > { %3523 = vmatprep.mubr.msk.bf16.mxu1 %vm1203_vm6, %v1168_v33  ;;  %v1065_v62 = vrot.slane %v4068_v50, 3 }
  0x34   : > { %723 = vrot.lane.b32.xlu1 %v688_v15, %s3709_s21  ;;  %v822_v53 = vor.u32 %v821_v39, %v820_v41  ;;  %1700 = vmatpush1.bf16.msra.mxu0 %v3657_v48  ;;  %v4014_v15 = vshll.u32 %v3980_v59, 16  ;;  %v832_v39 = vrot.slane %v3914_v23, 1  ;;  %v1172_v41 = vsel %vm1165_vm5, %v1169_v25, %v1171_v36  ;;  %v4117_v25 = vld [vmem:[%s3789_s16 + $0x50] sm:$0xff]  }
  0x35   : > { %1701 = vmatprep.subr.bf16.mxu0 %v3708_v1  ;;  %3524 = vmatmul.mubr.msk.bf16.vlgmr.msra.gmra.mrb[0].mxu1 %vm1203_vm6, %v1170_v31  ;;  %v540_v48 = vor.u32 %v3914_v23, %v536_v8  ;;  %v836_v23 = vrot.slane %v3961_v46, 1  ;;  %v4103_v8 = vld [vmem:[%s3789_s16 + $0x48] sm:$0xff]  }
  0x36   : > { %1000 = vrot.lane.b32.xlu0 %v914_v35, %s3709_s21  ;;  %v4002_v10 = vsel %vm811_vm4, %v819_v3, %v822_v53  ;;  %v4005_v12 = vsel %vm811_vm4, %v822_v53, %v826_v5  ;;  %v1061_v32 = vrot.slane %v4014_v15, 3  ;;  %3527 = vmatprep.mubr.msk.bf16.mxu1 %vm1203_vm6, %v1172_v41  ;;  %v837_v53 = vrot.slane %v3958_v45, 2 }
  0x37   : > { %v695_v3 = vrot.slane %v3980_v59, 1  ;;  %v552_v24 = vrot.slane %v4014_v15, 1 }
  0x38   : > { %776 = vrot.lane.b32.xlu1 %v690_v42, %s3711_s25  ;;  %1702 = vmatpush1.bf16.msra.mxu0 %v3658_v58  ;;  %v1062_v30 = vor.u32 %v1061_v32, %v1060_v19  ;;  %v838_v54 = vor.u32 %v837_v53, %v836_v23  ;;  %v919_v58 = vrot.slane %v4047_v37, 2  ;;  %v923_v53 = vrot.slane %v4117_v25, 2 }
  0x39   : > { %1703 = vmatprep.subr.bf16.mxu0 %v3708_v1  ;;  %v696_v59 = vsel %vm681_vm1, %v693_v56, %v695_v3 }
  0x3a   : > { %1130 = vrot.lane.b32.xlu0 %v1055_v47, %s3711_s25  ;;  %v694_v47 = vsel %vm681_vm1, %v691_v61, %v693_v56  ;;  %v1063_v11 = vsel %vm1035_vm3, %v3988_v17, %v1062_v30  ;;  %v840_v17 = vrot.slane %v4017_v16, 1  ;;  %v920_v44 = vsel %vm905_vm0, %v917_v6, %v919_v58 }
  0x3b   : > { %v1181_v6 = vrot.slane %v4117_v25, 3 }
  0x3c   : > { %648 = vrot.lane.b32.xlu1 %v529_v49, %s3710_s22  ;;  %1704 = vmatpush1.bf16.msra.mxu0 %v3659_v7 }
  0x3d   : > { %1705 = vmatprep.subr.bf16.mxu0 %v3708_v1 }
  0x3e   : > { %949 = vrot.lane.b32.xlu0 %v914_v35, %s3710_s22  ;;  %v830_v35 = vor.u32 %v829_v4, %v828_v28  ;;  %v4121_v28 = vshll.u32 %v4103_v8, 16  ;;  %v1179_v4 = vrot.slane %v4103_v8, 3 }
  0x40   : > { %725 = vrot.lane.b32.xlu1 %v690_v42, %s3709_s21  ;;  %1706 = vmatpush1.bf16.msra.mxu0 %v3662_v18  ;;  %v4050_v38 = vsel %vm811_vm4, %v826_v5, %v830_v35  ;;  %v833_v42 = vrot.slane %v3910_v20, 2  ;;  %v4071_v20 = vshrl.u32 %v4047_v37, 16  ;;  %v1178_v5 = vsel %vm1165_vm5, %v1175_v60, %v1177_v63 }
  0x41   : > { %1707 = vmatprep.subr.bf16.mxu0 %v3708_v1  ;;  %v1173_v1 = vrot.slane %v3938_v34, 3  ;;  %v544_v34 = vrot.slane %v3958_v45, 1  ;;  %v845_v18 = vrot.slane %v4068_v50, 2  ;;  %v1180_v32 = vsel %vm1165_vm5, %v1177_v63, %v1179_v4 }
  0x42   : > { %1002 = vrot.lane.b32.xlu0 %v916_v2, %s3709_s21  ;;  %v834_v49 = vor.u32 %v833_v42, %v832_v39  ;;  %v1064_v61 = vrot.slane %v4071_v20, 2  ;;  %v849_v33 = vrot.slane %v4121_v28, 2  ;;  %v697_v39 = vrot.slane %v4047_v37, 1 }
  0x43   : > { %v1174_v51 = vsel %vm1165_vm5, %v1171_v36, %v1173_v1  ;;  %v545_v55 = vsel %vm493_vm2, %v540_v48, %v544_v34  ;;  %v1176_v0 = vsel %vm1165_vm5, %v1173_v1, %v1175_v60  ;;  %v548_v21 = vor.u32 %v3961_v46, %v544_v34 }
  0x44   : > { %778 = vrot.lane.b32.xlu1 %v692_v13, %s3711_s25  ;;  %1708 = vmatpush1.bf16.msra.mxu0 %v3664_v57  ;;  %v4077_v52 = vsel %vm811_vm4, %v830_v35, %v834_v49  ;;  %v4090_v45 = vsel %vm811_vm4, %v834_v49, %v838_v54  ;;  %v1066_v43 = vor.u32 %v1065_v62, %v1064_v61  ;;  %v921_v35 = vrot.slane %v4103_v8, 2  ;;  %v4177_v61 = vld [vmem:[%s3789_s16 + $0x58] sm:$0xff]  }
  0x45   : > { %3528 = vmatmul.mubr.msk.bf16.gmra.mrb[4].mxu1 %vm1203_vm6, %v1174_v51  ;;  %v553_v19 = vsel %vm493_vm2, %v548_v21, %v552_v24  ;;  %v1182_v57 = vsel %vm1165_vm5, %v1179_v4, %v1181_v6  ;;  %v1069_v36 = vrot.slane %v4121_v28, 3  ;;  %v556_v42 = vor.u32 %v4017_v16, %v552_v24 }
  0x46   : > { %1132 = vrot.lane.b32.xlu0 %v1059_v14, %s3711_s25  ;;  %3531 = vmatprep.mubr.msk.bf16.mxu1 %vm1203_vm6, %v1176_v0  ;;  %v844_v14 = vrot.slane %v4071_v20, 1  ;;  %v1067_v26 = vsel %vm1035_vm3, %v1062_v30, %v1066_v43  ;;  %v922_v30 = vsel %vm905_vm0, %v919_v58, %v921_v35  ;;  %v560_v48 = vrot.slane %v4068_v50, 1 }
  0x47   : > { %v4156_v49 = vshll.u32 %v4117_v25, 16  ;;  %v4159_v34 = vshrl.u32 %v4117_v25, 16  ;;  %v699_v60 = vrot.slane %v4103_v8, 1  ;;  %v924_v62 = vsel %vm905_vm0, %v921_v35, %v923_v53 }
  0x48   : > { %650 = vrot.lane.b32.xlu1 %v537_v29, %s3710_s22  ;;  %v4124_v29 = vshrl.u32 %v4103_v8, 16  ;;  %v846_v31 = vor.u32 %v845_v18, %v844_v14  ;;  %v561_v16 = vsel %vm493_vm2, %v556_v42, %v560_v48  ;;  %v703_v42 = vrot.slane %v4177_v61, 1 }
  0x49   : > { %v853_v23 = vrot.slane %v4156_v49, 2  ;;  %v700_v0 = vsel %vm681_vm1, %v697_v39, %v699_v60  ;;  %v576_v35 = vrot.slane %v4156_v49, 1 }
  0x4a   : > { %951 = vrot.lane.b32.xlu0 %v916_v2, %s3710_s22  ;;  %v841_v2 = vrot.slane %v4014_v15, 2  ;;  %v848_v15 = vrot.slane %v4124_v29, 1  ;;  %v1068_v56 = vrot.slane %v4124_v29, 2 }
  0x4c   : > { %727 = vrot.lane.b32.xlu1 %v692_v13, %s3709_s21  ;;  %v842_v7 = vor.u32 %v841_v2, %v840_v17  ;;  %v850_v1 = vor.u32 %v849_v33, %v848_v15  ;;  %v1070_v41 = vor.u32 %v1069_v36, %v1068_v56  ;;  %v564_v17 = vor.u32 %v4071_v20, %v560_v48  ;;  %v4184_v2 = vld [vmem:[%s3789_s16 + $0x60] sm:$0xff]  }
  0x4d   : > { %3532 = vmatmul.mubr.msk.bf16.gmra.mrb[8].mxu1 %vm1203_vm6, %v1178_v5  ;;  %v4189_v5 = vshll.u32 %v4177_v61, 16  ;;  %v1185_v14 = vrot.slane %v4184_v2, 3  ;;  %v701_v15 = vrot.slane %v4117_v25, 1  ;;  %v4226_v36 = vshll.u32 %v4184_v2, 16 }
  0x4e   : > { %1004 = vrot.lane.b32.xlu0 %v918_v40, %s3709_s21  ;;  %v4106_v13 = vsel %vm811_vm4, %v838_v54, %v842_v7  ;;  %v4130_v46 = vsel %vm811_vm4, %v842_v7, %v846_v31  ;;  %3535 = vmatprep.mubr.msk.bf16.mxu1 %vm1203_vm6, %v1180_v32  ;;  %v1071_v51 = vsel %vm1035_vm3, %v1066_v43, %v1070_v41  ;;  %v1072_v54 = vrot.slane %v4159_v34, 2 }
  0x4f   : > { %v4192_v7 = vshrl.u32 %v4177_v61, 16  ;;  %v1077_v4 = vrot.slane %v4189_v5, 3 }
  0x50   : > { %780 = vrot.lane.b32.xlu1 %v694_v47, %s3711_s25 }
  0x51   : > { %v856_v18 = vrot.slane %v4192_v7, 1 }
  0x52   : > { %1134 = vrot.lane.b32.xlu0 %v1063_v11, %s3711_s25  ;;  %v852_v11 = vrot.slane %v4159_v34, 1 }
  0x54   : > { %652 = vrot.lane.b32.xlu1 %v545_v55, %s3710_s22  ;;  %v854_v50 = vor.u32 %v853_v23, %v852_v11  ;;  %v1073_v55 = vrot.slane %v4156_v49, 3  ;;  %v4242_v49 = vld [vmem:[%s3789_s16 + $0x68] sm:$0xff]   ;;  %v704_v11 = vsel %vm681_vm1, %v701_v15, %v703_v42  ;;  %v580_v23 = vor.u32 %v4159_v34, %v576_v35 }
  0x55   : > { %3536 = vmatmul.mubr.msk.bf16.gmra.mrb[12].mxu1 %vm1203_vm6, %v1182_v57  ;;  %v702_v57 = vsel %vm681_vm1, %v699_v60, %v701_v15  ;;  %v4258_v60 = vshrl.u32 %v4242_v49, 16 }
  0x56   : > { %953 = vrot.lane.b32.xlu0 %v918_v40, %s3710_s22  ;;  %v4147_v40 = vsel %vm811_vm4, %v846_v31, %v850_v1  ;;  %v4171_v58 = vsel %vm811_vm4, %v850_v1, %v854_v50  ;;  %v1074_v63 = vor.u32 %v1073_v55, %v1072_v54  ;;  %v1076_v31 = vrot.slane %v4192_v7, 2 }
  0x57   : > { %v4229_v1 = vshrl.u32 %v4184_v2, 16  ;;  %v4255_v55 = vshll.u32 %v4242_v49, 16 }
  0x58   : > { %729 = vrot.lane.b32.xlu1 %v694_v47, %s3709_s21  ;;  %v698_v47 = vsel %vm681_vm1, %v695_v3, %v697_v39  ;;  %v568_v3 = vrot.slane %v4121_v28, 1  ;;  %v1075_v43 = vsel %vm1035_vm3, %v1070_v41, %v1074_v63  ;;  %v925_v28 = vrot.slane %v4177_v61, 2 }
  0x59   : > { %v1078_v32 = vor.u32 %v1077_v4, %v1076_v31  ;;  %v1081_v41 = vrot.slane %v4226_v36, 3  ;;  %v592_v4 = vrot.slane %v4226_v36, 1 }
  0x5a   : > { %1006 = vrot.lane.b32.xlu0 %v920_v44, %s3709_s21  ;;  %v569_v24 = vsel %vm493_vm2, %v564_v17, %v568_v3  ;;  %v572_v33 = vor.u32 %v4124_v29, %v568_v3  ;;  %v927_v29 = vrot.slane %v4184_v2, 2 }
  0x5b   : > { %v1079_v56 = vsel %vm1035_vm3, %v1074_v63, %v1078_v32 }
  0x5c   : > { %782 = vrot.lane.b32.xlu1 %v696_v59, %s3711_s25  ;;  %v577_v39 = vsel %vm493_vm2, %v572_v33, %v576_v35 }
  0x5e   : > { %1136 = vrot.lane.b32.xlu0 %v1067_v26, %s3711_s25 }
  0x60   : > { %654 = vrot.lane.b32.xlu1 %v553_v19, %s3710_s22  ;;  %v926_v19 = vsel %vm905_vm0, %v923_v53, %v925_v28 }
  0x62   : > { %955 = vrot.lane.b32.xlu0 %v920_v44, %s3710_s22  ;;  %v1183_v44 = vrot.slane %v4177_v61, 3 }
  0x64   : > { %731 = vrot.lane.b32.xlu1 %v696_v59, %s3709_s21  ;;  %v1184_v20 = vsel %vm1165_vm5, %v1181_v6, %v1183_v44  ;;  %v857_v59 = vrot.slane %v4189_v5, 2  ;;  %v1186_v21 = vsel %vm1165_vm5, %v1183_v44, %v1185_v14  ;;  %v1084_v44 = vrot.slane %v4258_v60, 2 }
  0x65   : > { %3539 = vmatprep.mubr.msk.bf16.mxu1 %vm1203_vm6, %v1184_v20  ;;  %v705_v20 = vrot.slane %v4184_v2, 1 }
  0x66   : > { %1008 = vrot.lane.b32.xlu0 %v922_v30, %s3709_s21  ;;  %3540 = vmatmul.mubr.msk.bf16.gmra.mrb[16].mxu1 %vm1203_vm6, %v1186_v21  ;;  %v4206_v26 = vor.u32 %v857_v59, %v856_v18 }
  0x68   : > { %784 = vrot.lane.b32.xlu1 %v698_v47, %s3711_s25  ;;  %v4213_v6 = vsel %vm811_vm4, %v854_v50, %v4206_v26  ;;  %v1187_v50 = vrot.slane %v4242_v49, 3 }
  0x6a   : > { %1138 = vrot.lane.b32.xlu0 %v1071_v51, %s3711_s25  ;;  %v4246_v51 = vld [vmem:[%s3789_s16 + $0x70] sm:$0xff]  }
  0x6c   : > { %656 = vrot.lane.b32.xlu1 %v561_v16, %s3710_s22  ;;  %v584_v16 = vrot.slane %v4189_v5, 1  ;;  %v929_v5 = vrot.slane %v4242_v49, 2 }
  0x6e   : > { %957 = vrot.lane.b32.xlu0 %v922_v30, %s3710_s22  ;;  %v1080_v30 = vrot.slane %v4229_v1, 2  ;;  %v585_v17 = vsel %vm493_vm2, %v580_v23, %v584_v16  ;;  %v930_v59 = vsel %vm905_vm0, %v927_v29, %v929_v5  ;;  %v588_v31 = vor.u32 %v4192_v7, %v584_v16 }
  0x70   : > { %733 = vrot.lane.b32.xlu1 %v698_v47, %s3709_s21  ;;  %v928_v47 = vsel %vm905_vm0, %v925_v28, %v927_v29  ;;  %v1082_v48 = vor.u32 %v1081_v41, %v1080_v30  ;;  %v706_v28 = vsel %vm681_vm1, %v703_v42, %v705_v20  ;;  %v593_v7 = vsel %vm493_vm2, %v588_v31, %v592_v4 }
  0x71   : > { %v931_v30 = vrot.slane %v4246_v51, 2 }
  0x72   : > { %1010 = vrot.lane.b32.xlu0 %v924_v62, %s3709_s21  ;;  %v1083_v54 = vsel %vm1035_vm3, %v1078_v32, %v1082_v48  ;;  %v4284_v32 = vshll.u32 %v4246_v51, 16 }
  0x74   : > { %786 = vrot.lane.b32.xlu1 %v700_v0, %s3711_s25 }
  0x76   : > { %1140 = vrot.lane.b32.xlu0 %v1075_v43, %s3711_s25  ;;  %v1085_v43 = vrot.slane %v4255_v55, 3 }
  0x78   : > { %658 = vrot.lane.b32.xlu1 %v569_v24, %s3710_s22  ;;  %v1086_v21 = vor.u32 %v1085_v43, %v1084_v44  ;;  %v600_v44 = vrot.slane %v4255_v55, 1 }
  0x7a   : > { %959 = vrot.lane.b32.xlu0 %v924_v62, %s3710_s22  ;;  %v1189_v62 = vrot.slane %v4246_v51, 3 }
  0x7c   : > { %735 = vrot.lane.b32.xlu1 %v700_v0, %s3709_s21  ;;  %v1188_v0 = vsel %vm1165_vm5, %v1185_v14, %v1187_v50  ;;  %v1190_v34 = vsel %vm1165_vm5, %v1187_v50, %v1189_v62  ;;  %v932_v50 = vsel %vm905_vm0, %v929_v5, %v931_v30  ;;  %v596_v5 = vor.u32 %v4229_v1, %v592_v4 }
  0x7d   : > { %3543 = vmatprep.mubr.msk.bf16.mxu1 %vm1203_vm6, %v1188_v0 }
  0x7e   : > { %1012 = vrot.lane.b32.xlu0 %v926_v19, %s3709_s21  ;;  %3544 = vmatmul.mubr.msk.bf16.gmra.mrb[20].mxu1 %vm1203_vm6, %v1190_v34 }
  0x80   : > { %788 = vrot.lane.b32.xlu1 %v702_v57, %s3711_s25 }
  0x82   : > { %1142 = vrot.lane.b32.xlu0 %v1079_v56, %s3711_s25 }
  0x84   : > { %660 = vrot.lane.b32.xlu1 %v577_v39, %s3710_s22 }
  0x86   : > { %961 = vrot.lane.b32.xlu0 %v926_v19, %s3710_s22  ;;  %v1087_v19 = vsel %vm1035_vm3, %v1082_v48, %v1086_v21  ;;  %v707_v48 = vrot.slane %v4242_v49, 1 }
  0x88   : > { %737 = vrot.lane.b32.xlu1 %v702_v57, %s3709_s21  ;;  %v4287_v57 = vshrl.u32 %v4246_v51, 16 }
  0x8a   : > { %1014 = vrot.lane.b32.xlu0 %v928_v47, %s3709_s21  ;;  %v997_v53 = vpop.permute.xlu1 %996  ;;  %v1088_v41 = vrot.slane %v4287_v57, 2 }
  0x8c   : > { %v944_v63 = vpop.permute.xlu0 %943  ;;  %790 = vrot.lane.b32.xlu1 %v704_v11, %s3711_s25 }
  0x8d   : > { %v1334_v35 = vsel %vm1203_vm6, %v4002_v10, %v944_v63  ;;  %v1089_v10 = vrot.slane %v4284_v32, 3 }
  0x8e   : > { %1144 = vrot.lane.b32.xlu0 %v1083_v54, %s3711_s25  ;;  %v720_v3 = vpop.permute.xlu1 %719  ;;  %v4310_v54 = vld [vmem:[%s3789_s16 + $0x78] sm:$0xff]  }
  0x8f   : > { %v1191_v43 = vrot.slane %v4310_v54, 3 }
  0x90   : > { %v946_v14 = vpop.permute.xlu0 %945  ;;  %662 = vrot.lane.b32.xlu1 %v585_v17, %s3710_s22  ;;  %v708_v17 = vsel %vm681_vm1, %v705_v20, %v707_v48  ;;  %v4330_v20 = vshrl.u32 %v4310_v54, 16 }
  0x91   : > { %v1337_v23 = vsel %vm1203_vm6, %v4005_v12, %v946_v14 }
  0x92   : > { %963 = vrot.lane.b32.xlu0 %v928_v47, %s3710_s22  ;;  %v773_v18 = vpop.permute.xlu1 %772 }
  0x94   : > { %v999_v24 = vpop.permute.xlu0 %998  ;;  %739 = vrot.lane.b32.xlu1 %v704_v11, %s3709_s21 }
  0x95   : > { %v1389_v63 = vsel %vm1240_vm7, %v1337_v23, %v999_v24 }
  0x96   : > { %1016 = vrot.lane.b32.xlu0 %v930_v59, %s3709_s21  ;;  %v722_v15 = vpop.permute.xlu1 %721 }
  0x98   : > { %v643_v33 = vpop.permute.xlu0 %642  ;;  %792 = vrot.lane.b32.xlu1 %v706_v28, %s3711_s25 }
  0x99   : > { %v1205_v56 = vsel %vm1203_vm6, %v3826_v27, %v643_v33  ;;  %v1387_v27 = vsel %vm1240_vm7, %v1334_v35, %v997_v53  ;;  %v1090_v53 = vor.u32 %v1089_v10, %v1088_v41  ;;  %v933_v33 = vrot.slane %v4310_v54, 2 }
  0x9a   : > { %1146 = vrot.lane.b32.xlu0 %v1087_v19, %s3711_s25  ;;  %v645_v39 = vpop.permute.xlu1 %644  ;;  %v1242_v29 = vsel %vm1240_vm7, %v1205_v56, %v720_v3  ;;  %v4317_v3 = vld [vmem:[%s3789_s16 + $0x80] sm:$0xff]   ;;  %v601_v19 = vsel %vm493_vm2, %v596_v5, %v600_v44 }
  0x9b   : > { %v1279_v11 = vsel %vm1277_vm8, %v1242_v29, %v773_v18  ;;  %v1207_v12 = vsel %vm1203_vm6, %v3822_v22, %v645_v39  ;;  %v1091_v18 = vsel %vm1035_vm3, %v1086_v21, %v1090_v53  ;;  %v1193_v22 = vrot.slane %v4317_v3, 3 }
  0x9c   : > { %v1127_v42 = vpop.permute.xlu0 %1126  ;;  %664 = vrot.lane.b32.xlu1 %v593_v7, %s3710_s22  ;;  %v1244_v31 = vsel %vm1240_vm7, %v1207_v12, %v722_v15  ;;  %v1092_v15 = vrot.slane %v4330_v20, 2  ;;  %v709_v39 = vrot.slane %v4246_v51, 1  ;;  %v935_v5 = vrot.slane %v4317_v3, 2 }
  0x9d   : > { %v1423_v47 = vsel %vm1277_vm8, %v1387_v27, %v1127_v42  ;;  %v1194_v21 = vsel %vm1165_vm5, %v1191_v43, %v1193_v22  ;;  %v934_v42 = vsel %vm905_vm0, %v931_v30, %v933_v33 }
  0x9e   : > { %965 = vrot.lane.b32.xlu0 %v930_v59, %s3710_s22  ;;  %1709 = vmatprep.mubr.bf16.mxu0 %v1423_v47  ;;  %v775_v16 = vpop.permute.xlu1 %774  ;;  %v4327_v59 = vshll.u32 %v4310_v54, 16 }
  0x9f   : > { %1710 = vmatmul.mubr.bf16.vlgmr.msra.gmra.mrb[0].mxu0 %v1279_v11  ;;  %v1282_v4 = vsel %vm1277_vm8, %v1244_v31, %v775_v16  ;;  %v604_v16 = vor.u32 %v4258_v60, %v600_v44 }
  0xa0   : > { %v1129_v0 = vpop.permute.xlu0 %1128  ;;  %741 = vrot.lane.b32.xlu1 %v706_v28, %s3709_s21  ;;  %v1192_v28 = vsel %vm1165_vm5, %v1189_v62, %v1191_v43  ;;  %v1093_v35 = vrot.slane %v4327_v59, 3 }
  0xa1   : > { %v1426_v34 = vsel %vm1277_vm8, %v1389_v63, %v1129_v0  ;;  %3547 = vmatprep.mubr.msk.bf16.mxu1 %vm1203_vm6, %v1192_v28  ;;  %v4368_v0 = vshll.u32 %v4317_v3, 16 }
  0xa2   : > { %1018 = vrot.lane.b32.xlu0 %v932_v50, %s3709_s21  ;;  %1717 = vmatprep.mubr.bf16.mxu0 %v1426_v34  ;;  %v647_v14 = vpop.permute.xlu1 %646  ;;  %v1094_v27 = vor.u32 %v1093_v35, %v1092_v15  ;;  %v4371_v34 = vshrl.u32 %v4317_v3, 16 }
  0xa3   : > { %3548 = vmatmul.mubr.msk.bf16.gmra.mrb[24].mxu1 %vm1203_vm6, %v1194_v21  ;;  %v1209_v7 = vsel %vm1203_vm6, %v3805_v9, %v647_v14  ;;  %v3679_v14 = vld [vmem:[%s3789_s16 + $0x18] sm:$0xff]  }
  0xa4   : > { %v948_v24 = vpop.permute.xlu0 %947  ;;  %794 = vrot.lane.b32.xlu1 %v708_v17, %s3711_s25  ;;  %v1095_v63 = vsel %vm1035_vm3, %v1090_v53, %v1094_v27  ;;  %v1096_v44 = vrot.slane %v4371_v34, 2  ;;  %v1097_v53 = vrot.slane %v4368_v0, 3 }
  0xa5   : > { %v1340_v29 = vsel %vm1203_vm6, %v4050_v38, %v948_v24  ;;  %v710_v38 = vsel %vm681_vm1, %v707_v48, %v709_v39  ;;  %v711_v24 = vrot.slane %v4310_v54, 1 }
  0xa6   : > { %1148 = vrot.lane.b32.xlu0 %v1091_v18, %s3711_s25  ;;  %v724_v62 = vpop.permute.xlu1 %723 }
  0xa7   : > { %1718 = vmatmul.mubr.bf16.gmra.mrb[4].mxu0 %v1282_v4  ;;  %v1246_v41 = vsel %vm1240_vm7, %v1209_v7, %v724_v62  ;;  %v936_v4 = vsel %vm905_vm0, %v933_v33, %v935_v5  ;;  %v4389_v62 = vld [vmem:[%s3789_s16 + $0x88] sm:$0xff]  }
  0xa8   : > { %v1001_v56 = vpop.permute.xlu0 %1000  ;;  %666 = vrot.lane.b32.xlu1 %v601_v19, %s3710_s22  ;;  %v1098_v19 = vor.u32 %v1097_v53, %v1096_v44  ;;  %v713_v44 = vrot.slane %v4317_v3, 1 }
  0xa9   : > { %v1391_v47 = vsel %vm1240_vm7, %v1340_v29, %v1001_v56  ;;  %v4396_v29 = vld [vmem:[%s3789_s16 + $0x90] sm:$0xff]  }
  0xaa   : > { %967 = vrot.lane.b32.xlu0 %v932_v50, %s3710_s22  ;;  %v777_v10 = vpop.permute.xlu1 %776  ;;  %v608_v50 = vrot.slane %v4284_v32, 1 }
  0xab   : > { %v1285_v23 = vsel %vm1277_vm8, %v1246_v41, %v777_v10  ;;  %v616_v41 = vrot.slane %v4327_v59, 1  ;;  %v1195_v10 = vrot.slane %v4389_v62, 3 }
  0xac   : > { %v1131_v11 = vpop.permute.xlu0 %1130  ;;  %743 = vrot.lane.b32.xlu1 %v708_v17, %s3709_s21  ;;  %v609_v48 = vsel %vm493_vm2, %v604_v16, %v608_v50  ;;  %v612_v33 = vor.u32 %v4287_v57, %v608_v50 }
  0xad   : > { %v1429_v9 = vsel %vm1277_vm8, %v1391_v47, %v1131_v11  ;;  %v1099_v47 = vsel %vm1035_vm3, %v1094_v27, %v1098_v19  ;;  %v4405_v11 = vshll.u32 %v4389_v62, 16 }
  0xae   : > { %1020 = vrot.lane.b32.xlu0 %v934_v42, %s3709_s21  ;;  %1725 = vmatprep.mubr.bf16.mxu0 %v1429_v9  ;;  %v649_v30 = vpop.permute.xlu1 %648  ;;  %v1197_v9 = vrot.slane %v4396_v29, 3  ;;  %v617_v16 = vsel %vm493_vm2, %v612_v33, %v616_v41  ;;  %v885_v33 = vshrl.u32 %v4396_v29, 16 }
  0xaf   : > { %1726 = vmatmul.mubr.bf16.gmra.mrb[8].mxu0 %v1285_v23  ;;  %v1211_v18 = vsel %vm1203_vm6, %v3679_v14, %v649_v30  ;;  %v4408_v23 = vshrl.u32 %v4389_v62, 16  ;;  %v937_v30 = vrot.slane %v4389_v62, 2 }
  0xb0   : > { %v950_v17 = vpop.permute.xlu0 %949  ;;  %796 = vrot.lane.b32.xlu1 %v710_v38, %s3711_s25  ;;  %v1198_v27 = vsel %vm1165_vm5, %v1195_v10, %v1197_v9 }
  0xb1   : > { %v1343_v28 = vsel %vm1203_vm6, %v4077_v52, %v950_v17  ;;  %v712_v52 = vsel %vm681_vm1, %v709_v39, %v711_v24 }
  0xb2   : > { %1150 = vrot.lane.b32.xlu0 %v1095_v63, %s3711_s25  ;;  %v726_v12 = vpop.permute.xlu1 %725  ;;  %v1100_v63 = vrot.slane %v4408_v23, 2 }
  0xb3   : > { %v1248_v31 = vsel %vm1240_vm7, %v1211_v18, %v726_v12  ;;  %v938_v18 = vsel %vm905_vm0, %v935_v5, %v937_v30 }
  0xb4   : > { %v1003_v43 = vpop.permute.xlu0 %1002  ;;  %668 = vrot.lane.b32.xlu1 %v609_v48, %s3710_s22  ;;  %v3680_v48 = vld [vmem:[%s3789_s16 + $0x20] sm:$0xff]  }
  0xb5   : > { %v1393_v15 = vsel %vm1240_vm7, %v1343_v28, %v1003_v43 }
  0xb6   : > { %969 = vrot.lane.b32.xlu0 %v934_v42, %s3710_s22  ;;  %v779_v21 = vpop.permute.xlu1 %778 }
  0xb7   : > { %v1288_v56 = vsel %vm1277_vm8, %v1248_v31, %v779_v21 }
  0xb8   : > { %v1133_v35 = vpop.permute.xlu0 %1132  ;;  %745 = vrot.lane.b32.xlu1 %v710_v38, %s3709_s21  ;;  %v1196_v38 = vsel %vm1165_vm5, %v1193_v22, %v1195_v10  ;;  %v1101_v22 = vrot.slane %v4405_v11, 3 }
  0xb9   : > { %v1432_v7 = vsel %vm1277_vm8, %v1393_v15, %v1133_v35  ;;  %3551 = vmatprep.mubr.msk.bf16.mxu1 %vm1203_vm6, %v1196_v38  ;;  %v620_v35 = vor.u32 %v4330_v20, %v616_v41  ;;  %v3681_v38 = vld [vmem:[%s3789_s16 + $0x28] sm:$0xff]  }
  0xba   : > { %1022 = vrot.lane.b32.xlu0 %v936_v4, %s3709_s21  ;;  %1733 = vmatprep.mubr.bf16.mxu0 %v1432_v7  ;;  %v651_v42 = vpop.permute.xlu1 %650  ;;  %v1102_v28 = vor.u32 %v1101_v22, %v1100_v63 }
  0xbb   : > { %1734 = vmatmul.mubr.bf16.gmra.mrb[12].mxu0 %v1288_v56  ;;  %3552 = vmatmul.mubr.msk.bf16.gmra.mrb[28].mxu1 %vm1203_vm6, %v1198_v27  ;;  %v1213_v12 = vsel %vm1203_vm6, %v3680_v48, %v651_v42  ;;  %v624_v56 = vrot.slane %v4368_v0, 1  ;;  %v4449_v42 = vrot.slane %v4396_v29, 2 }
  0xbc   : > { %v952_v39 = vpop.permute.xlu0 %951  ;;  %798 = vrot.lane.b32.xlu1 %v712_v52, %s3711_s25  ;;  %v1103_v7 = vsel %vm1035_vm3, %v1098_v19, %v1102_v28 }
  0xbd   : > { %v1346_v53 = vsel %vm1203_vm6, %v4090_v45, %v952_v39  ;;  %v714_v45 = vsel %vm681_vm1, %v711_v24, %v713_v44  ;;  %v625_v24 = vsel %vm493_vm2, %v620_v35, %v624_v56 }
  0xbe   : > { %1152 = vrot.lane.b32.xlu0 %v1099_v47, %s3711_s25  ;;  %v728_v50 = vpop.permute.xlu1 %727  ;;  %v1104_v47 = vrot.slane %v885_v33, 2 }
  0xbf   : > { %v1250_v43 = vsel %vm1240_vm7, %v1213_v12, %v728_v50  ;;  %v4468_v12 = vld [vmem:[%s3789_s16 + $0x98] sm:$0xff]  }
  0xc0   : > { %v1005_v17 = vpop.permute.xlu0 %1004  ;;  %670 = vrot.lane.b32.xlu1 %v617_v16, %s3710_s22  ;;  %v4460_v16 = vrot.slane %v4389_v62, 1  ;;  %v1109_v35 = vshrl.u32 %v4468_v12, 16 }
  0xc1   : > { %v1395_v31 = vsel %vm1240_vm7, %v1346_v53, %v1005_v17  ;;  %v940_v17 = vsel %vm905_vm0, %v937_v30, %v4449_v42  ;;  %v628_v30 = vor.u32 %v4371_v34, %v624_v56 }
  0xc2   : > { %971 = vrot.lane.b32.xlu0 %v936_v4, %s3710_s22  ;;  %v781_v14 = vpop.permute.xlu1 %780 }
  0xc3   : > { %v1291_v15 = vsel %vm1277_vm8, %v1250_v43, %v781_v14 }
  0xc4   : > { %v1135_v21 = vpop.permute.xlu0 %1134  ;;  %747 = vrot.lane.b32.xlu1 %v712_v52, %s3709_s21  ;;  %v888_v52 = vshll.u32 %v4396_v29, 16 }
  0xc5   : > { %v1435_v4 = vsel %vm1277_vm8, %v1395_v31, %v1135_v21  ;;  %v4475_v31 = vld [vmem:[%s3789_s16 + $0xa0] ss:$0 sps:$4 sm:$0x77]   ;;  %v632_v21 = vrot.slane %v4405_v11, 1 }
  0xc6   : > { %1024 = vrot.lane.b32.xlu0 %v938_v18, %s3709_s21  ;;  %1741 = vmatprep.mubr.bf16.mxu0 %v1435_v4  ;;  %v653_v5 = vpop.permute.xlu1 %652  ;;  %v1105_v19 = vrot.slane %v888_v52, 3 }
  0xc7   : > { %1742 = vmatmul.mubr.bf16.gmra.mrb[16].mxu0 %v1291_v15  ;;  %v1215_v27 = vsel %vm1203_vm6, %v3681_v38, %v653_v5  ;;  %v1199_v15 = vrot.slane %v4468_v12, 3  ;;  %v1112_v5 = vshll.u32 %v4468_v12, 16  ;;  %v3682_v38 = vld [vmem:[%s3789_s16 + $0x30] sm:$0xff]  }
  0xc8   : > { %v954_v10 = vpop.permute.xlu0 %953  ;;  %800 = vrot.lane.b32.xlu1 %v714_v45, %s3711_s25  ;;  %v1106_v48 = vor.u32 %v1105_v19, %v1104_v47  ;;  %v992_v47 = vrot.slane %v4468_v12, 2  ;;  %v1111_v19 = vrot.slane %v1109_v35, 2 }
  0xc9   : > { %v1349_v50 = vsel %vm1203_vm6, %v4106_v13, %v954_v10  ;;  %v716_v13 = vsel %vm681_vm1, %v713_v44, %v4460_v16  ;;  %v1200_v44 = vsel %vm1165_vm5, %v1197_v9, %v1199_v15 }
  0xca   : > { %1154 = vrot.lane.b32.xlu0 %v1103_v7, %s3711_s25  ;;  %v730_v41 = vpop.permute.xlu1 %729  ;;  %v1201_v7 = vrot.slane %v4475_v31, 3  ;;  %3555 = vmatprep.mubr.msk.bf16.mxu1 %vm1203_vm6, %v1200_v44  ;;  %v993_v12 = vsel %vm905_vm0, %v4449_v42, %v992_v47  ;;  %v3674_v44 = vld [vmem:[%s3789_s16 + $0xa0] ss:$0 sps:$4 sm:$0x33]  }
  0xcb   : > { %v1252_v63 = vsel %vm1240_vm7, %v1215_v27, %v730_v41 }
  0xcc   : > { %v1007_v39 = vpop.permute.xlu0 %1006  ;;  %672 = vrot.lane.b32.xlu1 %v625_v24, %s3710_s22  ;;  %v1202_v56 = vsel %vm1165_vm5, %v1199_v15, %v1201_v7  ;;  %v3672_v24 = vld [vmem:[%s3789_s16 + $0x90] ss:$0 sps:$4 sm:$0x11]  }
  0xcd   : > { %v1397_v53 = vsel %vm1240_vm7, %v1349_v50, %v1007_v39  ;;  %3556 = vmatmul.mubr.msk.bf16.gmra.mrb[32].mxu1 %vm1203_vm6, %v1202_v56  ;;  %v1114_v39 = vrot.slane %v1112_v5, 3  ;;  %v768_v50 = vrot.slane %v4396_v29, 1  ;;  %v1121_v56 = vshll.u32 %v4475_v31, 16 }
  0xce   : > { %973 = vrot.lane.b32.xlu0 %v938_v18, %s3710_s22  ;;  %v783_v22 = vpop.permute.xlu1 %782 }
  0xcf   : > { %v1294_v14 = vsel %vm1277_vm8, %v1252_v63, %v783_v22  ;;  %v638_v63 = vshll.u32 %v3672_v24, 16 }
  0xd0   : > { %v1137_v43 = vpop.permute.xlu0 %1136  ;;  %749 = vrot.lane.b32.xlu1 %v714_v45, %s3709_s21  ;;  %v1107_v45 = vsel %vm1035_vm3, %v1102_v28, %v1106_v48  ;;  %v633_v28 = vsel %vm493_vm2, %v628_v30, %v632_v21 }
  0xd1   : > { %v1438_v18 = vsel %vm1277_vm8, %v1397_v53, %v1137_v43  ;;  %v640_v35 = vrot.slane %v638_v63, 1 }
  0xd2   : > { %1026 = vrot.lane.b32.xlu0 %v940_v17, %s3709_s21  ;;  %1749 = vmatprep.mubr.bf16.mxu0 %v1438_v18  ;;  %v655_v4 = vpop.permute.xlu1 %654  ;;  %v4509_v18 = vld [vmem:[%s3789_s16 + $0x98] ss:$0 sps:$4 sm:$0x33]  }
  0xd3   : > { %1750 = vmatmul.mubr.bf16.gmra.mrb[20].mxu0 %v1294_v14  ;;  %v1217_v27 = vsel %vm1203_vm6, %v3682_v38, %v655_v4  ;;  %v1115_v14 = vor.u32 %v1114_v39, %v1111_v19  ;;  %v3675_v19 = vld [vmem:[%s3789_s16 + $0x98] ss:$0 sps:$4 sm:$0x11]  }
  0xd4   : > { %v956_v10 = vpop.permute.xlu0 %955  ;;  %802 = vrot.lane.b32.xlu1 %v716_v13, %s3711_s25 }
  0xd5   : > { %v1352_v22 = vsel %vm1203_vm6, %v4130_v46, %v956_v10  ;;  %v769_v46 = vsel %vm681_vm1, %v4460_v16, %v768_v50  ;;  %v1116_v7 = vsel %vm1035_vm3, %v1106_v48, %v1115_v14  ;;  %v941_v10 = vrot.slane %v4509_v18, 2 }
  0xd6   : > { %1156 = vrot.lane.b32.xlu0 %v1107_v45, %s3711_s25  ;;  %v732_v41 = vpop.permute.xlu1 %731  ;;  %v636_v45 = vor.u32 %v4408_v23, %v632_v21 }
  0xd7   : > { %v1254_v53 = vsel %vm1240_vm7, %v1217_v27, %v732_v41  ;;  %v717_v41 = vrot.slane %v3672_v24, 1  ;;  %v942_v48 = vsel %vm905_vm0, %v4449_v42, %v941_v10  ;;  %v1123_v27 = vrot.slane %v1121_v56, 3 }
  0xd8   : > { %v1009_v9 = vpop.permute.xlu0 %1008  ;;  %674 = vrot.lane.b32.xlu1 %v633_v28, %s3710_s22  ;;  %v641_v21 = vsel %vm493_vm2, %v636_v45, %v640_v35  ;;  %v770_v24 = vrot.slane %v3675_v19, 1 }
  0xd9   : > { %v1399_v30 = vsel %vm1240_vm7, %v1352_v22, %v1009_v9  ;;  %v994_v9 = vrot.slane %v3674_v44, 2 }
  0xda   : > { %975 = vrot.lane.b32.xlu0 %v940_v17, %s3710_s22  ;;  %v785_v43 = vpop.permute.xlu1 %784 }
  0xdb   : > { %v1297_v17 = vsel %vm1277_vm8, %v1254_v53, %v785_v43  ;;  %v718_v53 = vsel %vm681_vm1, %v4460_v16, %v717_v41 }
  0xdc   : > { %v1139_v15 = vpop.permute.xlu0 %1138  ;;  %751 = vrot.lane.b32.xlu1 %v716_v13, %s3709_s21  ;;  %v1118_v13 = vshrl.u32 %v4475_v31, 16  ;;  %v3683_v31 = vld [vmem:[%s3789_s16 + $0x38] sm:$0xff]   ;;  %s4895_s16 = scalar_lea.vmem %s5012_s8, %s3600_s10 }
  0xdd   : > { %v1441_v4 = vsel %vm1277_vm8, %v1399_v30, %v1139_v15  ;;  %v995_v30 = vsel %vm905_vm0, %v992_v47, %v994_v9 }
  0xde   : > { %1028 = vrot.lane.b32.xlu0 %v993_v12, %s3709_s21  ;;  %1757 = vmatprep.mubr.bf16.mxu0 %v1441_v4  ;;  %v657_v5 = vpop.permute.xlu1 %656  ;;  %v1120_v38 = vrot.slane %v1118_v13, 2 }
  0xdf   : > { %1758 = vmatmul.mubr.bf16.gmra.mrb[24].mxu0 %v1297_v17  ;;  %v1219_v22 = vsel %vm1203_vm6, %v3683_v31, %v657_v5 }
  0xe0   : > { %v958_v28 = vpop.permute.xlu0 %957  ;;  %804 = vrot.lane.b32.xlu1 %v769_v46, %s3711_s25  ;;  %v1124_v15 = vor.u32 %v1123_v27, %v1120_v38 }
  0xe1   : > { %v1355_v43 = vsel %vm1203_vm6, %v4147_v40, %v958_v28  ;;  %v771_v40 = vsel %vm681_vm1, %v768_v50, %v770_v24  ;;  %v861_v24 = vrot.slane %v4226_v36, 2 }
  0xe2   : > { %1158 = vrot.lane.b32.xlu0 %v1116_v7, %s3711_s25  ;;  %v734_v39 = vpop.permute.xlu1 %733  ;;  %v1125_v35 = vsel %vm1035_vm3, %v1115_v14, %v1124_v15 }
  0xe3   : > { %v1256_v42 = vsel %vm1240_vm7, %v1219_v22, %v734_v39 }
  0xe4   : > { %v1011_v63 = vpop.permute.xlu0 %1010  ;;  %676 = vrot.lane.b32.xlu1 %v641_v21, %s3710_s22 }
  0xe5   : > { %v1401_v17 = vsel %vm1240_vm7, %v1355_v43, %v1011_v63 }
  0xe6   : > { %977 = vrot.lane.b32.xlu0 %v942_v48, %s3710_s22  ;;  %v787_v12 = vpop.permute.xlu1 %786 }
  0xe7   : > { %v1300_v46 = vsel %vm1277_vm8, %v1256_v42, %v787_v12 }
  0xe8   : > { %v1141_v4 = vpop.permute.xlu0 %1140  ;;  %753 = vrot.lane.b32.xlu1 %v718_v53, %s3709_s21  ;;  %v860_v53 = vrot.slane %v4229_v1, 1 }
  0xe9   : > { %v1444_v45 = vsel %vm1277_vm8, %v1401_v17, %v1141_v4 }
  0xea   : > { %1030 = vrot.lane.b32.xlu0 %v995_v30, %s3709_s21  ;;  %1765 = vmatprep.mubr.bf16.mxu0 %v1444_v45  ;;  %v659_v16 = vpop.permute.xlu1 %658  ;;  %v862_v42 = vor.u32 %v861_v24, %v860_v53 }
  0xeb   : > { %1766 = vmatmul.mubr.bf16.gmra.mrb[28].mxu0 %v1300_v46  ;;  %v1221_v10 = vsel %vm1203_vm6, %v4047_v37, %v659_v16  ;;  %v3677_v37 = vld [vmem:[%s5008_s4] sm:$0xff]  }
  0xec   : > { %v960_v47 = vpop.permute.xlu0 %959  ;;  %806 = vrot.lane.b32.xlu1 %v771_v40, %s3711_s25  ;;  %3559 = vmatprep.subr.bf16.mxu1 %v3677_v37  ;;  %v863_v1 = vsel %vm811_vm4, %v4206_v26, %v862_v42 }
  0xed   : > { %v1358_v44 = vsel %vm1203_vm6, %v4171_v58, %v960_v47  ;;  %3560 = vmatpush3.bf16.msra.mxu1 %v3677_v37  ;;  %v865_v47 = vrot.slane %v4255_v55, 2 }
  0xee   : > { %1160 = vrot.lane.b32.xlu0 %v1125_v35, %s3711_s25  ;;  %v736_v5 = vpop.permute.xlu1 %735  ;;  %v864_v35 = vrot.slane %v4258_v60, 1 }
  0xef   : > { %v1258_v13 = vsel %vm1240_vm7, %v1221_v10, %v736_v5 }
  0xf0   : > { %v1013_v7 = vpop.permute.xlu0 %1012 }
  0xf1   : > { %v1403_v56 = vsel %vm1240_vm7, %v1358_v44, %v1013_v7 }
  0xf2   : > { %v789_v50 = vpop.permute.xlu1 %788 }
  0xf3   : > { %v1303_v14 = vsel %vm1277_vm8, %v1258_v13, %v789_v50 }
  0xf4   : > { %v1143_v28 = vpop.permute.xlu0 %1142 }
  0xf5   : > { %v1447_v21 = vsel %vm1277_vm8, %v1403_v56, %v1143_v28 }
  0xf6   : > { %1773 = vmatprep.mubr.bf16.mxu0 %v1447_v21  ;;  %v661_v41 = vpop.permute.xlu1 %660 }
  0xf7   : > { %1774 = vmatmul.mubr.bf16.gmra.mrb[32].mxu0 %v1303_v14  ;;  %v1223_v58 = vsel %vm1203_vm6, %v4103_v8, %v661_v41  ;;  %v3678_v8 = vld [vmem:[%s5008_s4 + $0x8] sm:$0xff]   ;;  %v868_v41 = vrot.slane %v4287_v57, 1 }
  0xf8   : > { %v962_v19 = vpop.permute.xlu0 %961  ;;  %3561 = vmatprep.subr.bf16.mxu1 %v3678_v8 }
  0xf9   : > { %v1361_v9 = vsel %vm1203_vm6, %v4213_v6, %v962_v19  ;;  %3562 = vmatpush3.bf16.msra.mxu1 %v3678_v8  ;;  %v869_v19 = vrot.slane %v4284_v32, 2 }
  0xfa   : > { %v738_v39 = vpop.permute.xlu1 %737 }
  0xfb   : > { %v1260_v38 = vsel %vm1240_vm7, %v1223_v58, %v738_v39 }
  0xfc   : > { %v1015_v48 = vpop.permute.xlu0 %1014 }
  0xfd   : > { %v1405_v63 = vsel %vm1240_vm7, %v1361_v9, %v1015_v48 }
  0xfe   : > { %v791_v27 = vpop.permute.xlu1 %790 }
  0xff   : > { %v1306_v22 = vsel %vm1277_vm8, %v1260_v38, %v791_v27 }
 0x100   : > { %v1145_v31 = vpop.permute.xlu0 %1144 }
 0x101   : > { %v1450_v43 = vsel %vm1277_vm8, %v1405_v63, %v1145_v31 }
 0x102   : > { %1781 = vmatprep.mubr.bf16.mxu0 %v1450_v43  ;;  %v663_v6 = vpop.permute.xlu1 %662 }
 0x103   : > { %1782 = vmatmul.mubr.bf16.gmra.mrb[36].mxu0 %v1306_v22  ;;  %v1225_v36 = vsel %vm1203_vm6, %v4117_v25, %v663_v6  ;;  %v866_v25 = vor.u32 %v865_v47, %v864_v35 }
 0x104   : > { %v964_v12 = vpop.permute.xlu0 %963 }
 0x105   : > { %v1364_v17 = vsel %vm1203_vm6, %v863_v1, %v964_v12  ;;  %v867_v44 = vsel %vm811_vm4, %v862_v42, %v866_v25  ;;  %v872_v42 = vrot.slane %v4330_v20, 1  ;;  %v873_v12 = vrot.slane %v4327_v59, 2 }
 0x106   : > { %v740_v30 = vpop.permute.xlu1 %739 }
 0x107   : > { %v1262_v4 = vsel %vm1240_vm7, %v1225_v36, %v740_v30 }
 0x108   : > { %v1017_v15 = vpop.permute.xlu0 %1016  ;;  %v4594_v58 = vpop.f32.mrb[0].mxu1 }
 0x109   : > { %v1407_v45 = vsel %vm1240_vm7, %v1364_v17, %v1017_v15  ;;  %v4596_v9 = vpop.f32.mrb[1].mxu1 }
 0x10a   : > { %v793_v46 = vpop.permute.xlu1 %792  ;;  %v4598_v38 = vpop.f32.mrb[2].mxu1 }
 0x10b   : > { %v1309_v16 = vsel %vm1277_vm8, %v1262_v4, %v793_v46  ;;  %v4600_v63 = vpop.f32.mrb[3].mxu1  ;;  %v874_v4 = vor.u32 %v873_v12, %v872_v42 }
 0x10c   : > { %v1147_v40 = vpop.permute.xlu0 %1146 }
 0x10d   : > { %v1453_v26 = vsel %vm1277_vm8, %v1407_v45, %v1147_v40 }
 0x10e   : > { %1789 = vmatprep.mubr.bf16.mxu0 %v1453_v26  ;;  %v665_v5 = vpop.permute.xlu1 %664 }
 0x10f   : > { %1790 = vmatmul.mubr.bf16.gmra.mrb[40].mxu0 %v1309_v16  ;;  %v1227_v50 = vsel %vm1203_vm6, %v4177_v61, %v665_v5  ;;  %v870_v61 = vor.u32 %v869_v19, %v868_v41 }
 0x110   : > { %v966_v7 = vpop.permute.xlu0 %965 }
 0x111   : > { %v1367_v56 = vsel %vm1203_vm6, %v867_v44, %v966_v7  ;;  %v871_v57 = vsel %vm811_vm4, %v866_v25, %v870_v61  ;;  %v875_v20 = vsel %vm811_vm4, %v870_v61, %v874_v4 }
 0x112   : > { %v742_v10 = vpop.permute.xlu1 %741 }
 0x113   : > { %v1264_v60 = vsel %vm1240_vm7, %v1227_v50, %v742_v10  ;;  %v876_v50 = vrot.slane %v4371_v34, 1 }
 0x114   : > { %v1019_v13 = vpop.permute.xlu0 %1018 }
 0x115   : > { %v1409_v55 = vsel %vm1240_vm7, %v1367_v56, %v1019_v13  ;;  %v877_v56 = vrot.slane %v4368_v0, 2 }
 0x116   : > { %v795_v28 = vpop.permute.xlu1 %794 }
 0x117   : > { %v1312_v21 = vsel %vm1277_vm8, %v1264_v60, %v795_v28  ;;  %v878_v28 = vor.u32 %v877_v56, %v876_v50  ;;  %v897_v56 = vshll.u32 %v4509_v18, 16 }
 0x118   : > { %v1149_v14 = vpop.permute.xlu0 %1148  ;;  %v4611_v30 = vpop.f32.mrb[4].mxu1 }
 0x119   : > { %v1456_v39 = vsel %vm1277_vm8, %v1409_v55, %v1149_v14  ;;  %v4614_v15 = vpop.f32.mrb[5].mxu1  ;;  %v879_v34 = vsel %vm811_vm4, %v874_v4, %v878_v28 }
 0x11a   : > { %1797 = vmatprep.mubr.bf16.mxu0 %v1456_v39  ;;  %v667_v48 = vpop.permute.xlu1 %666 }
 0x11b   : > { %1798 = vmatmul.mubr.bf16.gmra.mrb[44].mxu0 %v1312_v21  ;;  %v1229_v32 = vsel %vm1203_vm6, %v4184_v2, %v667_v48  ;;  %v4616_v2 = vpop.f32.mrb[6].mxu1 }
 0x11c   : > { %v968_v37 = vpop.permute.xlu0 %967  ;;  %v4618_v17 = vpop.f32.mrb[7].mxu1 }
 0x11d   : > { %v1370_v22 = vsel %vm1203_vm6, %v871_v57, %v968_v37 }
 0x11e   : > { %v744_v27 = vpop.permute.xlu1 %743 }
 0x11f   : > { %v1266_v53 = vsel %vm1240_vm7, %v1229_v32, %v744_v27 }
 0x120   : > { %v1021_v31 = vpop.permute.xlu0 %1020  ;;  %v4621_v59 = vpop.f32.mrb[8].mxu1 }
 0x121   : > { %v1411_v43 = vsel %vm1240_vm7, %v1370_v22, %v1021_v31  ;;  %v4623_v16 = vpop.f32.mrb[9].mxu1  ;;  %v880_v22 = vrot.slane %v4408_v23, 1 }
 0x122   : > { %v797_v24 = vpop.permute.xlu1 %796  ;;  %v4627_v47 = vpop.f32.mrb[10].mxu1 }
 0x123   : > { %v1315_v6 = vsel %vm1277_vm8, %v1266_v53, %v797_v24  ;;  %v4631_v7 = vpop.f32.mrb[11].mxu1  ;;  %v881_v53 = vrot.slane %v4405_v11, 2 }
 0x124   : > { %v1151_v8 = vpop.permute.xlu0 %1150 }
 0x125   : > { %v1459_v1 = vsel %vm1277_vm8, %v1411_v43, %v1151_v8 }
 0x126   : > { %1805 = vmatprep.mubr.bf16.mxu0 %v1459_v1  ;;  %v669_v36 = vpop.permute.xlu1 %668 }
 0x127   : > { %1806 = vmatmul.mubr.bf16.gmra.mrb[48].mxu0 %v1315_v6  ;;  %v1231_v35 = vsel %vm1203_vm6, %v4242_v49, %v669_v36 }
 0x128   : > { %v970_v46 = vpop.permute.xlu0 %969  ;;  %v4638_v14 = vpop.f32.mrb[12].mxu1 }
 0x129   : > { %v1373_v26 = vsel %vm1203_vm6, %v875_v20, %v970_v46  ;;  %v4640_v21 = vpop.f32.mrb[13].mxu1  ;;  %v887_v20 = vrot.slane %v885_v33, 1 }
 0x12a   : > { %v746_v45 = vpop.permute.xlu1 %745  ;;  %v4642_v41 = vpop.f32.mrb[14].mxu1 }
 0x12b   : > { %v1268_v5 = vsel %vm1240_vm7, %v1231_v35, %v746_v45  ;;  %v4644_v39 = vpop.f32.mrb[15].mxu1 }
 0x12c   : > { %v1023_v40 = vpop.permute.xlu0 %1022 }
 0x12d   : > { %v1413_v10 = vsel %vm1240_vm7, %v1373_v26, %v1023_v40  ;;  %v890_v40 = vrot.slane %v888_v52, 2  ;;  %v894_v52 = vshrl.u32 %v4509_v18, 16 }
 0x12e   : > { %v799_v25 = vpop.permute.xlu1 %798 }
 0x12f   : > { %v1318_v13 = vsel %vm1277_vm8, %v1268_v5, %v799_v25 }
 0x130   : > { %v1153_v44 = vpop.permute.xlu0 %1152 }
 0x131   : > { %v1462_v49 = vsel %vm1277_vm8, %v1413_v10, %v1153_v44  ;;  %v891_v10 = vor.u32 %v890_v40, %v887_v20 }
 0x132   : > { %1813 = vmatprep.mubr.bf16.mxu0 %v1462_v49  ;;  %v671_v60 = vpop.permute.xlu1 %670 }
 0x133   : > { %1814 = vmatmul.mubr.bf16.gmra.mrb[52].mxu0 %v1318_v13  ;;  %v1233_v0 = vsel %vm1203_vm6, %v4246_v51, %v671_v60  ;;  %v882_v51 = vor.u32 %v881_v53, %v880_v22 }
 0x134   : > { %v972_v55 = vpop.permute.xlu0 %971 }
 0x135   : > { %v1376_v61 = vsel %vm1203_vm6, %v879_v34, %v972_v55  ;;  %v883_v42 = vsel %vm811_vm4, %v878_v28, %v882_v51  ;;  %v892_v33 = vsel %vm811_vm4, %v882_v51, %v891_v10 }
 0x136   : > { %v748_v19 = vpop.permute.xlu1 %747 }
 0x137   : > { %v1270_v37 = vsel %vm1240_vm7, %v1233_v0, %v748_v19  ;;  %v896_v0 = vrot.slane %v894_v52, 1 }
 0x138   : > { %v1025_v48 = vpop.permute.xlu0 %1024 }
 0x139   : > { %v1415_v57 = vsel %vm1240_vm7, %v1376_v61, %v1025_v48  ;;  %v4668_v26 = vpop.f32.mrb[16].mxu1  ;;  %v899_v61 = vrot.slane %v897_v56, 2 }
 0x13a   : > { %v801_v27 = vpop.permute.xlu1 %800 }
 0x13b   : > { %v1321_v32 = vsel %vm1277_vm8, %v1270_v37, %v801_v27  ;;  %v900_v27 = vor.u32 %v899_v61, %v896_v0 }
 0x13c   : > { %v1155_v31 = vpop.permute.xlu0 %1154 }
 0x13d   : > { %v1465_v24 = vsel %vm1277_vm8, %v1415_v57, %v1155_v31  ;;  %v901_v31 = vsel %vm811_vm4, %v891_v10, %v900_v27 }
 0x13e   : > { %1821 = vmatprep.mubr.bf16.mxu0 %v1465_v24  ;;  %v673_v43 = vpop.permute.xlu1 %672 }
 0x13f   : > { %1822 = vmatmul.mubr.bf16.gmra.mrb[56].mxu0 %v1321_v32  ;;  %v1235_v1 = vsel %vm1203_vm6, %v4310_v54, %v673_v43  ;;  %v4670_v54 = vpop.f32.mrb[17].mxu1 }
 0x140   : > { %v974_v8 = vpop.permute.xlu0 %973  ;;  %v4672_v25 = vpop.f32.mrb[18].mxu1 }
 0x141   : > { %v1379_v36 = vsel %vm1203_vm6, %v883_v42, %v974_v8  ;;  %v4674_v13 = vpop.f32.mrb[19].mxu1 }
 0x142   : > { %v750_v6 = vpop.permute.xlu1 %749 }
 0x143   : > { %v1272_v23 = vsel %vm1240_vm7, %v1235_v1, %v750_v6 }
 0x144   : > { %v1027_v12 = vpop.permute.xlu0 %1026 }
 0x145   : > { %v1417_v11 = vsel %vm1240_vm7, %v1379_v36, %v1027_v12 }
 0x146   : > { %v803_v4 = vpop.permute.xlu1 %802 }
 0x147   : > { %v1324_v45 = vsel %vm1277_vm8, %v1272_v23, %v803_v4  ;;  %v4705_v4 = vld [vmem:[%s5006_s2] ss:$0 sm:$0xff] }
 0x148   : > { %v1157_v46 = vpop.permute.xlu0 %1156 }
 0x149   : > { %v1468_v35 = vsel %vm1277_vm8, %v1417_v11, %v1157_v46 }
 0x14a   : > { %1829 = vmatprep.mubr.bf16.mxu0 %v1468_v35  ;;  %v675_v5 = vpop.permute.xlu1 %674 }
 0x14b   : > { %1830 = vmatmul.mubr.bf16.gmra.mrb[60].mxu0 %v1324_v45  ;;  %v1237_v49 = vsel %vm1203_vm6, %v4317_v3, %v675_v5  ;;  %v4711_v45 = vld [vmem:[%s5007_s3] ss:$0 sm:$0xff] }
 0x14c   : > { %v976_v44 = vpop.permute.xlu0 %975 }
 0x14d   : > { %v1382_v60 = vsel %vm1203_vm6, %v892_v33, %v976_v44 }
 0x14e   : > { %v752_v50 = vpop.permute.xlu1 %751 }
 0x14f   : > { %v1274_v28 = vsel %vm1240_vm7, %v1237_v49, %v752_v50 }
 0x150   : > { %v1029_v29 = vpop.permute.xlu0 %1028 }
 0x151   : > { %v1419_v19 = vsel %vm1240_vm7, %v1382_v60, %v1029_v29  ;;  %v4694_v12 = vpop.f32.mrb[20].mxu1 }
 0x152   : > { %v805_v55 = vpop.permute.xlu1 %804  ;;  %v4696_v1 = vpop.f32.mrb[21].mxu1 }
 0x153   : > { %v1327_v48 = vsel %vm1277_vm8, %v1274_v28, %v805_v55  ;;  %v4698_v36 = vpop.f32.mrb[22].mxu1 }
 0x154   : > { %v1159_v34 = vpop.permute.xlu0 %1158 }
 0x155   : > { %v1471_v37 = vsel %vm1277_vm8, %v1419_v19, %v1159_v34 }
 0x156   : > { %1837 = vmatprep.mubr.bf16.mxu0 %v1471_v37  ;;  %v677_v18 = vpop.permute.xlu1 %676 }
 0x157   : > { %1838 = vmatmul.mubr.bf16.gmra.mrb[64].mxu0 %v1327_v48  ;;  %v1239_v22 = vsel %vm1203_vm6, %v4389_v62, %v677_v18  ;;  %v4700_v62 = vpop.f32.mrb[23].mxu1 }
 0x158   : > { %v978_v57 = vpop.permute.xlu0 %977 }
 0x159   : > { %v1385_v53 = vsel %vm1203_vm6, %v901_v31, %v978_v57 }
 0x15a   : > { %v754_v3 = vpop.permute.xlu1 %753 }
 0x15b   : > { %v1276_v24 = vsel %vm1240_vm7, %v1239_v22, %v754_v3 }
 0x15c   : > { %v1031_v32 = vpop.permute.xlu0 %1030 }
 0x15d   : > { %v1421_v51 = vsel %vm1240_vm7, %v1385_v53, %v1031_v32 }
 0x15e   : > { %v807_v43 = vpop.permute.xlu1 %806 }
 0x15f   : > { %v1330_v6 = vsel %vm1277_vm8, %v1276_v24, %v807_v43 }
 0x160   : > { %v1161_v8 = vpop.permute.xlu0 %1160 }
 0x161   : > { %v1474_v42 = vsel %vm1277_vm8, %v1421_v51, %v1161_v8 }
 0x162   : > { %1845 = vmatprep.mubr.bf16.mxu0 %v1474_v42 }
 0x163   : > { %1846 = vmatmul.mubr.bf16.gmra.mrb[68].mxu0 %v1330_v6 }
 0x172   : > { %v1711_v23 = vpop.f32.mrb[0].mxu0 }
 0x173   : > { %v1889_v11 = vadd.f32 %v4596_v9, %v1711_v23  ;;  %v1713_v46 = vpop.f32.mrb[1].mxu0 }
 0x174   : > { %v1714_v20 = vpop.f32.mrb[2].mxu0 }
 0x175   : > { %v2039_v40 = vmul.f32 %v4705_v4, %v1889_v11  ;;  %v1892_v35 = vadd.f32 %v4600_v63, %v1714_v20  ;;  %v1716_v5 = vpop.f32.mrb[3].mxu0 }
 0x176   : > { %v4718_v33 = vpop.f32.mrb[24].mxu1 }
 0x177   : > { %v2083_v10 = vadd.f32 %v4711_v45, %v2039_v40  ;;  %v2040_v44 = vmul.f32 %v4705_v4, %v1892_v35  ;;  %v4720_v29 = vpop.f32.mrb[25].mxu1 }
 0x178   : > { %v4723_v28 = vpop.f32.mrb[26].mxu1 }
 0x179   : > { %v2084_v50 = vadd.f32 %v4711_v45, %v2040_v44  ;;  %v2119_v52 = vmax.f32 %v2083_v10, 0.0  ;;  %v4725_v55 = vpop.f32.mrb[27].mxu1 }
 0x17a   : > { %v1719_v9 = vpop.f32.mrb[4].mxu0 }
 0x17b   : > { %v2120_v56 = vmax.f32 %v2084_v50, 0.0  ;;  %v1897_v49 = vadd.f32 %v4594_v58, %v1719_v9  ;;  %v1721_v60 = vpop.f32.mrb[5].mxu0 }
 0x17c   : > { %v1722_v63 = vpop.f32.mrb[6].mxu0 }
 0x17d   : > { %v2155_v19 = vpack.c.bf16 %v2120_v56, %v2119_v52  ;;  %v2041_v34 = vmul.f32 %v4705_v4, %v1897_v49  ;;  %v1900_v48 = vadd.f32 %v4598_v38, %v1722_v63  ;;  %v1724_v0 = vpop.f32.mrb[7].mxu0 }
 0x17f   : > { %v2085_v61 = vadd.f32 %v4711_v45, %v2041_v34  ;;  %v2042_v37 = vmul.f32 %v4705_v4, %v1900_v48  ;;  %3563 = vmatprep.mubr.msk.bf16.mxu1 %vm1203_vm6, %v2155_v19 }
 0x181   : > { %v2086_v58 = vadd.f32 %v4711_v45, %v2042_v37  ;;  %v2121_v27 = vmax.f32 %v2085_v61, 0.0 }
 0x182   : > { %v1727_v18 = vpop.f32.mrb[8].mxu0 }
 0x183   : > { %v2122_v57 = vmax.f32 %v2086_v58, 0.0  ;;  %v1905_v3 = vadd.f32 %v4614_v15, %v1727_v18  ;;  %v1729_v31 = vpop.f32.mrb[9].mxu0 }
 0x184   : > { %v1730_v32 = vpop.f32.mrb[10].mxu0 }
 0x185   : > { %v2156_v22 = vpack.c.bf16 %v2122_v57, %v2121_v27  ;;  %v2043_v53 = vmul.f32 %v4705_v4, %v1905_v3  ;;  %v1908_v38 = vadd.f32 %v4618_v17, %v1730_v32  ;;  %v1732_v24 = vpop.f32.mrb[11].mxu0 }
 0x187   : > { %v2087_v43 = vadd.f32 %v4711_v45, %v2043_v53  ;;  %v2044_v51 = vmul.f32 %v4705_v4, %v1908_v38  ;;  %3564 = vmatmul.mubr.msk.bf16.vlgmr.msra.gmra.mrb[36].mxu1 %vm1203_vm6, %v2156_v22 }
 0x189   : > { %v2088_v8 = vadd.f32 %v4711_v45, %v2044_v51  ;;  %v2123_v6 = vmax.f32 %v2087_v43, 0.0 }
 0x18b   : > { %v2124_v42 = vmax.f32 %v2088_v8, 0.0 }
 0x18d   : > { %v2157_v23 = vpack.c.bf16 %v2124_v42, %v2123_v6 }
 0x18e   : > { %v1735_v15 = vpop.f32.mrb[12].mxu0  ;;  %v4744_v5 = vpop.f32.mrb[28].mxu1 }
 0x18f   : > { %v1913_v11 = vadd.f32 %v4611_v30, %v1735_v15  ;;  %v1737_v46 = vpop.f32.mrb[13].mxu0  ;;  %3567 = vmatprep.mubr.msk.bf16.mxu1 %vm1203_vm6, %v2157_v23  ;;  %v4746_v10 = vpop.f32.mrb[29].mxu1 }
 0x190   : > { %v1738_v20 = vpop.f32.mrb[14].mxu0  ;;  %v4750_v9 = vpop.f32.mrb[30].mxu1 }
 0x191   : > { %v2045_v17 = vmul.f32 %v4705_v4, %v1913_v11  ;;  %v1916_v40 = vadd.f32 %v4616_v2, %v1738_v20  ;;  %v1740_v35 = vpop.f32.mrb[15].mxu0  ;;  %v4752_v30 = vpop.f32.mrb[31].mxu1 }
 0x193   : > { %v2089_v44 = vadd.f32 %v4711_v45, %v2045_v17  ;;  %v2046_v50 = vmul.f32 %v4705_v4, %v1916_v40 }
 0x195   : > { %v2090_v52 = vadd.f32 %v4711_v45, %v2046_v50  ;;  %v2125_v56 = vmax.f32 %v2089_v44, 0.0 }
 0x197   : > { %v2126_v49 = vmax.f32 %v2090_v52, 0.0 }
 0x199   : > { %v2158_v60 = vpack.c.bf16 %v2126_v49, %v2125_v56 }
 0x19a   : > { %v1743_v63 = vpop.f32.mrb[16].mxu0 }
 0x19b   : > { %v1921_v2 = vadd.f32 %v4623_v16, %v1743_v63  ;;  %v1745_v19 = vpop.f32.mrb[17].mxu0  ;;  %3568 = vmatmul.mubr.msk.bf16.gmra.mrb[40].mxu1 %vm1203_vm6, %v2158_v60 }
 0x19c   : > { %v1746_v34 = vpop.f32.mrb[18].mxu0 }
 0x19d   : > { %v2047_v48 = vmul.f32 %v4705_v4, %v1921_v2  ;;  %v1924_v0 = vadd.f32 %v4631_v7, %v1746_v34  ;;  %v1748_v61 = vpop.f32.mrb[19].mxu0 }
 0x19f   : > { %v2091_v37 = vadd.f32 %v4711_v45, %v2047_v48  ;;  %v2048_v58 = vmul.f32 %v4705_v4, %v1924_v0 }
 0x1a0   : > { %v4766_v24 = vpop.f32.mrb[32].mxu1 }
 0x1a1   : > { %v2092_v18 = vadd.f32 %v4711_v45, %v2048_v58  ;;  %v2127_v27 = vmax.f32 %v2091_v37, 0.0  ;;  %v4768_v43 = vpop.f32.mrb[33].mxu1 }
 0x1a2   : > { %v4772_v6 = vpop.f32.mrb[34].mxu1 }
 0x1a3   : > { %v2128_v57 = vmax.f32 %v2092_v18, 0.0 }
 0x1a5   : > { %v2159_v3 = vpack.c.bf16 %v2128_v57, %v2127_v27 }
 0x1a6   : > { %v1751_v31 = vpop.f32.mrb[20].mxu0 }
 0x1a7   : > { %v1929_v16 = vadd.f32 %v4621_v59, %v1751_v31  ;;  %v1753_v32 = vpop.f32.mrb[21].mxu0  ;;  %3571 = vmatprep.mubr.msk.bf16.mxu1 %vm1203_vm6, %v2159_v3  ;;  %v4774_v59 = vpop.f32.mrb[35].mxu1 }
 0x1a8   : > { %v1754_v22 = vpop.f32.mrb[22].mxu0 }
 0x1a9   : > { %v2049_v53 = vmul.f32 %v4705_v4, %v1929_v16  ;;  %v1932_v7 = vadd.f32 %v4627_v47, %v1754_v22  ;;  %v1756_v38 = vpop.f32.mrb[23].mxu0 }
 0x1ab   : > { %v2093_v51 = vadd.f32 %v4711_v45, %v2049_v53  ;;  %v2050_v8 = vmul.f32 %v4705_v4, %v1932_v7 }
 0x1ad   : > { %v2094_v42 = vadd.f32 %v4711_v45, %v2050_v8  ;;  %v2129_v23 = vmax.f32 %v2093_v51, 0.0 }
 0x1af   : > { %v2130_v15 = vmax.f32 %v2094_v42, 0.0 }
 0x1b1   : > { %v2160_v11 = vpack.c.bf16 %v2130_v15, %v2129_v23 }
 0x1b2   : > { %v1759_v46 = vpop.f32.mrb[24].mxu0 }
 0x1b3   : > { %v1937_v47 = vadd.f32 %v4640_v21, %v1759_v46  ;;  %v1761_v20 = vpop.f32.mrb[25].mxu0  ;;  %3572 = vmatmul.mubr.msk.bf16.gmra.mrb[44].mxu1 %vm1203_vm6, %v2160_v11 }
 0x1b4   : > { %v1762_v17 = vpop.f32.mrb[26].mxu0 }
 0x1b5   : > { %v2051_v40 = vmul.f32 %v4705_v4, %v1937_v47  ;;  %v1940_v35 = vadd.f32 %v4644_v39, %v1762_v17  ;;  %v1764_v44 = vpop.f32.mrb[27].mxu0 }
 0x1b7   : > { %v2095_v50 = vadd.f32 %v4711_v45, %v2051_v40  ;;  %v2052_v52 = vmul.f32 %v4705_v4, %v1940_v35 }
 0x1b9   : > { %v2096_v56 = vadd.f32 %v4711_v45, %v2052_v52  ;;  %v2131_v49 = vmax.f32 %v2095_v50, 0.0 }
 0x1bb   : > { %v2132_v60 = vmax.f32 %v2096_v56, 0.0 }
 0x1bd   : > { %v2161_v63 = vpack.c.bf16 %v2132_v60, %v2131_v49 }
 0x1be   : > { %v1767_v2 = vpop.f32.mrb[28].mxu0 }
 0x1bf   : > { %v1945_v21 = vadd.f32 %v4638_v14, %v1767_v2  ;;  %v1769_v19 = vpop.f32.mrb[29].mxu0  ;;  %3575 = vmatprep.mubr.msk.bf16.mxu1 %vm1203_vm6, %v2161_v63 }
 0x1c0   : > { %v1770_v34 = vpop.f32.mrb[30].mxu0 }
 0x1c1   : > { %v2053_v48 = vmul.f32 %v4705_v4, %v1945_v21  ;;  %v1948_v39 = vadd.f32 %v4642_v41, %v1770_v34  ;;  %v1772_v0 = vpop.f32.mrb[31].mxu0 }
 0x1c3   : > { %v2097_v61 = vadd.f32 %v4711_v45, %v2053_v48  ;;  %v2054_v37 = vmul.f32 %v4705_v4, %v1948_v39 }
 0x1c5   : > { %v2098_v58 = vadd.f32 %v4711_v45, %v2054_v37  ;;  %v2133_v18 = vmax.f32 %v2097_v61, 0.0 }
 0x1c7   : > { %v2134_v27 = vmax.f32 %v2098_v58, 0.0 }
 0x1c9   : > { %v2162_v57 = vpack.c.bf16 %v2134_v27, %v2133_v18 }
 0x1ca   : > { %v1775_v3 = vpop.f32.mrb[32].mxu0 }
 0x1cb   : > { %v1953_v14 = vadd.f32 %v4670_v54, %v1775_v3  ;;  %v1777_v31 = vpop.f32.mrb[33].mxu0  ;;  %3576 = vmatmul.mubr.msk.bf16.gmra.mrb[48].mxu1 %vm1203_vm6, %v2162_v57 }
 0x1cc   : > { %v1778_v16 = vpop.f32.mrb[34].mxu0 }
 0x1cd   : > { %v2055_v32 = vmul.f32 %v4705_v4, %v1953_v14  ;;  %v1956_v41 = vadd.f32 %v4674_v13, %v1778_v16  ;;  %v1780_v22 = vpop.f32.mrb[35].mxu0 }
 0x1cf   : > { %v2099_v53 = vadd.f32 %v4711_v45, %v2055_v32  ;;  %v2056_v7 = vmul.f32 %v4705_v4, %v1956_v41 }
 0x1d1   : > { %v2100_v38 = vadd.f32 %v4711_v45, %v2056_v7  ;;  %v2135_v51 = vmax.f32 %v2099_v53, 0.0 }
 0x1d3   : > { %v2136_v8 = vmax.f32 %v2100_v38, 0.0 }
 0x1d5   : > { %v2163_v42 = vpack.c.bf16 %v2136_v8, %v2135_v51 }
 0x1d6   : > { %v1783_v23 = vpop.f32.mrb[36].mxu0 }
 0x1d7   : > { %v1961_v54 = vadd.f32 %v4668_v26, %v1783_v23  ;;  %v1785_v15 = vpop.f32.mrb[37].mxu0  ;;  %3579 = vmatprep.mubr.msk.bf16.mxu1 %vm1203_vm6, %v2163_v42 }
 0x1d8   : > { %v1786_v11 = vpop.f32.mrb[38].mxu0 }
 0x1d9   : > { %v2057_v46 = vmul.f32 %v4705_v4, %v1961_v54  ;;  %v1964_v13 = vadd.f32 %v4672_v25, %v1786_v11  ;;  %v1788_v47 = vpop.f32.mrb[39].mxu0 }
 0x1db   : > { %v2101_v20 = vadd.f32 %v4711_v45, %v2057_v46  ;;  %v2058_v17 = vmul.f32 %v4705_v4, %v1964_v13 }
 0x1dd   : > { %v2102_v40 = vadd.f32 %v4711_v45, %v2058_v17  ;;  %v2137_v35 = vmax.f32 %v2101_v20, 0.0 }
 0x1df   : > { %v2138_v44 = vmax.f32 %v2102_v40, 0.0 }
 0x1e1   : > { %v2164_v50 = vpack.c.bf16 %v2138_v44, %v2137_v35 }
 0x1e2   : > { %v1791_v52 = vpop.f32.mrb[40].mxu0 }
 0x1e3   : > { %v1969_v26 = vadd.f32 %v4696_v1, %v1791_v52  ;;  %v1793_v56 = vpop.f32.mrb[41].mxu0  ;;  %3580 = vmatmul.mubr.msk.bf16.gmra.mrb[52].mxu1 %vm1203_vm6, %v2164_v50 }
 0x1e4   : > { %v1794_v49 = vpop.f32.mrb[42].mxu0 }
 0x1e5   : > { %v2059_v60 = vmul.f32 %v4705_v4, %v1969_v26  ;;  %v1972_v25 = vadd.f32 %v4700_v62, %v1794_v49  ;;  %v1796_v63 = vpop.f32.mrb[43].mxu0 }
 0x1e7   : > { %v2103_v2 = vadd.f32 %v4711_v45, %v2059_v60  ;;  %v2060_v21 = vmul.f32 %v4705_v4, %v1972_v25 }
 0x1e9   : > { %v2104_v19 = vadd.f32 %v4711_v45, %v2060_v21  ;;  %v2139_v34 = vmax.f32 %v2103_v2, 0.0 }
 0x1eb   : > { %v2140_v48 = vmax.f32 %v2104_v19, 0.0 }
 0x1ed   : > { %v2165_v39 = vpack.c.bf16 %v2140_v48, %v2139_v34 }
 0x1ee   : > { %v1799_v0 = vpop.f32.mrb[44].mxu0 }
 0x1ef   : > { %v1977_v1 = vadd.f32 %v4694_v12, %v1799_v0  ;;  %v1801_v61 = vpop.f32.mrb[45].mxu0  ;;  %3583 = vmatprep.mubr.msk.bf16.mxu1 %vm1203_vm6, %v2165_v39 }
 0x1f0   : > { %v1802_v37 = vpop.f32.mrb[46].mxu0 }
 0x1f1   : > { %v2061_v58 = vmul.f32 %v4705_v4, %v1977_v1  ;;  %v1980_v62 = vadd.f32 %v4698_v36, %v1802_v37  ;;  %v1804_v18 = vpop.f32.mrb[47].mxu0 }
 0x1f3   : > { %v2105_v27 = vadd.f32 %v4711_v45, %v2061_v58  ;;  %v2062_v57 = vmul.f32 %v4705_v4, %v1980_v62 }
 0x1f5   : > { %v2106_v3 = vadd.f32 %v4711_v45, %v2062_v57  ;;  %v2141_v14 = vmax.f32 %v2105_v27, 0.0 }
 0x1f7   : > { %v2142_v31 = vmax.f32 %v2106_v3, 0.0 }
 0x1f9   : > { %v2166_v16 = vpack.c.bf16 %v2142_v31, %v2141_v14 }
 0x1fa   : > { %v1807_v32 = vpop.f32.mrb[48].mxu0 }
 0x1fb   : > { %v1985_v12 = vadd.f32 %v4720_v29, %v1807_v32  ;;  %v1809_v41 = vpop.f32.mrb[49].mxu0  ;;  %3584 = vmatmul.mubr.msk.bf16.gmra.mrb[56].mxu1 %vm1203_vm6, %v2166_v16 }
 0x1fc   : > { %v1810_v22 = vpop.f32.mrb[50].mxu0 }
 0x1fd   : > { %v2063_v53 = vmul.f32 %v4705_v4, %v1985_v12  ;;  %v1988_v36 = vadd.f32 %v4725_v55, %v1810_v22  ;;  %v1812_v7 = vpop.f32.mrb[51].mxu0 }
 0x1ff   : > { %v2107_v38 = vadd.f32 %v4711_v45, %v2063_v53  ;;  %v2064_v51 = vmul.f32 %v4705_v4, %v1988_v36 }
 0x201   : > { %v2108_v8 = vadd.f32 %v4711_v45, %v2064_v51  ;;  %v2143_v42 = vmax.f32 %v2107_v38, 0.0 }
 0x203   : > { %v2144_v23 = vmax.f32 %v2108_v8, 0.0 }
 0x205   : > { %v2167_v54 = vpack.c.bf16 %v2144_v23, %v2143_v42 }
 0x206   : > { %v1815_v15 = vpop.f32.mrb[52].mxu0 }
 0x207   : > { %v1993_v29 = vadd.f32 %v4718_v33, %v1815_v15  ;;  %v1817_v11 = vpop.f32.mrb[53].mxu0  ;;  %3587 = vmatprep.mubr.msk.bf16.mxu1 %vm1203_vm6, %v2167_v54 }
 0x208   : > { %v1818_v46 = vpop.f32.mrb[54].mxu0 }
 0x209   : > { %v2065_v13 = vmul.f32 %v4705_v4, %v1993_v29  ;;  %v1996_v55 = vadd.f32 %v4723_v28, %v1818_v46  ;;  %v1820_v47 = vpop.f32.mrb[55].mxu0 }
 0x20b   : > { %v2109_v20 = vadd.f32 %v4711_v45, %v2065_v13  ;;  %v2066_v17 = vmul.f32 %v4705_v4, %v1996_v55  ;;  %v4880_v55 = vld [vmem:[%s5010_s6] ss:$0 sm:$0xff] }
 0x20d   : > { %v2110_v40 = vadd.f32 %v4711_v45, %v2066_v17  ;;  %v2145_v35 = vmax.f32 %v2109_v20, 0.0 }
 0x20f   : > { %v2146_v44 = vmax.f32 %v2110_v40, 0.0 }
 0x211   : > { %v2168_v50 = vpack.c.bf16 %v2146_v44, %v2145_v35 }
 0x212   : > { %v1823_v52 = vpop.f32.mrb[56].mxu0 }
 0x213   : > { %v2001_v33 = vadd.f32 %v4746_v10, %v1823_v52  ;;  %v1825_v26 = vpop.f32.mrb[57].mxu0  ;;  %3588 = vmatmul.mubr.msk.bf16.gmra.mrb[60].mxu1 %vm1203_vm6, %v2168_v50 }
 0x214   : > { %v1826_v56 = vpop.f32.mrb[58].mxu0 }
 0x215   : > { %v2067_v49 = vmul.f32 %v4705_v4, %v2001_v33  ;;  %v2004_v28 = vadd.f32 %v4752_v30, %v1826_v56  ;;  %v1828_v60 = vpop.f32.mrb[59].mxu0 }
 0x217   : > { %v2111_v25 = vadd.f32 %v4711_v45, %v2067_v49  ;;  %v2068_v63 = vmul.f32 %v4705_v4, %v2004_v28 }
 0x219   : > { %v2112_v2 = vadd.f32 %v4711_v45, %v2068_v63  ;;  %v2147_v21 = vmax.f32 %v2111_v25, 0.0 }
 0x21b   : > { %v2148_v19 = vmax.f32 %v2112_v2, 0.0 }
 0x21d   : > { %v2169_v34 = vpack.c.bf16 %v2148_v19, %v2147_v21 }
 0x21e   : > { %v1831_v48 = vpop.f32.mrb[60].mxu0 }
 0x21f   : > { %v2009_v10 = vadd.f32 %v4744_v5, %v1831_v48  ;;  %v1833_v39 = vpop.f32.mrb[61].mxu0  ;;  %3591 = vmatprep.mubr.msk.bf16.mxu1 %vm1203_vm6, %v2169_v34 }
 0x220   : > { %v1834_v0 = vpop.f32.mrb[62].mxu0 }
 0x221   : > { %v2069_v1 = vmul.f32 %v4705_v4, %v2009_v10  ;;  %v2012_v30 = vadd.f32 %v4750_v9, %v1834_v0  ;;  %v1836_v61 = vpop.f32.mrb[63].mxu0 }
 0x222   : > { %v3446_v61 = vld [vmem:[%s4868_s13 + $0x10] sm:$0xff]  }
 0x223   : > { %v2113_v37 = vadd.f32 %v4711_v45, %v2069_v1  ;;  %v2070_v58 = vmul.f32 %v4705_v4, %v2012_v30  ;;  %v3447_v30 = vld [vmem:[%s4868_s13 + $0x18] sm:$0xff]  }
 0x225   : > { %v2114_v62 = vadd.f32 %v4711_v45, %v2070_v58  ;;  %v2149_v18 = vmax.f32 %v2113_v37, 0.0 }
 0x227   : > { %v2150_v27 = vmax.f32 %v2114_v62, 0.0  ;;  %v3297_v62 = vunpack.c.l.bf16 %v3447_v30 }
 0x229   : > { %v2170_v57 = vpack.c.bf16 %v2150_v27, %v2149_v18 }
 0x22a   : > { %v1839_v3 = vpop.f32.mrb[64].mxu0 }
 0x22b   : > { %v2017_v5 = vadd.f32 %v4768_v43, %v1839_v3  ;;  %v1841_v14 = vpop.f32.mrb[65].mxu0  ;;  %3592 = vmatmul.mubr.msk.bf16.gmra.mrb[64].mxu1 %vm1203_vm6, %v2170_v57  ;;  %v3293_v57 = vunpack.c.l.bf16 %v3446_v61 }
 0x22c   : > { %v1842_v31 = vpop.f32.mrb[66].mxu0 }
 0x22d   : > { %v2071_v16 = vmul.f32 %v4705_v4, %v2017_v5  ;;  %v2020_v9 = vadd.f32 %v4774_v59, %v1842_v31  ;;  %v1844_v32 = vpop.f32.mrb[67].mxu0  ;;  %v3298_v31 = vunpack.c.h.bf16 %v3447_v30 }
 0x22f   : > { %v2115_v12 = vadd.f32 %v4711_v45, %v2071_v16  ;;  %v2072_v41 = vmul.f32 %v4705_v4, %v2020_v9 }
 0x231   : > { %v2116_v22 = vadd.f32 %v4711_v45, %v2072_v41  ;;  %v2151_v53 = vmax.f32 %v2115_v12, 0.0  ;;  %v3294_v12 = vunpack.c.h.bf16 %v3446_v61 }
 0x233   : > { %v2152_v36 = vmax.f32 %v2116_v22, 0.0 }
 0x235   : > { %v2171_v7 = vpack.c.bf16 %v2152_v36, %v2151_v53 }
 0x236   : > { %v1847_v43 = vpop.f32.mrb[68].mxu0 }
 0x237   : > { %v2025_v38 = vadd.f32 %v4766_v24, %v1847_v43  ;;  %v1849_v51 = vpop.f32.mrb[69].mxu0  ;;  %3595 = vmatprep.mubr.msk.bf16.mxu1 %vm1203_vm6, %v2171_v7  ;;  %v3284_v24 = vld [vmem:[%s4868_s13] sm:$0xff]  }
 0x238   : > { %v1850_v8 = vpop.f32.mrb[70].mxu0  ;;  %v3285_v35 = vunpack.c.l.bf16 %v3284_v24  ;;  %v3286_v28 = vunpack.c.h.bf16 %v3284_v24 }
 0x239   : > { %v2073_v59 = vmul.f32 %v4705_v4, %v2025_v38  ;;  %v2028_v42 = vadd.f32 %v4772_v6, %v1850_v8  ;;  %v1852_v23 = vpop.f32.mrb[71].mxu0 }
 0x23b   : > { %v2117_v54 = vadd.f32 %v4711_v45, %v2073_v59  ;;  %v2074_v15 = vmul.f32 %v4705_v4, %v2028_v42  ;;  %v4873_v4 = vld [vmem:[%s5009_s5] ss:$0 sm:$0xff] }
 0x23d   : > { %v2118_v29 = vadd.f32 %v4711_v45, %v2074_v15  ;;  %v2153_v11 = vmax.f32 %v2117_v54, 0.0  ;;  %v3445_v45 = vld [vmem:[%s4868_s13 + $0x8] sm:$0xff]   ;;  %v3448_v15 = vld [vmem:[%s4868_s13 + $0x20] sm:$0xff]  }
 0x23e   : > { %v3289_v20 = vunpack.c.l.bf16 %v3445_v45  ;;  %v3290_v33 = vunpack.c.h.bf16 %v3445_v45  ;;  %v3449_v54 = vld [vmem:[%s4868_s13 + $0x28] sm:$0xff]   ;;  %v3301_v24 = vunpack.c.l.bf16 %v3448_v15 }
 0x23f   : > { %v2154_v46 = vmax.f32 %v2118_v29, 0.0 }
 0x241   : > { %v2172_v13 = vpack.c.bf16 %v2154_v46, %v2153_v11  ;;  %v3305_v46 = vunpack.c.l.bf16 %v3449_v54 }
 0x243   : > { %3596 = vmatmul.mubr.msk.bf16.gmra.mrb[68].mxu1 %vm1203_vm6, %v2172_v13 }
 0x25a   : > { %v3565_v6 = vpop.f32.mrb[36].mxu1 }
 0x25b   : > { %v2623_v47 = vmul.f32 %v3565_v6, %v4873_v4  ;;  %v2280_v17 = vpop.f32.mrb[37].mxu1 }
 0x25c   : > { %v2621_v40 = vmul.f32 %v4873_v4, %v2280_v17  ;;  %v3566_v44 = vpop.f32.mrb[38].mxu1  ;;  %v3306_v17 = vunpack.c.h.bf16 %v3449_v54 }
 0x25d   : > { %v2666_v50 = vadd.f32 %v4880_v55, %v2623_v47  ;;  %v2624_v52 = vmul.f32 %v3566_v44, %v4873_v4  ;;  %v2283_v26 = vpop.f32.mrb[39].mxu1 }
 0x25e   : > { %v2664_v56 = vadd.f32 %v4880_v55, %v2621_v40  ;;  %v2622_v49 = vmul.f32 %v4873_v4, %v2283_v26 }
 0x25f   : > { %v2774_v60 = vadd.f32 %v3289_v20, %v2666_v50  ;;  %v2667_v25 = vadd.f32 %v4880_v55, %v2624_v52  ;;  %v3302_v50 = vunpack.c.h.bf16 %v3448_v15 }
 0x260   : > { %v2772_v63 = vadd.f32 %v3285_v35, %v2664_v56  ;;  %v2665_v2 = vadd.f32 %v4880_v55, %v2622_v49 }
 0x261   : > { %v2775_v21 = vadd.f32 %v3290_v33, %v2667_v25  ;;  %v2810_v34 = vmax.f32 %v2774_v60, 0.0 }
 0x262   : > { %v2773_v19 = vadd.f32 %v3286_v28, %v2665_v2  ;;  %v2808_v10 = vmax.f32 %v2772_v63, 0.0 }
 0x263   : > { %v2811_v48 = vmax.f32 %v2775_v21, 0.0 }
 0x264   : > { %v2809_v39 = vmax.f32 %v2773_v19, 0.0 }
 0x265   : > { %v3363_v0 = vpack.c.bf16 %v2811_v48, %v2810_v34  ;;  %v3451_v34 = vld [vmem:[%s4868_s13 + $0x38] sm:$0xff]   ;;  %v3450_v48 = vld [vmem:[%s4868_s13 + $0x30] sm:$0xff]  }
 0x266   : > { %v3358_v1 = vpack.c.bf16 %v2809_v39, %v2808_v10  ;;  %v3309_v61 = vunpack.c.l.bf16 %v3450_v48 }
 0x267   : > { %3462 = vst [vmem:[%s4895_s16 + $0x8] sm:$0xff] %v3363_v0   ;;  %v3313_v0 = vunpack.c.l.bf16 %v3451_v34 }
 0x268   : > { %3359 = vst [vmem:[%s4895_s16] sm:$0xff] %v3358_v1  }
 0x26e   : > { %v3569_v37 = vpop.f32.mrb[40].mxu1 }
 0x26f   : > { %v2627_v58 = vmul.f32 %v3569_v37, %v4873_v4  ;;  %v2296_v18 = vpop.f32.mrb[41].mxu1 }
 0x270   : > { %v2625_v27 = vmul.f32 %v4873_v4, %v2296_v18  ;;  %v3570_v3 = vpop.f32.mrb[42].mxu1  ;;  %v3314_v18 = vunpack.c.h.bf16 %v3451_v34 }
 0x271   : > { %v2670_v5 = vadd.f32 %v4880_v55, %v2627_v58  ;;  %v2628_v14 = vmul.f32 %v3570_v3, %v4873_v4  ;;  %v2299_v16 = vpop.f32.mrb[43].mxu1 }
 0x272   : > { %v2668_v9 = vadd.f32 %v4880_v55, %v2625_v27  ;;  %v2626_v32 = vmul.f32 %v4873_v4, %v2299_v16 }
 0x273   : > { %v2778_v41 = vadd.f32 %v3297_v62, %v2670_v5  ;;  %v2671_v22 = vadd.f32 %v4880_v55, %v2628_v14  ;;  %v3310_v5 = vunpack.c.h.bf16 %v3450_v48 }
 0x274   : > { %v2776_v53 = vadd.f32 %v3293_v57, %v2668_v9  ;;  %v2669_v36 = vadd.f32 %v4880_v55, %v2626_v32 }
 0x275   : > { %v2779_v7 = vadd.f32 %v3298_v31, %v2671_v22  ;;  %v2814_v38 = vmax.f32 %v2778_v41, 0.0 }
 0x276   : > { %v2777_v43 = vadd.f32 %v3294_v12, %v2669_v36  ;;  %v2812_v8 = vmax.f32 %v2776_v53, 0.0 }
 0x277   : > { %v2815_v51 = vmax.f32 %v2779_v7, 0.0 }
 0x278   : > { %v2813_v59 = vmax.f32 %v2777_v43, 0.0 }
 0x279   : > { %v3373_v42 = vpack.c.bf16 %v2815_v51, %v2814_v38  ;;  %v3453_v38 = vld [vmem:[%s4868_s13 + $0x48] sm:$0xff]   ;;  %v3452_v51 = vld [vmem:[%s4868_s13 + $0x40] sm:$0xff]  }
 0x27a   : > { %v3368_v23 = vpack.c.bf16 %v2813_v59, %v2812_v8  ;;  %v3317_v15 = vunpack.c.l.bf16 %v3452_v51 }
 0x27b   : > { %3464 = vst [vmem:[%s4895_s16 + $0x18] sm:$0xff] %v3373_v42   ;;  %v3321_v42 = vunpack.c.l.bf16 %v3453_v38 }
 0x27c   : > { %3463 = vst [vmem:[%s4895_s16 + $0x10] sm:$0xff] %v3368_v23  }
 0x286   : > { %v3573_v29 = vpop.f32.mrb[44].mxu1 }
 0x287   : > { %v2631_v11 = vmul.f32 %v3573_v29, %v4873_v4  ;;  %v2312_v13 = vpop.f32.mrb[45].mxu1 }
 0x288   : > { %v2629_v45 = vmul.f32 %v4873_v4, %v2312_v13  ;;  %v3574_v6 = vpop.f32.mrb[46].mxu1  ;;  %v3322_v13 = vunpack.c.h.bf16 %v3453_v38 }
 0x289   : > { %v2674_v47 = vadd.f32 %v4880_v55, %v2631_v11  ;;  %v2632_v20 = vmul.f32 %v3574_v6, %v4873_v4  ;;  %v2315_v40 = vpop.f32.mrb[47].mxu1 }
 0x28a   : > { %v2672_v35 = vadd.f32 %v4880_v55, %v2629_v45  ;;  %v2630_v44 = vmul.f32 %v4873_v4, %v2315_v40 }
 0x28b   : > { %v2782_v52 = vadd.f32 %v3305_v46, %v2674_v47  ;;  %v2675_v33 = vadd.f32 %v4880_v55, %v2632_v20  ;;  %v3318_v47 = vunpack.c.h.bf16 %v3452_v51 }
 0x28c   : > { %v2780_v26 = vadd.f32 %v3301_v24, %v2672_v35  ;;  %v2673_v56 = vadd.f32 %v4880_v55, %v2630_v44 }
 0x28d   : > { %v2783_v49 = vadd.f32 %v3306_v17, %v2675_v33  ;;  %v2818_v60 = vmax.f32 %v2782_v52, 0.0 }
 0x28e   : > { %v2781_v28 = vadd.f32 %v3302_v50, %v2673_v56  ;;  %v2816_v63 = vmax.f32 %v2780_v26, 0.0 }
 0x28f   : > { %v2819_v25 = vmax.f32 %v2783_v49, 0.0 }
 0x290   : > { %v2817_v2 = vmax.f32 %v2781_v28, 0.0 }
 0x291   : > { %v3383_v21 = vpack.c.bf16 %v2819_v25, %v2818_v60  ;;  %v3455_v60 = vld [vmem:[%s4868_s13 + $0x58] sm:$0xff]   ;;  %v3454_v25 = vld [vmem:[%s4868_s13 + $0x50] sm:$0xff]  }
 0x292   : > { %v3378_v19 = vpack.c.bf16 %v2817_v2, %v2816_v63  ;;  %v3325_v48 = vunpack.c.l.bf16 %v3454_v25 }
 0x293   : > { %3466 = vst [vmem:[%s4895_s16 + $0x28] sm:$0xff] %v3383_v21   ;;  %v3329_v21 = vunpack.c.l.bf16 %v3455_v60 }
 0x294   : > { %3465 = vst [vmem:[%s4895_s16 + $0x20] sm:$0xff] %v3378_v19  }
 0x29e   : > { %v3577_v10 = vpop.f32.mrb[48].mxu1 }
 0x29f   : > { %v2635_v39 = vmul.f32 %v3577_v10, %v4873_v4  ;;  %v2328_v1 = vpop.f32.mrb[49].mxu1 }
 0x2a0   : > { %v2633_v30 = vmul.f32 %v4873_v4, %v2328_v1  ;;  %v3578_v37 = vpop.f32.mrb[50].mxu1  ;;  %v3330_v1 = vunpack.c.h.bf16 %v3455_v60 }
 0x2a1   : > { %v2678_v58 = vadd.f32 %v4880_v55, %v2635_v39  ;;  %v2636_v62 = vmul.f32 %v3578_v37, %v4873_v4  ;;  %v2331_v27 = vpop.f32.mrb[51].mxu1 }
 0x2a2   : > { %v2676_v57 = vadd.f32 %v4880_v55, %v2633_v30  ;;  %v2634_v3 = vmul.f32 %v4873_v4, %v2331_v27 }
 0x2a3   : > { %v2786_v14 = vadd.f32 %v3313_v0, %v2678_v58  ;;  %v2679_v31 = vadd.f32 %v4880_v55, %v2636_v62  ;;  %v3326_v58 = vunpack.c.h.bf16 %v3454_v25 }
 0x2a4   : > { %v2784_v16 = vadd.f32 %v3309_v61, %v2676_v57  ;;  %v2677_v9 = vadd.f32 %v4880_v55, %v2634_v3 }
 0x2a5   : > { %v2787_v32 = vadd.f32 %v3314_v18, %v2679_v31  ;;  %v2822_v41 = vmax.f32 %v2786_v14, 0.0 }
 0x2a6   : > { %v2785_v12 = vadd.f32 %v3310_v5, %v2677_v9  ;;  %v2820_v53 = vmax.f32 %v2784_v16, 0.0 }
 0x2a7   : > { %v2823_v22 = vmax.f32 %v2787_v32, 0.0 }
 0x2a8   : > { %v2821_v36 = vmax.f32 %v2785_v12, 0.0 }
 0x2a9   : > { %v3393_v7 = vpack.c.bf16 %v2823_v22, %v2822_v41  ;;  %v3457_v41 = vld [vmem:[%s4868_s13 + $0x68] sm:$0xff]   ;;  %v3456_v22 = vld [vmem:[%s4868_s13 + $0x60] sm:$0xff]  }
 0x2aa   : > { %v3388_v43 = vpack.c.bf16 %v2821_v36, %v2820_v53  ;;  %v3333_v51 = vunpack.c.l.bf16 %v3456_v22 }
 0x2ab   : > { %3468 = vst [vmem:[%s4895_s16 + $0x38] sm:$0xff] %v3393_v7   ;;  %v3337_v7 = vunpack.c.l.bf16 %v3457_v41 }
 0x2ac   : > { %3467 = vst [vmem:[%s4895_s16 + $0x30] sm:$0xff] %v3388_v43  }
 0x2b6   : > { %v3581_v8 = vpop.f32.mrb[52].mxu1 }
 0x2b7   : > { %v2639_v59 = vmul.f32 %v3581_v8, %v4873_v4  ;;  %v2344_v23 = vpop.f32.mrb[53].mxu1 }
 0x2b8   : > { %v2637_v54 = vmul.f32 %v4873_v4, %v2344_v23  ;;  %v3582_v29 = vpop.f32.mrb[54].mxu1  ;;  %v3338_v23 = vunpack.c.h.bf16 %v3457_v41 }
 0x2b9   : > { %v2682_v11 = vadd.f32 %v4880_v55, %v2639_v59  ;;  %v2640_v46 = vmul.f32 %v3582_v29, %v4873_v4  ;;  %v2347_v45 = vpop.f32.mrb[55].mxu1 }
 0x2ba   : > { %v2680_v24 = vadd.f32 %v4880_v55, %v2637_v54  ;;  %v2638_v6 = vmul.f32 %v4873_v4, %v2347_v45 }
 0x2bb   : > { %v2790_v20 = vadd.f32 %v3321_v42, %v2682_v11  ;;  %v2683_v17 = vadd.f32 %v4880_v55, %v2640_v46  ;;  %v3334_v11 = vunpack.c.h.bf16 %v3456_v22 }
 0x2bc   : > { %v2788_v40 = vadd.f32 %v3317_v15, %v2680_v24  ;;  %v2681_v35 = vadd.f32 %v4880_v55, %v2638_v6 }
 0x2bd   : > { %v2791_v44 = vadd.f32 %v3322_v13, %v2683_v17  ;;  %v2826_v52 = vmax.f32 %v2790_v20, 0.0 }
 0x2be   : > { %v2789_v50 = vadd.f32 %v3318_v47, %v2681_v35  ;;  %v2824_v26 = vmax.f32 %v2788_v40, 0.0 }
 0x2bf   : > { %v2827_v33 = vmax.f32 %v2791_v44, 0.0 }
 0x2c0   : > { %v2825_v56 = vmax.f32 %v2789_v50, 0.0 }
 0x2c1   : > { %v3403_v49 = vpack.c.bf16 %v2827_v33, %v2826_v52  ;;  %v3459_v52 = vld [vmem:[%s4868_s13 + $0x78] sm:$0xff]   ;;  %v3458_v33 = vld [vmem:[%s4868_s13 + $0x70] sm:$0xff]  }
 0x2c2   : > { %v3398_v28 = vpack.c.bf16 %v2825_v56, %v2824_v26  ;;  %v3341_v25 = vunpack.c.l.bf16 %v3458_v33 }
 0x2c3   : > { %3470 = vst [vmem:[%s4895_s16 + $0x48] sm:$0xff] %v3403_v49   ;;  %v3345_v49 = vunpack.c.l.bf16 %v3459_v52 }
 0x2c4   : > { %3469 = vst [vmem:[%s4895_s16 + $0x40] sm:$0xff] %v3398_v28  }
 0x2ce   : > { %v3585_v63 = vpop.f32.mrb[56].mxu1 }
 0x2cf   : > { %v2643_v2 = vmul.f32 %v3585_v63, %v4873_v4  ;;  %v2360_v19 = vpop.f32.mrb[57].mxu1 }
 0x2d0   : > { %v2641_v34 = vmul.f32 %v4873_v4, %v2360_v19  ;;  %v3586_v10 = vpop.f32.mrb[58].mxu1  ;;  %v3346_v19 = vunpack.c.h.bf16 %v3459_v52 }
 0x2d1   : > { %v2686_v39 = vadd.f32 %v4880_v55, %v2643_v2  ;;  %v2644_v0 = vmul.f32 %v3586_v10, %v4873_v4  ;;  %v2363_v30 = vpop.f32.mrb[59].mxu1 }
 0x2d2   : > { %v2684_v61 = vadd.f32 %v4880_v55, %v2641_v34  ;;  %v2642_v37 = vmul.f32 %v4873_v4, %v2363_v30 }
 0x2d3   : > { %v2794_v62 = vadd.f32 %v3329_v21, %v2686_v39  ;;  %v2687_v18 = vadd.f32 %v4880_v55, %v2644_v0  ;;  %v3342_v39 = vunpack.c.h.bf16 %v3458_v33 }
 0x2d4   : > { %v2792_v27 = vadd.f32 %v3325_v48, %v2684_v61  ;;  %v2685_v57 = vadd.f32 %v4880_v55, %v2642_v37 }
 0x2d5   : > { %v2795_v3 = vadd.f32 %v3330_v1, %v2687_v18  ;;  %v2830_v14 = vmax.f32 %v2794_v62, 0.0 }
 0x2d6   : > { %v2793_v5 = vadd.f32 %v3326_v58, %v2685_v57  ;;  %v2828_v16 = vmax.f32 %v2792_v27, 0.0 }
 0x2d7   : > { %v2831_v31 = vmax.f32 %v2795_v3, 0.0 }
 0x2d8   : > { %v2829_v9 = vmax.f32 %v2793_v5, 0.0 }
 0x2d9   : > { %v3413_v32 = vpack.c.bf16 %v2831_v31, %v2830_v14  ;;  %v3461_v14 = vld [vmem:[%s4868_s13 + $0x88] sm:$0xff]   ;;  %v3460_v31 = vld [vmem:[%s4868_s13 + $0x80] sm:$0xff]  }
 0x2da   : > { %v3408_v12 = vpack.c.bf16 %v2829_v9, %v2828_v16  ;;  %v3349_v22 = vunpack.c.l.bf16 %v3460_v31 }
 0x2db   : > { %3472 = vst [vmem:[%s4895_s16 + $0x58] sm:$0xff] %v3413_v32   ;;  %v3353_v32 = vunpack.c.l.bf16 %v3461_v14 }
 0x2dc   : > { %3471 = vst [vmem:[%s4895_s16 + $0x50] sm:$0xff] %v3408_v12  }
 0x2e6   : > { %v3589_v53 = vpop.f32.mrb[60].mxu1 }
 0x2e7   : > { %v2647_v36 = vmul.f32 %v3589_v53, %v4873_v4  ;;  %v2376_v43 = vpop.f32.mrb[61].mxu1 }
 0x2e8   : > { %v2645_v38 = vmul.f32 %v4873_v4, %v2376_v43  ;;  %v3590_v8 = vpop.f32.mrb[62].mxu1  ;;  %v3354_v43 = vunpack.c.h.bf16 %v3461_v14 }
 0x2e9   : > { %v2690_v59 = vadd.f32 %v4880_v55, %v2647_v36  ;;  %v2648_v42 = vmul.f32 %v3590_v8, %v4873_v4  ;;  %v2379_v54 = vpop.f32.mrb[63].mxu1 }
 0x2ea   : > { %v2688_v15 = vadd.f32 %v4880_v55, %v2645_v38  ;;  %v2646_v29 = vmul.f32 %v4873_v4, %v2379_v54 }
 0x2eb   : > { %v2798_v46 = vadd.f32 %v3337_v7, %v2690_v59  ;;  %v2691_v13 = vadd.f32 %v4880_v55, %v2648_v42  ;;  %v3350_v59 = vunpack.c.h.bf16 %v3460_v31 }
 0x2ec   : > { %v2796_v45 = vadd.f32 %v3333_v51, %v2688_v15  ;;  %v2689_v24 = vadd.f32 %v4880_v55, %v2646_v29 }
 0x2ed   : > { %v2799_v6 = vadd.f32 %v3338_v23, %v2691_v13  ;;  %v2834_v20 = vmax.f32 %v2798_v46, 0.0 }
 0x2ee   : > { %v2797_v47 = vadd.f32 %v3334_v11, %v2689_v24  ;;  %v2832_v40 = vmax.f32 %v2796_v45, 0.0 }
 0x2ef   : > { %v2835_v17 = vmax.f32 %v2799_v6, 0.0 }
 0x2f0   : > { %v2833_v35 = vmax.f32 %v2797_v47, 0.0 }
 0x2f1   : > { %v3423_v44 = vpack.c.bf16 %v2835_v17, %v2834_v20 }
 0x2f2   : > { %v3418_v50 = vpack.c.bf16 %v2833_v35, %v2832_v40 }
 0x2f3   : > { %3474 = vst [vmem:[%s4895_s16 + $0x68] sm:$0xff] %v3423_v44  }
 0x2f4   : > { %3473 = vst [vmem:[%s4895_s16 + $0x60] sm:$0xff] %v3418_v50  }
 0x2fe   : > { %v3593_v26 = vpop.f32.mrb[64].mxu1 }
 0x2ff   : > { %v2651_v56 = vmul.f32 %v3593_v26, %v4873_v4  ;;  %v2392_v28 = vpop.f32.mrb[65].mxu1 }
 0x300   : > { %v2649_v60 = vmul.f32 %v4873_v4, %v2392_v28  ;;  %v3594_v63 = vpop.f32.mrb[66].mxu1 }
 0x301   : > { %v2694_v2 = vadd.f32 %v4880_v55, %v2651_v56  ;;  %v2652_v21 = vmul.f32 %v3594_v63, %v4873_v4  ;;  %v2395_v34 = vpop.f32.mrb[67].mxu1 }
 0x302   : > { %v2692_v48 = vadd.f32 %v4880_v55, %v2649_v60  ;;  %v2650_v10 = vmul.f32 %v4873_v4, %v2395_v34 }
 0x303   : > { %v2802_v0 = vadd.f32 %v3345_v49, %v2694_v2  ;;  %v2695_v1 = vadd.f32 %v4880_v55, %v2652_v21 }
 0x304   : > { %v2800_v30 = vadd.f32 %v3341_v25, %v2692_v48  ;;  %v2693_v61 = vadd.f32 %v4880_v55, %v2650_v10 }
 0x305   : > { %v2803_v37 = vadd.f32 %v3346_v19, %v2695_v1  ;;  %v2838_v62 = vmax.f32 %v2802_v0, 0.0 }
 0x306   : > { %v2801_v58 = vadd.f32 %v3342_v39, %v2693_v61  ;;  %v2836_v27 = vmax.f32 %v2800_v30, 0.0 }
 0x307   : > { %v2839_v18 = vmax.f32 %v2803_v37, 0.0 }
 0x308   : > { %v2837_v57 = vmax.f32 %v2801_v58, 0.0 }
 0x309   : > { %v3433_v3 = vpack.c.bf16 %v2839_v18, %v2838_v62 }
 0x30a   : > { %v3428_v5 = vpack.c.bf16 %v2837_v57, %v2836_v27 }
 0x30b   : > { %3476 = vst [vmem:[%s4895_s16 + $0x78] sm:$0xff] %v3433_v3  }
 0x30c   : > { %3475 = vst [vmem:[%s4895_s16 + $0x70] sm:$0xff] %v3428_v5  }
 0x316   : > { %v3597_v16 = vpop.f32.mrb[68].mxu1 }
 0x317   : > { %v2655_v9 = vmul.f32 %v3597_v16, %v4873_v4  ;;  %v2408_v12 = vpop.f32.mrb[69].mxu1 }
 0x318   : > { %v2653_v41 = vmul.f32 %v4873_v4, %v2408_v12  ;;  %v3598_v53 = vpop.f32.mrb[70].mxu1 }
 0x319   : > { %v2698_v36 = vadd.f32 %v4880_v55, %v2655_v9  ;;  %v2656_v7 = vmul.f32 %v3598_v53, %v4873_v4  ;;  %v2411_v38 = vpop.f32.mrb[71].mxu1 }
 0x31a   : > { %v2696_v51 = vadd.f32 %v4880_v55, %v2653_v41  ;;  %v2654_v8 = vmul.f32 %v4873_v4, %v2411_v38 }
 0x31b   : > { %v2806_v42 = vadd.f32 %v3353_v32, %v2698_v36  ;;  %v2699_v23 = vadd.f32 %v4880_v55, %v2656_v7 }
 0x31c   : > { %v2804_v54 = vadd.f32 %v3349_v22, %v2696_v51  ;;  %v2697_v15 = vadd.f32 %v4880_v55, %v2654_v8 }
 0x31d   : > { %v2807_v29 = vadd.f32 %v3354_v43, %v2699_v23  ;;  %v2842_v46 = vmax.f32 %v2806_v42, 0.0 }
 0x31e   : > { %v2805_v11 = vadd.f32 %v3350_v59, %v2697_v15  ;;  %v2840_v45 = vmax.f32 %v2804_v54, 0.0 }
 0x31f   : > { %v2843_v13 = vmax.f32 %v2807_v29, 0.0 }
 0x320   : > { %v2841_v24 = vmax.f32 %v2805_v11, 0.0 }
 0x321   : > { %v3443_v6 = vpack.c.bf16 %v2843_v13, %v2842_v46 }
 0x322   : > { %v3438_v47 = vpack.c.bf16 %v2841_v24, %v2840_v45 }
 0x323   : > { %3478 = vst [vmem:[%s4895_s16 + $0x88] sm:$0xff] %v3443_v6  }
 0x324   : > { %3477 = vst [vmem:[%s4895_s16 + $0x80] sm:$0xff] %v3438_v47  }
 0x325 PF: > { %s18_s29 = sadd.s32 1, %s3706_s29   ;;  %s5013_s27 = smov %s3702_s28 }
 0x326   : > { %p15_p5 = scmp.ge.s32.totalorder %s18_s29, 4   ;;  %s5014_s28 = smov %s5016_s30 }
 0x328   :  { %17 = sbr.rel (!%p15_p5) target bundleno = 2 (0x2), region = 101 }

</bundles_post_ra>
